<compile_context>
chip_gen: v7x
topology: tpu7x:2x2x1
jax: 0.10.0
libtpu: 0.0.40
codegen_flags: <defaults>
</compile_context>

<pallas_src>
import functools

import jax
import jax.numpy as jnp
from jax.experimental import pallas as pl
from jax.experimental.pallas import tpu as pltpu

PAD = 128          # lane-dense common width for all (padded) feature dims
NEG_INF = -9e15


def _pad2d(a, rows, cols):
    r, c = a.shape
    return jnp.pad(a, ((0, rows - r), (0, cols - c)))


# --------------------------------------------------------------------------
# Fused kernel
# --------------------------------------------------------------------------
def _gat(h, mask_bias, w, a_src, a_dst):
    """Single-head GAT over a block of row-stacked graphs.

    h         : (M, PAD)  row-stacked node features (zero-padded lanes)
    mask_bias : (M, M)    additive bias: 0 on intra-graph edges, -9e15 on
                          non-edges and on cross-graph pairs
    w         : (PAD, PAD) projection
    a_src/a_dst : (1, PAD) attention vectors (row layout)
    """
    wh = jnp.dot(h, w, preferred_element_type=jnp.float32)                # (M, PAD)
    e_src = jax.lax.dot_general(wh, a_src, (((1,), (1,)), ((), ())),
                                preferred_element_type=jnp.float32)       # (M, 1)
    e_dst = jax.lax.dot_general(a_dst, wh, (((1,), (1,)), ((), ())),
                                preferred_element_type=jnp.float32)       # (1, M)
    e = e_src + e_dst                                                     # (M, M)
    e = jnp.maximum(e, 0.2 * e)          # LeakyReLU(0.2)
    e = e + mask_bias                    # adjacency + cross-graph masking
    e = e - jnp.max(e, axis=-1, keepdims=True)      # stable softmax
    p = jnp.exp(e)
    inv = pl.reciprocal(jnp.sum(p, axis=-1, keepdims=True), approx=True)  # EUP
    out = jnp.dot(p * inv, wh, preferred_element_type=jnp.float32)        # (M, PAD)
    # ELU: exponentiate only the clamped negative branch
    return jnp.where(out > 0, out, jnp.exp(jnp.minimum(out, 0.0)) - 1.0)


def fused_gatvae_kernel(x_ref, eps_ref, mask_ref, w_ref, b_ref, a_ref,
                        xhat_ref, mu_ref, logvar_ref, *, n_enc, n_dec):
    # weight-slab column layout (each block PAD columns wide):
    #   0: gat_in.W | 1..n_enc: encoder | n_enc+1: mu | n_enc+2: sigma
    #   n_enc+3 .. n_enc+2+n_dec: decoder | n_enc+3+n_dec: gat_out.W
    def W(k):                       # (PAD, PAD) static view of the weight slab
        return w_ref[:, k * PAD:(k + 1) * PAD]

    def W2(k):                      # two adjacent blocks -> (PAD, 2*PAD)
        return w_ref[:, k * PAD:(k + 2) * PAD]

    def bias(k):                    # (1, PAD)
        return b_ref[k:k + 1, :]

    def avec(k):                    # (1, PAD)
        return a_ref[k:k + 1, :]

    mask = mask_ref[...]

    # ---- encode ----
    h = _gat(x_ref[...], mask, W(0), avec(0), avec(1))
    for i in range(n_enc):
        h = jnp.maximum(
            jnp.dot(h, W(1 + i), preferred_element_type=jnp.float32) + bias(i),
            0.0)

    # fused mu | sigma projection: one (M, 2*PAD) matmul, split at lane 128
    musg = jnp.dot(h, W2(1 + n_enc), preferred_element_type=jnp.float32)
    mu = musg[:, :PAD] + bias(n_enc)
    logvar = musg[:, PAD:] + bias(n_enc + 1)

    # ---- reparameterize (eps supplied from host for determinism) ----
    z = mu + eps_ref[...] * jnp.exp(0.5 * logvar)

    # ---- decode ----
    h = z
    for i in range(n_dec):
        h = jnp.maximum(
            jnp.dot(h, W(3 + n_enc + i), preferred_element_type=jnp.float32)
            + bias(n_enc + 2 + i),
            0.0)
    x_hat = _gat(h, mask, W(3 + n_enc + n_dec), avec(2), avec(3))

    xhat_ref[...] = x_hat
    mu_ref[...] = mu
    logvar_ref[...] = logvar


# --------------------------------------------------------------------------
# Parameter construction (PyTorch-default-style uniform init, packed slabs)
# --------------------------------------------------------------------------
def init_gatvae_params(key, node_num, hidden_features, latent_feature):
    enc_dims = [node_num] + list(hidden_features) + [latent_feature]
    dec_dims = [latent_feature] + list(reversed(hidden_features)) + [node_num]
    n_enc = len(enc_dims) - 1
    n_dec = len(dec_dims) - 1

    keys = iter(jax.random.split(key, 64))

    def lin(fi, fo):
        kw, kb = jax.random.split(next(keys))
        bound = 1.0 / float(fi) ** 0.5
        w = jax.random.uniform(kw, (fi, fo), jnp.float32, -bound, bound)
        b = jax.random.uniform(kb, (1, fo), jnp.float32, -bound, bound)
        return _pad2d(w, PAD, PAD), _pad2d(b, 1, PAD)

    def gat(n):
        kw, ks, kd = jax.random.split(next(keys), 3)
        bound = 1.0 / float(n) ** 0.5
        w = jax.random.uniform(kw, (n, n), jnp.float32, -bound, bound)
        a_src = jax.random.uniform(ks, (1, n), jnp.float32, -bound, bound)
        a_dst = jax.random.uniform(kd, (1, n), jnp.float32, -bound, bound)
        return _pad2d(w, PAD, PAD), _pad2d(a_src, 1, PAD), _pad2d(a_dst, 1, PAD)

    gi_w, gi_s, gi_d = gat(node_num)
    go_w, go_s, go_d = gat(node_num)

    w_cols, b_rows = [gi_w], []
    for i in range(n_enc):
        w, b = lin(enc_dims[i], enc_dims[i + 1])
        w_cols.append(w); b_rows.append(b)
    mu_w, mu_b = lin(latent_feature, latent_feature)
    sg_w, sg_b = lin(latent_feature, latent_feature)
    w_cols += [mu_w, sg_w]; b_rows += [mu_b, sg_b]
    for i in range(n_dec):
        w, b = lin(dec_dims[i], dec_dims[i + 1])
        w_cols.append(w); b_rows.append(b)
    w_cols.append(go_w)

    w_all = jnp.concatenate(w_cols, axis=1)                    # (PAD, num_w*PAD)
    b_all = jnp.concatenate(b_rows, axis=0)                    # (n_enc+2+n_dec, PAD)
    b_all = jnp.pad(b_all, ((0, (-b_all.shape[0]) % 8), (0, 0)))
    a_all = jnp.concatenate([gi_s, gi_d, go_s, go_d], axis=0)  # (4, PAD)
    a_all = jnp.pad(a_all, ((0, 4), (0, 0)))                   # (8, PAD)

    return {"w_all": w_all, "b_all": b_all, "a_all": a_all}


# --------------------------------------------------------------------------
# GATVAE forward: one fused, batched pallas_call
# --------------------------------------------------------------------------
@jax.jit
def gatvae_forward(params, x, adj, eps):
    """x: (B, N, N) batch of graphs sharing adj: (N, N); eps: (B, N, latent)."""
    w_all, b_all, a_all = params["w_all"], params["b_all"], params["a_all"]
    B, N, _ = x.shape
    latent = eps.shape[-1]
    assert PAD % N == 0

    num_w = w_all.shape[1] // PAD
    n_enc = n_dec = (num_w - 4) // 2       # encoder/decoder are mirrored depths

    G = PAD // N                           # graphs packed per 128-row MXU tile
    B_pad = ((B + G - 1) // G) * G
    num_blocks = B_pad // G
    tile_m = G * N                         # == PAD

    x_p = jnp.pad(x.astype(jnp.float32),
                  ((0, B_pad - B), (0, 0), (0, PAD - N))).reshape(B_pad * N, PAD)
    eps_p = jnp.pad(eps.astype(jnp.float32),
                    ((0, B_pad - B), (0, 0), (0, PAD - latent))).reshape(B_pad * N, PAD)

    # Block-diagonal additive attention mask: 0 on intra-graph edges,
    # -9e15 on non-edges and cross-graph pairs (built once per call).
    adj_bd = jnp.kron(jnp.eye(G, dtype=jnp.float32), adj.astype(jnp.float32))
    mask_bias = jnp.where(adj_bd > 0, 0.0, NEG_INF).astype(jnp.float32)

    row_spec = pl.BlockSpec((tile_m, PAD), lambda i: (i, 0))
    resident = lambda arr: pl.BlockSpec(arr.shape, lambda i: (0, 0))

    out_shape = tuple(jax.ShapeDtypeStruct((B_pad * N, PAD), jnp.float32)
                      for _ in range(3))

    x_hat_p, mu_p, logvar_p = pl.pallas_call(
        functools.partial(fused_gatvae_kernel, n_enc=n_enc, n_dec=n_dec),
        grid=(num_blocks,),
        in_specs=[row_spec, row_spec, resident(mask_bias),
                  resident(w_all), resident(b_all), resident(a_all)],
        out_specs=(row_spec, row_spec, row_spec),
        out_shape=out_shape,
        compiler_params=pltpu.CompilerParams(
            dimension_semantics=("parallel",)),
    )(x_p, eps_p, mask_bias, w_all, b_all, a_all)

    # zero-padded lanes are exactly zero; slice back to logical shapes
    x_hat = x_hat_p[:B * N, :N].reshape(B, N, N)
    mu = mu_p[:B * N, :latent].reshape(B, N, latent)
    logvar = logvar_p[:B * N, :latent].reshape(B, N, latent)
    return x_hat, mu, logvar


# --------------------------------------------------------------------------
if __name__ == "__main__":
    node_num = 16
    hidden_features = [32, 16]
    latent_feature = 8
    batch = 32          # 32 graphs -> 4 grid steps of 8 graphs (128 rows) each

    root = jax.random.PRNGKey(0)
    kp, kx, ka, ke = jax.random.split(root, 4)

    params = init_gatvae_params(kp, node_num, hidden_features, latent_feature)

    x = jax.random.normal(kx, (batch, node_num, node_num), jnp.float32)
    adj = (jax.random.uniform(ka, (node_num, node_num)) > 0.5).astype(jnp.float32)
    adj = jnp.maximum(adj, jnp.eye(node_num, dtype=jnp.float32))   # self-loops
    eps = jax.random.normal(ke, (batch, node_num, latent_feature), jnp.float32)

    x_hat, mu, logvar = gatvae_forward(params, x, adj, eps)
    jax.block_until_ready((x_hat, mu, logvar))

    assert x_hat.shape == (batch, node_num, node_num)
    assert mu.shape == (batch, node_num, latent_feature)
    assert logvar.shape == (batch, node_num, latent_feature)
    assert bool(jnp.all(jnp.isfinite(x_hat)))
    assert bool(jnp.all(jnp.isfinite(mu)))
    assert bool(jnp.all(jnp.isfinite(logvar)))
    print("KERNEL_OK")
</pallas_src>

<mosaic_0001>
module attributes {stable_mosaic.version = 11 : i64} {
  func.func @fused_gatvae_kernel(%arg0: i32, %arg1: memref<128x128xf32, #tpu.memory_space<vmem>>, %arg2: memref<128x128xf32, #tpu.memory_space<vmem>>, %arg3: memref<128x128xf32, #tpu.memory_space<vmem>>, %arg4: memref<128x1280xf32, #tpu.memory_space<vmem>>, %arg5: memref<8x128xf32, #tpu.memory_space<vmem>>, %arg6: memref<8x128xf32, #tpu.memory_space<vmem>>, %arg7: memref<128x128xf32, #tpu.memory_space<vmem>>, %arg8: memref<128x128xf32, #tpu.memory_space<vmem>>, %arg9: memref<128x128xf32, #tpu.memory_space<vmem>>) attributes {dimension_semantics = [#tpu.dimension_semantics<parallel>], iteration_bounds = array<i64: 4>, scalar_prefetch = 0 : i64, scratch_operands = 0 : i64, tpu.core_type = #tpu.core_type<tc>, window_params = [{transform_indices = @transform_0, window_bounds = array<i64: 128, 128>}, {transform_indices = @transform_1, window_bounds = array<i64: 128, 128>}, {pipeline_mode = #tpu.pipeline_mode<synchronous>, transform_indices = @transform_2, window_bounds = array<i64: 128, 128>}, {pipeline_mode = #tpu.pipeline_mode<synchronous>, transform_indices = @transform_3, window_bounds = array<i64: 128, 1280>}, {pipeline_mode = #tpu.pipeline_mode<synchronous>, transform_indices = @transform_4, window_bounds = array<i64: 8, 128>}, {pipeline_mode = #tpu.pipeline_mode<synchronous>, transform_indices = @transform_5, window_bounds = array<i64: 8, 128>}, {transform_indices = @transform_6, window_bounds = array<i64: 128, 128>}, {transform_indices = @transform_7, window_bounds = array<i64: 128, 128>}, {transform_indices = @transform_8, window_bounds = array<i64: 128, 128>}]} {
    %c0 = arith.constant 0 : index
    %c0_0 = arith.constant 0 : index
    %0 = vector.load %arg3[%c0, %c0_0] : memref<128x128xf32, #tpu.memory_space<vmem>>, vector<128x128xf32>
    %c0_1 = arith.constant 0 : index
    %c0_2 = arith.constant 0 : index
    %1 = vector.load %arg1[%c0_1, %c0_2] : memref<128x128xf32, #tpu.memory_space<vmem>>, vector<128x128xf32>
    %c0_3 = arith.constant 0 : index
    %c0_4 = arith.constant 0 : index
    %2 = vector.load %arg4[%c0_3, %c0_4] : memref<128x1280xf32, #tpu.memory_space<vmem>>, vector<128x128xf32>
    %c0_5 = arith.constant 0 : index
    %c0_6 = arith.constant 0 : index
    %3 = vector.load %arg6[%c0_5, %c0_6] : memref<8x128xf32, #tpu.memory_space<vmem>>, vector<1x128xf32>
    %c1 = arith.constant 1 : index
    %c0_7 = arith.constant 0 : index
    %4 = vector.load %arg6[%c1, %c0_7] : memref<8x128xf32, #tpu.memory_space<vmem>>, vector<1x128xf32>
    %cst = arith.constant dense<0.000000e+00> : vector<128x128xf32>
    %5 = tpu.matmul %1, %2, %cst {dimension_numbers = #tpu.dot_dimension_numbers<[1], [0], [0], [1], [0, 0, 1, 1], [], []>} : vector<128x128xf32>, vector<128x128xf32>, vector<128x128xf32> -> vector<128x128xf32>
    %cst_8 = arith.constant dense<0.000000e+00> : vector<128x1xf32>
    %6 = tpu.matmul %5, %3, %cst_8 {dimension_numbers = #tpu.dot_dimension_numbers<[1], [1], [0], [0], [0, 0, 1, 0], [], []>} : vector<128x128xf32>, vector<1x128xf32>, vector<128x1xf32> -> vector<128x1xf32>
    %cst_9 = arith.constant dense<0.000000e+00> : vector<1x128xf32>
    %7 = tpu.matmul %4, %5, %cst_9 {dimension_numbers = #tpu.dot_dimension_numbers<[1], [1], [0], [0], [0, 0, 1, 0], [], []>} : vector<1x128xf32>, vector<128x128xf32>, vector<1x128xf32> -> vector<1x128xf32>
    %8 = vector.broadcast %6 : vector<128x1xf32> to vector<128x128xf32>
    %9 = vector.broadcast %7 : vector<1x128xf32> to vector<128x128xf32>
    %10 = arith.addf %8, %9 : vector<128x128xf32>
    %cst_10 = arith.constant 2.000000e-01 : f32
    %11 = vector.broadcast %cst_10 : f32 to vector<128x128xf32>
    %12 = arith.mulf %11, %10 : vector<128x128xf32>
    %13 = arith.maximumf %10, %12 : vector<128x128xf32>
    %14 = arith.addf %13, %0 : vector<128x128xf32>
    %cst_11 = arith.constant dense<0xFF800000> : vector<128xf32>
    %15 = vector.multi_reduction <maximumf>, %14, %cst_11 [1] : vector<128x128xf32> to vector<128xf32>
    %16 = vector.shape_cast %15 : vector<128xf32> to vector<128x1xf32>
    %17 = vector.broadcast %16 : vector<128x1xf32> to vector<128x128xf32>
    %18 = arith.subf %14, %17 : vector<128x128xf32>
    %19 = math.exp %18 : vector<128x128xf32>
    %cst_12 = arith.constant dense<0.000000e+00> : vector<128xf32>
    %20 = vector.multi_reduction <add>, %19, %cst_12 [1] : vector<128x128xf32> to vector<128xf32>
    %21 = vector.shape_cast %20 : vector<128xf32> to vector<128x1xf32>
    %22 = tpu.reciprocal %21 {approx = true} : vector<128x1xf32> -> vector<128x1xf32>
    %23 = vector.broadcast %22 : vector<128x1xf32> to vector<128x128xf32>
    %24 = arith.mulf %19, %23 : vector<128x128xf32>
    %cst_13 = arith.constant dense<0.000000e+00> : vector<128x128xf32>
    %25 = tpu.matmul %24, %5, %cst_13 {dimension_numbers = #tpu.dot_dimension_numbers<[1], [0], [0], [1], [0, 0, 1, 1], [], []>} : vector<128x128xf32>, vector<128x128xf32>, vector<128x128xf32> -> vector<128x128xf32>
    %cst_14 = arith.constant 0.000000e+00 : f32
    %26 = vector.broadcast %cst_14 : f32 to vector<128x128xf32>
    %27 = arith.cmpf ogt, %25, %26 : vector<128x128xf32>
    %cst_15 = arith.constant 0.000000e+00 : f32
    %28 = vector.broadcast %cst_15 : f32 to vector<128x128xf32>
    %29 = arith.minimumf %25, %28 : vector<128x128xf32>
    %30 = math.exp %29 : vector<128x128xf32>
    %cst_16 = arith.constant 1.000000e+00 : f32
    %31 = vector.broadcast %cst_16 : f32 to vector<128x128xf32>
    %32 = arith.subf %30, %31 : vector<128x128xf32>
    %33 = arith.select %27, %25, %32 : vector<128x128xi1>, vector<128x128xf32>
    %c0_17 = arith.constant 0 : index
    %c128 = arith.constant 128 : index
    %34 = vector.load %arg4[%c0_17, %c128] : memref<128x1280xf32, #tpu.memory_space<vmem>>, vector<128x128xf32>
    %cst_18 = arith.constant dense<0.000000e+00> : vector<128x128xf32>
    %35 = tpu.matmul %33, %34, %cst_18 {dimension_numbers = #tpu.dot_dimension_numbers<[1], [0], [0], [1], [0, 0, 1, 1], [], []>} : vector<128x128xf32>, vector<128x128xf32>, vector<128x128xf32> -> vector<128x128xf32>
    %c0_19 = arith.constant 0 : index
    %c0_20 = arith.constant 0 : index
    %36 = vector.load %arg5[%c0_19, %c0_20] : memref<8x128xf32, #tpu.memory_space<vmem>>, vector<1x128xf32>
    %37 = vector.broadcast %36 : vector<1x128xf32> to vector<128x128xf32>
    %38 = arith.addf %35, %37 : vector<128x128xf32>
    %cst_21 = arith.constant 0.000000e+00 : f32
    %39 = vector.broadcast %cst_21 : f32 to vector<128x128xf32>
    %40 = arith.maximumf %38, %39 : vector<128x128xf32>
    %c0_22 = arith.constant 0 : index
    %c256 = arith.constant 256 : index
    %41 = vector.load %arg4[%c0_22, %c256] : memref<128x1280xf32, #tpu.memory_space<vmem>>, vector<128x128xf32>
    %cst_23 = arith.constant dense<0.000000e+00> : vector<128x128xf32>
    %42 = tpu.matmul %40, %41, %cst_23 {dimension_numbers = #tpu.dot_dimension_numbers<[1], [0], [0], [1], [0, 0, 1, 1], [], []>} : vector<128x128xf32>, vector<128x128xf32>, vector<128x128xf32> -> vector<128x128xf32>
    %c1_24 = arith.constant 1 : index
    %c0_25 = arith.constant 0 : index
    %43 = vector.load %arg5[%c1_24, %c0_25] : memref<8x128xf32, #tpu.memory_space<vmem>>, vector<1x128xf32>
    %44 = vector.broadcast %43 : vector<1x128xf32> to vector<128x128xf32>
    %45 = arith.addf %42, %44 : vector<128x128xf32>
    %cst_26 = arith.constant 0.000000e+00 : f32
    %46 = vector.broadcast %cst_26 : f32 to vector<128x128xf32>
    %47 = arith.maximumf %45, %46 : vector<128x128xf32>
    %c0_27 = arith.constant 0 : index
    %c384 = arith.constant 384 : index
    %48 = vector.load %arg4[%c0_27, %c384] : memref<128x1280xf32, #tpu.memory_space<vmem>>, vector<128x128xf32>
    %cst_28 = arith.constant dense<0.000000e+00> : vector<128x128xf32>
    %49 = tpu.matmul %47, %48, %cst_28 {dimension_numbers = #tpu.dot_dimension_numbers<[1], [0], [0], [1], [0, 0, 1, 1], [], []>} : vector<128x128xf32>, vector<128x128xf32>, vector<128x128xf32> -> vector<128x128xf32>
    %c2 = arith.constant 2 : index
    %c0_29 = arith.constant 0 : index
    %50 = vector.load %arg5[%c2, %c0_29] : memref<8x128xf32, #tpu.memory_space<vmem>>, vector<1x128xf32>
    %51 = vector.broadcast %50 : vector<1x128xf32> to vector<128x128xf32>
    %52 = arith.addf %49, %51 : vector<128x128xf32>
    %cst_30 = arith.constant 0.000000e+00 : f32
    %53 = vector.broadcast %cst_30 : f32 to vector<128x128xf32>
    %54 = arith.maximumf %52, %53 : vector<128x128xf32>
    %c0_31 = arith.constant 0 : index
    %c512 = arith.constant 512 : index
    %55 = vector.load %arg4[%c0_31, %c512] : memref<128x1280xf32, #tpu.memory_space<vmem>>, vector<128x256xf32>
    %cst_32 = arith.constant dense<0.000000e+00> : vector<128x256xf32>
    %56 = tpu.matmul %54, %55, %cst_32 {dimension_numbers = #tpu.dot_dimension_numbers<[1], [0], [0], [1], [0, 0, 1, 1], [], []>} : vector<128x128xf32>, vector<128x256xf32>, vector<128x256xf32> -> vector<128x256xf32>
    %57 = vector.extract_strided_slice %56 {offsets = [0, 0], sizes = [128, 128], strides = [1, 1]} : vector<128x256xf32> to vector<128x128xf32>
    %c3 = arith.constant 3 : index
    %c0_33 = arith.constant 0 : index
    %58 = vector.load %arg5[%c3, %c0_33] : memref<8x128xf32, #tpu.memory_space<vmem>>, vector<1x128xf32>
    %59 = vector.broadcast %58 : vector<1x128xf32> to vector<128x128xf32>
    %60 = arith.addf %57, %59 : vector<128x128xf32>
    %61 = vector.extract_strided_slice %56 {offsets = [0, 128], sizes = [128, 128], strides = [1, 1]} : vector<128x256xf32> to vector<128x128xf32>
    %c4 = arith.constant 4 : index
    %c0_34 = arith.constant 0 : index
    %62 = vector.load %arg5[%c4, %c0_34] : memref<8x128xf32, #tpu.memory_space<vmem>>, vector<1x128xf32>
    %63 = vector.broadcast %62 : vector<1x128xf32> to vector<128x128xf32>
    %64 = arith.addf %61, %63 : vector<128x128xf32>
    %c0_35 = arith.constant 0 : index
    %c0_36 = arith.constant 0 : index
    %65 = vector.load %arg2[%c0_35, %c0_36] : memref<128x128xf32, #tpu.memory_space<vmem>>, vector<128x128xf32>
    %cst_37 = arith.constant 5.000000e-01 : f32
    %66 = vector.broadcast %cst_37 : f32 to vector<128x128xf32>
    %67 = arith.mulf %66, %64 : vector<128x128xf32>
    %68 = math.exp %67 : vector<128x128xf32>
    %69 = arith.mulf %65, %68 : vector<128x128xf32>
    %70 = arith.addf %60, %69 : vector<128x128xf32>
    %c0_38 = arith.constant 0 : index
    %c768 = arith.constant 768 : index
    %71 = vector.load %arg4[%c0_38, %c768] : memref<128x1280xf32, #tpu.memory_space<vmem>>, vector<128x128xf32>
    %cst_39 = arith.constant dense<0.000000e+00> : vector<128x128xf32>
    %72 = tpu.matmul %70, %71, %cst_39 {dimension_numbers = #tpu.dot_dimension_numbers<[1], [0], [0], [1], [0, 0, 1, 1], [], []>} : vector<128x128xf32>, vector<128x128xf32>, vector<128x128xf32> -> vector<128x128xf32>
    %c5 = arith.constant 5 : index
    %c0_40 = arith.constant 0 : index
    %73 = vector.load %arg5[%c5, %c0_40] : memref<8x128xf32, #tpu.memory_space<vmem>>, vector<1x128xf32>
    %74 = vector.broadcast %73 : vector<1x128xf32> to vector<128x128xf32>
    %75 = arith.addf %72, %74 : vector<128x128xf32>
    %cst_41 = arith.constant 0.000000e+00 : f32
    %76 = vector.broadcast %cst_41 : f32 to vector<128x128xf32>
    %77 = arith.maximumf %75, %76 : vector<128x128xf32>
    %c0_42 = arith.constant 0 : index
    %c896 = arith.constant 896 : index
    %78 = vector.load %arg4[%c0_42, %c896] : memref<128x1280xf32, #tpu.memory_space<vmem>>, vector<128x128xf32>
    %cst_43 = arith.constant dense<0.000000e+00> : vector<128x128xf32>
    %79 = tpu.matmul %77, %78, %cst_43 {dimension_numbers = #tpu.dot_dimension_numbers<[1], [0], [0], [1], [0, 0, 1, 1], [], []>} : vector<128x128xf32>, vector<128x128xf32>, vector<128x128xf32> -> vector<128x128xf32>
    %c6 = arith.constant 6 : index
    %c0_44 = arith.constant 0 : index
    %80 = vector.load %arg5[%c6, %c0_44] : memref<8x128xf32, #tpu.memory_space<vmem>>, vector<1x128xf32>
    %81 = vector.broadcast %80 : vector<1x128xf32> to vector<128x128xf32>
    %82 = arith.addf %79, %81 : vector<128x128xf32>
    %cst_45 = arith.constant 0.000000e+00 : f32
    %83 = vector.broadcast %cst_45 : f32 to vector<128x128xf32>
    %84 = arith.maximumf %82, %83 : vector<128x128xf32>
    %c0_46 = arith.constant 0 : index
    %c1024 = arith.constant 1024 : index
    %85 = vector.load %arg4[%c0_46, %c1024] : memref<128x1280xf32, #tpu.memory_space<vmem>>, vector<128x128xf32>
    %cst_47 = arith.constant dense<0.000000e+00> : vector<128x128xf32>
    %86 = tpu.matmul %84, %85, %cst_47 {dimension_numbers = #tpu.dot_dimension_numbers<[1], [0], [0], [1], [0, 0, 1, 1], [], []>} : vector<128x128xf32>, vector<128x128xf32>, vector<128x128xf32> -> vector<128x128xf32>
    %c7 = arith.constant 7 : index
    %c0_48 = arith.constant 0 : index
    %87 = vector.load %arg5[%c7, %c0_48] : memref<8x128xf32, #tpu.memory_space<vmem>>, vector<1x128xf32>
    %88 = vector.broadcast %87 : vector<1x128xf32> to vector<128x128xf32>
    %89 = arith.addf %86, %88 : vector<128x128xf32>
    %cst_49 = arith.constant 0.000000e+00 : f32
    %90 = vector.broadcast %cst_49 : f32 to vector<128x128xf32>
    %91 = arith.maximumf %89, %90 : vector<128x128xf32>
    %c0_50 = arith.constant 0 : index
    %c1152 = arith.constant 1152 : index
    %92 = vector.load %arg4[%c0_50, %c1152] : memref<128x1280xf32, #tpu.memory_space<vmem>>, vector<128x128xf32>
    %c2_51 = arith.constant 2 : index
    %c0_52 = arith.constant 0 : index
    %93 = vector.load %arg6[%c2_51, %c0_52] : memref<8x128xf32, #tpu.memory_space<vmem>>, vector<1x128xf32>
    %c3_53 = arith.constant 3 : index
    %c0_54 = arith.constant 0 : index
    %94 = vector.load %arg6[%c3_53, %c0_54] : memref<8x128xf32, #tpu.memory_space<vmem>>, vector<1x128xf32>
    %cst_55 = arith.constant dense<0.000000e+00> : vector<128x128xf32>
    %95 = tpu.matmul %91, %92, %cst_55 {dimension_numbers = #tpu.dot_dimension_numbers<[1], [0], [0], [1], [0, 0, 1, 1], [], []>} : vector<128x128xf32>, vector<128x128xf32>, vector<128x128xf32> -> vector<128x128xf32>
    %cst_56 = arith.constant dense<0.000000e+00> : vector<128x1xf32>
    %96 = tpu.matmul %95, %93, %cst_56 {dimension_numbers = #tpu.dot_dimension_numbers<[1], [1], [0], [0], [0, 0, 1, 0], [], []>} : vector<128x128xf32>, vector<1x128xf32>, vector<128x1xf32> -> vector<128x1xf32>
    %cst_57 = arith.constant dense<0.000000e+00> : vector<1x128xf32>
    %97 = tpu.matmul %94, %95, %cst_57 {dimension_numbers = #tpu.dot_dimension_numbers<[1], [1], [0], [0], [0, 0, 1, 0], [], []>} : vector<1x128xf32>, vector<128x128xf32>, vector<1x128xf32> -> vector<1x128xf32>
    %98 = vector.broadcast %96 : vector<128x1xf32> to vector<128x128xf32>
    %99 = vector.broadcast %97 : vector<1x128xf32> to vector<128x128xf32>
    %100 = arith.addf %98, %99 : vector<128x128xf32>
    %cst_58 = arith.constant 2.000000e-01 : f32
    %101 = vector.broadcast %cst_58 : f32 to vector<128x128xf32>
    %102 = arith.mulf %101, %100 : vector<128x128xf32>
    %103 = arith.maximumf %100, %102 : vector<128x128xf32>
    %104 = arith.addf %103, %0 : vector<128x128xf32>
    %cst_59 = arith.constant dense<0xFF800000> : vector<128xf32>
    %105 = vector.multi_reduction <maximumf>, %104, %cst_59 [1] : vector<128x128xf32> to vector<128xf32>
    %106 = vector.shape_cast %105 : vector<128xf32> to vector<128x1xf32>
    %107 = vector.broadcast %106 : vector<128x1xf32> to vector<128x128xf32>
    %108 = arith.subf %104, %107 : vector<128x128xf32>
    %109 = math.exp %108 : vector<128x128xf32>
    %cst_60 = arith.constant dense<0.000000e+00> : vector<128xf32>
    %110 = vector.multi_reduction <add>, %109, %cst_60 [1] : vector<128x128xf32> to vector<128xf32>
    %111 = vector.shape_cast %110 : vector<128xf32> to vector<128x1xf32>
    %112 = tpu.reciprocal %111 {approx = true} : vector<128x1xf32> -> vector<128x1xf32>
    %113 = vector.broadcast %112 : vector<128x1xf32> to vector<128x128xf32>
    %114 = arith.mulf %109, %113 : vector<128x128xf32>
    %cst_61 = arith.constant dense<0.000000e+00> : vector<128x128xf32>
    %115 = tpu.matmul %114, %95, %cst_61 {dimension_numbers = #tpu.dot_dimension_numbers<[1], [0], [0], [1], [0, 0, 1, 1], [], []>} : vector<128x128xf32>, vector<128x128xf32>, vector<128x128xf32> -> vector<128x128xf32>
    %cst_62 = arith.constant 0.000000e+00 : f32
    %116 = vector.broadcast %cst_62 : f32 to vector<128x128xf32>
    %117 = arith.cmpf ogt, %115, %116 : vector<128x128xf32>
    %cst_63 = arith.constant 0.000000e+00 : f32
    %118 = vector.broadcast %cst_63 : f32 to vector<128x128xf32>
    %119 = arith.minimumf %115, %118 : vector<128x128xf32>
    %120 = math.exp %119 : vector<128x128xf32>
    %cst_64 = arith.constant 1.000000e+00 : f32
    %121 = vector.broadcast %cst_64 : f32 to vector<128x128xf32>
    %122 = arith.subf %120, %121 : vector<128x128xf32>
    %123 = arith.select %117, %115, %122 : vector<128x128xi1>, vector<128x128xf32>
    %c0_65 = arith.constant 0 : index
    %c0_66 = arith.constant 0 : index
    %124 = vector.load %arg7[%c0_65, %c0_66] : memref<128x128xf32, #tpu.memory_space<vmem>>, vector<128x128xf32>
    tpu.vector_store %arg7[%c0_65, %c0_66], %123 {strides = array<i32>} : memref<128x128xf32, #tpu.memory_space<vmem>>, vector<128x128xf32>,
    %c0_67 = arith.constant 0 : index
    %c0_68 = arith.constant 0 : index
    %125 = vector.load %arg8[%c0_67, %c0_68] : memref<128x128xf32, #tpu.memory_space<vmem>>, vector<128x128xf32>
    tpu.vector_store %arg8[%c0_67, %c0_68], %60 {strides = array<i32>} : memref<128x128xf32, #tpu.memory_space<vmem>>, vector<128x128xf32>,
    %c0_69 = arith.constant 0 : index
    %c0_70 = arith.constant 0 : index
    %126 = vector.load %arg9[%c0_69, %c0_70] : memref<128x128xf32, #tpu.memory_space<vmem>>, vector<128x128xf32>
    tpu.vector_store %arg9[%c0_69, %c0_70], %64 {strides = array<i32>} : memref<128x128xf32, #tpu.memory_space<vmem>>, vector<128x128xf32>,
    return
  }
  func.func @transform_0(%arg0: i32) -> (i32, i32) {
    %c0_i32 = arith.constant 0 : i32
    %c0_i32_0 = arith.constant 0 : i32
    return %arg0, %c0_i32 : i32, i32
  }
  func.func @transform_1(%arg0: i32) -> (i32, i32) {
    %c0_i32 = arith.constant 0 : i32
    %c0_i32_0 = arith.constant 0 : i32
    return %arg0, %c0_i32 : i32, i32
  }
  func.func @transform_2(%arg0: i32) -> (i32, i32) {
    %c0_i32 = arith.constant 0 : i32
    %c0_i32_0 = arith.constant 0 : i32
    %c0_i32_1 = arith.constant 0 : i32
    return %c0_i32, %c0_i32_0 : i32, i32
  }
  func.func @transform_3(%arg0: i32) -> (i32, i32) {
    %c0_i32 = arith.constant 0 : i32
    %c0_i32_0 = arith.constant 0 : i32
    %c0_i32_1 = arith.constant 0 : i32
    return %c0_i32, %c0_i32_0 : i32, i32
  }
  func.func @transform_4(%arg0: i32) -> (i32, i32) {
    %c0_i32 = arith.constant 0 : i32
    %c0_i32_0 = arith.constant 0 : i32
    %c0_i32_1 = arith.constant 0 : i32
    return %c0_i32, %c0_i32_0 : i32, i32
  }
  func.func @transform_5(%arg0: i32) -> (i32, i32) {
    %c0_i32 = arith.constant 0 : i32
    %c0_i32_0 = arith.constant 0 : i32
    %c0_i32_1 = arith.constant 0 : i32
    return %c0_i32, %c0_i32_0 : i32, i32
  }
  func.func @transform_6(%arg0: i32) -> (i32, i32) {
    %c0_i32 = arith.constant 0 : i32
    %c0_i32_0 = arith.constant 0 : i32
    return %arg0, %c0_i32 : i32, i32
  }
  func.func @transform_7(%arg0: i32) -> (i32, i32) {
    %c0_i32 = arith.constant 0 : i32
    %c0_i32_0 = arith.constant 0 : i32
    return %arg0, %c0_i32 : i32, i32
  }
  func.func @transform_8(%arg0: i32) -> (i32, i32) {
    %c0_i32 = arith.constant 0 : i32
    %c0_i32_0 = arith.constant 0 : i32
    return %arg0, %c0_i32 : i32, i32
  }
}

</mosaic_0001>

<bundles_post_ra>
// kernel: gatvae_forward.1
= control target key start
LH: loop header
LB: loop body
LE: loop exit
PB: predicated region body
PF: predicated region fallthrough
CT: control target
= control target key end

     0   :  { %s5223_s27 = smov 0   ;;  %s6516_s0 = inlined_call_operand.vmem [shape: f32[512,128], index: 0, kind: input, shape index: {}]   ;;  %s6517_s1 = inlined_call_operand.vmem [shape: f32[512,128], index: 1, kind: input, shape index: {}]   ;;  %s6518_s2 = inlined_call_operand.vmem [shape: f32[128,128], index: 2, kind: input, shape index: {}]   ;;  %s6519_s3 = inlined_call_operand.vmem [shape: f32[128,1280], index: 3, kind: input, shape index: {}]   ;;  %s6520_s4 = inlined_call_operand.vmem [shape: f32[8,128], index: 4, kind: input, shape index: {}]   ;;  %s6521_s5 = inlined_call_operand.vmem [shape: f32[8,128], index: 5, kind: input, shape index: {}]   ;;  %s6522_s6 = inlined_call_operand.vmem [shape: f32[512,128], index: 6, kind: output, shape index: {0}]   ;;  %s6523_s7 = inlined_call_operand.vmem [shape: f32[512,128], index: 7, kind: output, shape index: {1}]   ;;  %s6524_s8 = inlined_call_operand.vmem [shape: f32[512,128], index: 8, kind: output, shape index: {2}]  }
   0x1 LB: > { %s3473_s28 = sadd.s32 4294967295, %s5173_s27   ;;  %p3477_p0 = scmp.ge.s32.totalorder %s5173_s27, 1  ;;  %s5173_s27 = sphi %s5223_s27, %s19_s27  }
   0x2   : > { %p279_p1 = scmp.lt.s32.totalorder %s5173_s27, 5 }
   0x4   : > { %p280_p2 = pnand %p3477_p0, %p279_p1 }
   0x5   : > { %v390_v0 = vld [vmem:[%s6519_s3] sm:$0xff] (!%p280_p2)  ;;  %v391_v1 = vld [vmem:[%s6519_s3 + $0x50] sm:$0xff] (!%p280_p2)  ;;  %s3478_s13 = sshll.u32 (!%p280_p2), %s3473_s28, 4  ;;  %v5175_v40 = vmov (!%p280_p2), 0.0|0.0   ;;  %vm5176_vm0 = vmmov (!%p280_p2), 0   ;;  %v5177_v41 = vmov (!%p280_p2), 0.0  }
   0x6   : > { %283 = sbr.rel (%p280_p2) target bundleno = 3705 (0xe79), region = 44  ;;  %v392_v2 = vld [vmem:[%s6519_s3 + $0xa0] sm:$0xff] (!%p280_p2)  ;;  %v4516_v3 = vpack.c.bf16 (!%p280_p2), %v391_v1, %v390_v0  ;;  %v393_v4 = vld [vmem:[%s6519_s3 + $0xf0] sm:$0xff] (!%p280_p2)  ;;  %p329_p3 = scmp.lt.s32.totalorder (!%p280_p2), %s3478_s13, 63  ;;  %4548 = vmatprep.subr.bf16.mxu1 (!%p280_p2), %v5175_v40  ;;  %3974 = vmatprep.mubr.msk.f32.mxu1 (!%p280_p2), %vm5176_vm0, %v5177_v41 }
   0x7   : > { %v4520_v5 = vpack.c.bf16 (!%p280_p2), %v393_v4, %v392_v2  ;;  %v394_v6 = vld [vmem:[%s6519_s3 + $0x140] sm:$0xff] (!%p280_p2)  ;;  %v395_v7 = vld [vmem:[%s6519_s3 + $0x190] sm:$0xff] (!%p280_p2) }
   0x8   : > { %4517 = vmatprep.subr.bf16.mxu0 (!%p280_p2), %v4516_v3  ;;  %v4524_v8 = vpack.c.bf16 (!%p280_p2), %v395_v7, %v394_v6  ;;  %v396_v9 = vld [vmem:[%s6519_s3 + $0x1e0] sm:$0xff] (!%p280_p2)  ;;  %v397_v10 = vld [vmem:[%s6519_s3 + $0x230] sm:$0xff] (!%p280_p2) }
   0x9   : > { %4519 = vmatpush3.bf16.msra.mxu0 (!%p280_p2), %v4516_v3  ;;  %v4528_v12 = vpack.c.bf16 (!%p280_p2), %v397_v10, %v396_v9  ;;  %v398_v13 = vld [vmem:[%s6519_s3 + $0x280] sm:$0xff] (!%p280_p2)  ;;  %v399_v14 = vld [vmem:[%s6519_s3 + $0x2d0] sm:$0xff] (!%p280_p2) }
   0xa   : > { %4521 = vmatprep.subr.bf16.mxu0 (!%p280_p2), %v4520_v5  ;;  %v4532_v15 = vpack.c.bf16 (!%p280_p2), %v399_v14, %v398_v13  ;;  %v400_v16 = vld [vmem:[%s6519_s3 + $0x320] sm:$0xff] (!%p280_p2)  ;;  %v401_v17 = vld [vmem:[%s6519_s3 + $0x370] sm:$0xff] (!%p280_p2) }
   0xb   : > { %v4536_v18 = vpack.c.bf16 (!%p280_p2), %v401_v17, %v400_v16  ;;  %v402_v19 = vld [vmem:[%s6519_s3 + $0x3c0] sm:$0xff] (!%p280_p2)  ;;  %v403_v20 = vld [vmem:[%s6519_s3 + $0x410] sm:$0xff] (!%p280_p2) }
   0xc   : > { %v4540_v21 = vpack.c.bf16 (!%p280_p2), %v403_v20, %v402_v19  ;;  %v404_v22 = vld [vmem:[%s6519_s3 + $0x460] sm:$0xff] (!%p280_p2)  ;;  %v405_v23 = vld [vmem:[%s6519_s3 + $0x4b0] sm:$0xff] (!%p280_p2)  ;;  %v675_v20 = vlaneseq (!%p280_p2) }
   0xd   : > { %s6526_s13 = smov (!%p329_p3, %s3478_s13), 63  ;;  %4523 = vmatpush3.bf16.msra.mxu0 %v4520_v5  ;;  %v4544_v24 = vpack.c.bf16 %v405_v23, %v404_v22  ;;  %v5309_v42 = vld [vmem:[%s6521_s5] ss:$0 sm:$0xff]  ;;  %v407_v19 = vld [vmem:[%s6521_s5 + $0x1] sm:$0x1] }
   0xe   : > { %s5249_s20 = sshll.u32 %s6526_s13, 3  ;;  %4525 = vmatprep.subr.bf16.mxu0 %v4524_v8  ;;  %v5337_v23 = vshrl.u32 %v675_v20, 7 }
   0xf   : > { %s5261_s28 = scalar_lea.vmem %s6516_s0, %s5249_s20  ;;  %s5935_s29 = scalar_lea.vmem %s6523_s7, %s5249_s20 }
  0x10   : > { %v374_v11 = vld [vmem:[%s5261_s28] sm:$0xff]  ;;  %v375_v25 = vld [vmem:[%s5261_s28 + $0x8] sm:$0xff]  ;;  %v376_v26 = vld [vmem:[%s5261_s28 + $0x10] sm:$0xff]  ;;  %s5942_s10 = scalar_lea.vmem %s6524_s8, %s5249_s20  ;;  %s5965_s13 = scalar_lea.vmem %s6517_s1, %s5249_s20 }
  0x11   : > { %3918 = vmatprep.mubr.f32.mxu0 %v374_v11  ;;  %4527 = vmatpush3.bf16.msra.mxu0 %v4524_v8  ;;  %v377_v27 = vld [vmem:[%s5261_s28 + $0x18] sm:$0xff]  ;;  %v378_v28 = vld [vmem:[%s5261_s28 + $0x20] sm:$0xff]  ;;  %v379_v29 = vld [vmem:[%s5261_s28 + $0x28] sm:$0xff]  ;;  %s6467_s12 = scalar_lea.vmem %s6522_s6, %s5249_s20 }
  0x12   : > { %4529 = vmatprep.subr.bf16.mxu0 %v4528_v12  ;;  %v380_v30 = vld [vmem:[%s5261_s28 + $0x30] sm:$0xff]  ;;  %v381_v31 = vld [vmem:[%s5261_s28 + $0x38] sm:$0xff]  ;;  %v382_v32 = vld [vmem:[%s5261_s28 + $0x40] sm:$0xff] }
  0x13   : > { %v383_v33 = vld [vmem:[%s5261_s28 + $0x48] sm:$0xff]  ;;  %v384_v34 = vld [vmem:[%s5261_s28 + $0x50] sm:$0xff]  ;;  %v385_v35 = vld [vmem:[%s5261_s28 + $0x58] sm:$0xff] }
  0x14   : > { %v386_v36 = vld [vmem:[%s5261_s28 + $0x60] sm:$0xff]  ;;  %v387_v37 = vld [vmem:[%s5261_s28 + $0x68] sm:$0xff]  ;;  %v388_v38 = vld [vmem:[%s5261_s28 + $0x70] sm:$0xff] }
  0x15   : > { %4531 = vmatpush3.bf16.msra.mxu0 %v4528_v12  ;;  %v389_v39 = vld [vmem:[%s5261_s28 + $0x78] sm:$0xff] }
  0x16   : > { %4533 = vmatprep.subr.bf16.mxu0 %v4532_v15 }
  0x19   : > { %4535 = vmatpush3.bf16.msra.mxu0 %v4532_v15 }
  0x1a   : > { %4537 = vmatprep.subr.bf16.mxu0 %v4536_v18 }
  0x1d   : > { %4539 = vmatpush3.bf16.msra.mxu0 %v4536_v18 }
  0x1e   : > { %4541 = vmatprep.subr.bf16.mxu0 %v4540_v21 }
  0x21   : > { %4543 = vmatpush3.bf16.msra.mxu0 %v4540_v21 }
  0x22   : > { %4545 = vmatprep.subr.bf16.mxu0 %v4544_v24 }
  0x25   : > { %4547 = vmatpush3.bf16.msra.mxu0 %v4544_v24  ;;  %v677_v24 = vsub.s32 0, %v5337_v23 }
  0x28   : > { %3919 = vmatmul.mubr.f32.vlgmr.msra.gmra.mrb[0].mxu0 %v375_v25 }
  0x29   : > { %3921 = vmatprep.mubr.f32.mxu0 %v376_v26 }
  0x2c   : > { %3922 = vmatmul.mubr.f32.gmra.mrb[2].mxu0 %v377_v27 }
  0x2d   : > { %3924 = vmatprep.mubr.f32.mxu0 %v378_v28 }
  0x30   : > { %3925 = vmatmul.mubr.f32.gmra.mrb[4].mxu0 %v379_v29 }
  0x31   : > { %3927 = vmatprep.mubr.f32.mxu0 %v380_v30 }
  0x34   : > { %3928 = vmatmul.mubr.f32.gmra.mrb[6].mxu0 %v381_v31 }
  0x35   : > { %3930 = vmatprep.mubr.f32.mxu0 %v382_v32 }
  0x38   : > { %3931 = vmatmul.mubr.f32.gmra.mrb[8].mxu0 %v383_v33 }
  0x39   : > { %3933 = vmatprep.mubr.f32.mxu0 %v384_v34 }
  0x3c   : > { %3934 = vmatmul.mubr.f32.gmra.mrb[10].mxu0 %v385_v35 }
  0x3d   : > { %3936 = vmatprep.mubr.f32.mxu0 %v386_v36 }
  0x40   : > { %3937 = vmatmul.mubr.f32.gmra.mrb[12].mxu0 %v387_v37 }
  0x41   : > { %3939 = vmatprep.mubr.f32.mxu0 %v388_v38 }
  0x44   : > { %3940 = vmatmul.mubr.f32.gmra.mrb[14].mxu0 %v389_v39 }
  0xfb   : > { %v3920_v43 = vpop.f32.mrb[0].mxu0 }
  0xfc   : > { %v474_v44 = vpop.f32.mrb[1].mxu0  ;;  %v558_v51 = vmul.f32 %v3920_v43, %v5309_v42 }
  0xfd   : > { %v4549_v45 = vpack.c.bf16 %v3920_v43, %v474_v44  ;;  %v557_v46 = vmul.f32 %v5309_v42, %v474_v44  ;;  %v359_v43 = vld [vmem:[%s6518_s2 + $0x8] sm:$0xff]  ;;  %v358_v44 = vld [vmem:[%s6518_s2] sm:$0xff] }
  0xff   : > { %4550 = vmatpush3.bf16.xpose.msra.mxu1 %v4549_v45  ;;  %4573 = vmatprep.subr.bf16.mxu0 %v4549_v45  ;;  %v3923_v47 = vpop.f32.mrb[2].mxu0 }
 0x100   : > { %573 = vadd.xlane.f32.xlu0 %v557_v46  ;;  %v484_v48 = vpop.f32.mrb[3].mxu0  ;;  %4575 = vmatpush3.bf16.msra.mxu0 %v4549_v45  ;;  %v560_v52 = vmul.f32 %v3923_v47, %v5309_v42 }
 0x101   : > { %v4552_v49 = vpack.c.bf16 %v3923_v47, %v484_v48  ;;  %v559_v50 = vmul.f32 %v5309_v42, %v484_v48  ;;  %4551 = vmatprep.subr.bf16.mxu1 %v5175_v40 }
 0x103   : > { %577 = vadd.xlane.f32.xlu1 %v559_v50  ;;  %4577 = vmatprep.subr.bf16.mxu0 %v4552_v49  ;;  %v3926_v53 = vpop.f32.mrb[4].mxu0 }
 0x104   : > { %575 = vadd.xlane.f32.xlu0 %v558_v51  ;;  %4579 = vmatpush3.bf16.msra.mxu0 %v4552_v49  ;;  %v494_v54 = vpop.f32.mrb[5].mxu0  ;;  %v562_v57 = vmul.f32 %v3926_v53, %v5309_v42 }
 0x105   : > { %v4555_v55 = vpack.c.bf16 %v3926_v53, %v494_v54  ;;  %v561_v56 = vmul.f32 %v5309_v42, %v494_v54 }
 0x107   : > { %4553 = vmatpush3.bf16.xpose.msra.mxu1 %v4552_v49  ;;  %579 = vadd.xlane.f32.xlu1 %v560_v52  ;;  %v3929_v58 = vpop.f32.mrb[6].mxu0 }
 0x108   : > { %4581 = vmatprep.subr.bf16.mxu0 %v4555_v55  ;;  %4554 = vmatprep.subr.bf16.mxu1 %v5175_v40  ;;  %v504_v59 = vpop.f32.mrb[7].mxu0  ;;  %v564_v62 = vmul.f32 %v3929_v58, %v5309_v42 }
 0x109   : > { %4583 = vmatpush3.bf16.msra.mxu0 %v4555_v55  ;;  %581 = vadd.xlane.f32.xlu0 %v561_v56  ;;  %v4558_v60 = vpack.c.bf16 %v3929_v58, %v504_v59  ;;  %v563_v61 = vmul.f32 %v5309_v42, %v504_v59  ;;  %v361_v58 = vld [vmem:[%s6518_s2 + $0x18] sm:$0xff]  ;;  %v360_v59 = vld [vmem:[%s6518_s2 + $0x10] sm:$0xff] }
 0x10b   : > { %583 = vadd.xlane.f32.xlu1 %v562_v57  ;;  %4585 = vmatprep.subr.bf16.mxu0 %v4558_v60  ;;  %v3932_v63 = vpop.f32.mrb[8].mxu0 }
 0x10c   : > { %v514_v0 = vpop.f32.mrb[9].mxu0  ;;  %v566_v3 = vmul.f32 %v3932_v63, %v5309_v42 }
 0x10d   : > { %4587 = vmatpush3.bf16.msra.mxu0 %v4558_v60  ;;  %585 = vadd.xlane.f32.xlu0 %v563_v61  ;;  %v4561_v1 = vpack.c.bf16 %v3932_v63, %v514_v0  ;;  %v565_v2 = vmul.f32 %v5309_v42, %v514_v0 }
 0x10f   : > { %4556 = vmatpush3.bf16.xpose.msra.mxu1 %v4555_v55  ;;  %587 = vadd.xlane.f32.xlu1 %v564_v62  ;;  %v3935_v4 = vpop.f32.mrb[10].mxu0 }
 0x110   : > { %4557 = vmatprep.subr.bf16.mxu1 %v5175_v40  ;;  %4589 = vmatprep.subr.bf16.mxu0 %v4561_v1  ;;  %v524_v5 = vpop.f32.mrb[11].mxu0  ;;  %v568_v8 = vmul.f32 %v3935_v4, %v5309_v42 }
 0x111   : > { %4591 = vmatpush3.bf16.msra.mxu0 %v4561_v1  ;;  %589 = vadd.xlane.f32.xlu0 %v565_v2  ;;  %v4564_v6 = vpack.c.bf16 %v3935_v4, %v524_v5  ;;  %v567_v7 = vmul.f32 %v5309_v42, %v524_v5  ;;  %v363_v4 = vld [vmem:[%s6518_s2 + $0x28] sm:$0xff]  ;;  %v362_v5 = vld [vmem:[%s6518_s2 + $0x20] sm:$0xff] }
 0x113   : > { %591 = vadd.xlane.f32.xlu1 %v566_v3  ;;  %4593 = vmatprep.subr.bf16.mxu0 %v4564_v6  ;;  %v3938_v9 = vpop.f32.mrb[12].mxu0 }
 0x114   : > { %v534_v10 = vpop.f32.mrb[13].mxu0  ;;  %v570_v13 = vmul.f32 %v3938_v9, %v5309_v42 }
 0x115   : > { %4595 = vmatpush3.bf16.msra.mxu0 %v4564_v6  ;;  %593 = vadd.xlane.f32.xlu0 %v567_v7  ;;  %v4567_v11 = vpack.c.bf16 %v3938_v9, %v534_v10  ;;  %v569_v12 = vmul.f32 %v5309_v42, %v534_v10 }
 0x117   : > { %4559 = vmatpush3.bf16.xpose.msra.mxu1 %v4558_v60  ;;  %595 = vadd.xlane.f32.xlu1 %v568_v8  ;;  %v3941_v14 = vpop.f32.mrb[14].mxu0 }
 0x118   : > { %4560 = vmatprep.subr.bf16.mxu1 %v5175_v40  ;;  %4597 = vmatprep.subr.bf16.mxu0 %v4567_v11  ;;  %v544_v15 = vpop.f32.mrb[15].mxu0  ;;  %v572_v18 = vmul.f32 %v3941_v14, %v5309_v42 }
 0x119   : > { %4599 = vmatpush3.bf16.msra.mxu0 %v4567_v11  ;;  %597 = vadd.xlane.f32.xlu0 %v569_v12  ;;  %v4570_v16 = vpack.c.bf16 %v3941_v14, %v544_v15  ;;  %v571_v17 = vmul.f32 %v5309_v42, %v544_v15  ;;  %v365_v14 = vld [vmem:[%s6518_s2 + $0x38] sm:$0xff]  ;;  %v364_v15 = vld [vmem:[%s6518_s2 + $0x30] sm:$0xff] }
 0x11b   : > { %599 = vadd.xlane.f32.xlu1 %v570_v13  ;;  %4601 = vmatprep.subr.bf16.mxu0 %v4570_v16 }
 0x11d   : > { %4603 = vmatpush3.bf16.msra.mxu0 %v4570_v16  ;;  %601 = vadd.xlane.f32.xlu0 %v571_v17 }
 0x11f   : > { %4562 = vmatpush3.bf16.xpose.msra.mxu1 %v4561_v1  ;;  %603 = vadd.xlane.f32.xlu1 %v572_v18 }
 0x120   : > { %4563 = vmatprep.subr.bf16.mxu1 %v5175_v40 }
 0x127   : > { %4565 = vmatpush3.bf16.xpose.msra.mxu1 %v4564_v6 }
 0x128   : > { %4566 = vmatprep.subr.bf16.mxu1 %v5175_v40 }
 0x12f   : > { %4568 = vmatpush3.bf16.xpose.msra.mxu1 %v4567_v11 }
 0x130   : > { %4569 = vmatprep.subr.bf16.mxu1 %v5175_v40 }
 0x137   : > { %4571 = vmatpush3.bf16.xpose.msra.mxu1 %v4570_v16 }
 0x13e   : > { %3975 = vmatmul.mubr.f32.vlgmr.msra.gmra.mrb[0].mxu1 %v407_v19 }
 0x18d   : > { %v574_v21 = vpop.xlane.xlu0 %573 }
 0x190   : > { %v578_v22 = vpop.xlane.xlu1 %577 }
 0x191   : > { %v576_v25 = vpop.xlane.xlu0 %575 }
 0x194   : > { %v580_v26 = vpop.xlane.xlu1 %579 }
 0x196   : > { %v582_v31 = vpop.xlane.xlu0 %581 }
 0x198   : > { %v584_v30 = vpop.xlane.xlu1 %583 }
 0x19a   : > { %v586_v47 = vpop.xlane.xlu0 %585 }
 0x19c   : > { %v588_v46 = vpop.xlane.xlu1 %587 }
 0x19e   : > { %v590_v61 = vpop.xlane.xlu0 %589 }
 0x1a0   : > { %v592_v60 = vpop.xlane.xlu1 %591 }
 0x1a2   : > { %v594_v9 = vpop.xlane.xlu0 %593 }
 0x1a4   : > { %v596_v8 = vpop.xlane.xlu1 %595 }
 0x1a8   : > { %v600_v20 = vpop.xlane.xlu1 %599 }
 0x211   : > { %v671_v27 = vpop.f32.mrb[0].mxu1 }
 0x212   : > { %v5342_v28 = vrot.slane %v671_v27, %v677_v24  ;;  %v3976_v29 = vpop.f32.mrb[1].mxu1 }
 0x214   : > { %v680_v32 = vadd.f32 %v5342_v28, %v576_v25  ;;  %v679_v33 = vadd.f32 %v5342_v28, %v574_v21  ;;  %v682_v34 = vadd.f32 %v5342_v28, %v580_v26  ;;  %v681_v35 = vadd.f32 %v5342_v28, %v578_v22  ;;  %v598_v21 = vpop.xlane.xlu0 %597 }
 0x215   : > { %v684_v36 = vadd.f32 %v5342_v28, %v584_v30  ;;  %v683_v37 = vadd.f32 %v5342_v28, %v582_v31  ;;  %v686_v52 = vadd.f32 %v5342_v28, %v588_v46  ;;  %v685_v53 = vadd.f32 %v5342_v28, %v586_v47  ;;  %v369_v47 = vld [vmem:[%s6518_s2 + $0x58] sm:$0xff] }
 0x216   : > { %v696_v38 = vmul.f32 0.2, %v680_v32  ;;  %v695_v39 = vmul.f32 0.2, %v679_v33  ;;  %v698_v42 = vmul.f32 0.2, %v682_v34  ;;  %v688_v6 = vadd.f32 %v5342_v28, %v592_v60 }
 0x217   : > { %v697_v45 = vmul.f32 0.2, %v681_v35  ;;  %v700_v50 = vmul.f32 0.2, %v684_v36  ;;  %v699_v51 = vmul.f32 0.2, %v683_v37  ;;  %v687_v7 = vadd.f32 %v5342_v28, %v590_v61 }
 0x218   : > { %v712_v48 = vmax.f32 %v680_v32, %v696_v38  ;;  %v711_v49 = vmax.f32 %v679_v33, %v695_v39  ;;  %v714_v56 = vmax.f32 %v682_v34, %v698_v42  ;;  %v702_v0 = vmul.f32 0.2, %v686_v52  ;;  %v367_v33 = vld [vmem:[%s6518_s2 + $0x48] sm:$0xff]  ;;  %v366_v34 = vld [vmem:[%s6518_s2 + $0x40] sm:$0xff] }
 0x219   : > { %v713_v57 = vmax.f32 %v681_v35, %v697_v45  ;;  %v716_v62 = vmax.f32 %v684_v36, %v700_v50  ;;  %v715_v63 = vmax.f32 %v683_v37, %v699_v51  ;;  %v701_v1 = vmul.f32 0.2, %v685_v53  ;;  %v604_v35 = vpop.xlane.xlu1 %603  ;;  %v602_v36 = vpop.xlane.xlu0 %601 }
 0x21a   : > { %v5358_v54 = vadd.f32 %v712_v48, %v359_v43  ;;  %v5360_v55 = vadd.f32 %v711_v49, %v358_v44  ;;  %v5370_v2 = vadd.f32 %v714_v56, %v361_v58  ;;  %v718_v12 = vmax.f32 %v686_v52, %v702_v0  ;;  %v368_v48 = vld [vmem:[%s6518_s2 + $0x50] sm:$0xff]  ;;  %v371_v56 = vld [vmem:[%s6518_s2 + $0x68] sm:$0xff] }
 0x21b   : > { %v5372_v3 = vadd.f32 %v713_v57, %v360_v59  ;;  %v5384_v10 = vadd.f32 %v716_v62, %v363_v4  ;;  %v5386_v11 = vadd.f32 %v715_v63, %v362_v5  ;;  %v717_v13 = vmax.f32 %v685_v53, %v701_v1  ;;  %v370_v57 = vld [vmem:[%s6518_s2 + $0x60] sm:$0xff]  ;;  %v373_v62 = vld [vmem:[%s6518_s2 + $0x78] sm:$0xff]  ;;  %v372_v63 = vld [vmem:[%s6518_s2 + $0x70] sm:$0xff] }
 0x21c   : > { %745 = vmax.xlane.f32.xlu1 %v5358_v54  ;;  %743 = vmax.xlane.f32.xlu0 %v5360_v55  ;;  %v704_v16 = vmul.f32 0.2, %v688_v6  ;;  %v703_v17 = vmul.f32 0.2, %v687_v7  ;;  %v690_v18 = vadd.f32 %v5342_v28, %v596_v8  ;;  %v689_v19 = vadd.f32 %v5342_v28, %v594_v9 }
 0x21d   : > { %v5398_v22 = vadd.f32 %v718_v12, %v365_v14  ;;  %v5400_v25 = vadd.f32 %v717_v13, %v364_v15  ;;  %v692_v26 = vadd.f32 %v5342_v28, %v600_v20  ;;  %v691_v27 = vadd.f32 %v5342_v28, %v598_v21 }
 0x21e   : > { %v720_v29 = vmax.f32 %v688_v6, %v704_v16  ;;  %v719_v30 = vmax.f32 %v687_v7, %v703_v17  ;;  %v706_v31 = vmul.f32 0.2, %v690_v18  ;;  %v705_v32 = vmul.f32 0.2, %v689_v19 }
 0x21f   : > { %v708_v37 = vmul.f32 0.2, %v692_v26  ;;  %v707_v38 = vmul.f32 0.2, %v691_v27  ;;  %v694_v39 = vadd.f32 %v5342_v28, %v604_v35  ;;  %v693_v42 = vadd.f32 %v5342_v28, %v602_v36 }
 0x220   : > { %749 = vmax.xlane.f32.xlu1 %v5370_v2  ;;  %747 = vmax.xlane.f32.xlu0 %v5372_v3  ;;  %v5414_v43 = vadd.f32 %v720_v29, %v367_v33  ;;  %v5416_v44 = vadd.f32 %v719_v30, %v366_v34  ;;  %v722_v45 = vmax.f32 %v690_v18, %v706_v31 }
 0x221   : > { %v721_v46 = vmax.f32 %v689_v19, %v705_v32  ;;  %v724_v49 = vmax.f32 %v692_v26, %v708_v37  ;;  %v710_v28 = vmul.f32 0.2, %v694_v39  ;;  %v723_v52 = vmax.f32 %v691_v27, %v707_v38 }
 0x222   : > { %v5426_v50 = vadd.f32 %v722_v45, %v369_v47  ;;  %v709_v53 = vmul.f32 0.2, %v693_v42 }
 0x223   : > { %v5428_v51 = vadd.f32 %v721_v46, %v368_v48  ;;  %v5438_v58 = vadd.f32 %v724_v49, %v371_v56  ;;  %v5440_v59 = vadd.f32 %v723_v52, %v370_v57  ;;  %v726_v60 = vmax.f32 %v694_v39, %v710_v28 }
 0x224   : > { %753 = vmax.xlane.f32.xlu1 %v5384_v10  ;;  %751 = vmax.xlane.f32.xlu0 %v5386_v11  ;;  %v725_v61 = vmax.f32 %v693_v42, %v709_v53 }
 0x225   : > { %v5450_v0 = vadd.f32 %v726_v60, %v373_v62 }
 0x226   : > { %v5452_v1 = vadd.f32 %v725_v61, %v372_v63 }
 0x228   : > { %757 = vmax.xlane.f32.xlu1 %v5398_v22  ;;  %755 = vmax.xlane.f32.xlu0 %v5400_v25 }
 0x22c   : > { %761 = vmax.xlane.f32.xlu1 %v5414_v43  ;;  %759 = vmax.xlane.f32.xlu0 %v5416_v44 }
 0x230   : > { %765 = vmax.xlane.f32.xlu1 %v5426_v50  ;;  %763 = vmax.xlane.f32.xlu0 %v5428_v51 }
 0x234   : > { %769 = vmax.xlane.f32.xlu1 %v5438_v58  ;;  %767 = vmax.xlane.f32.xlu0 %v5440_v59 }
 0x238   : > { %773 = vmax.xlane.f32.xlu1 %v5450_v0  ;;  %771 = vmax.xlane.f32.xlu0 %v5452_v1 }
 0x2a9   : > { %v746_v4 = vpop.xlane.xlu1 %745  ;;  %v744_v5 = vpop.xlane.xlu0 %743 }
 0x2aa   : > { %v776_v6 = vsub.f32 %v5358_v54, %v746_v4  ;;  %v775_v7 = vsub.f32 %v5360_v55, %v744_v5 }
 0x2ac   : > { %v793_v8 = vmul.f32 1.442695, %v776_v6  ;;  %v791_v9 = vmul.f32 1.442695, %v775_v7 }
 0x2ad   : > { %v750_v12 = vpop.xlane.xlu1 %749  ;;  %v748_v13 = vpop.xlane.xlu0 %747 }
 0x2ae   : > { %4927 = vpow2.f32 %v793_v8  ;;  %v778_v14 = vsub.f32 %v5370_v2, %v750_v12  ;;  %v777_v15 = vsub.f32 %v5372_v3, %v748_v13  ;;  %v1128_v8 = vld [vmem:[%s6519_s3 + $0x8] sm:$0xff] }
 0x2af   : > { %4929 = vpow2.f32 %v791_v9  ;;  %v1129_v9 = vld [vmem:[%s6519_s3 + $0x58] sm:$0xff] }
 0x2b0   : > { %v797_v16 = vmul.f32 1.442695, %v778_v14  ;;  %v795_v17 = vmul.f32 1.442695, %v777_v15  ;;  %v4604_v12 = vpack.c.bf16 %v1129_v9, %v1128_v8 }
 0x2b1   : > { %v754_v18 = vpop.xlane.xlu1 %753  ;;  %v752_v19 = vpop.xlane.xlu0 %751 }
 0x2b2   : > { %4931 = vpow2.f32 %v797_v16  ;;  %v780_v20 = vsub.f32 %v5384_v10, %v754_v18  ;;  %v779_v54 = vsub.f32 %v5386_v11, %v752_v19  ;;  %4605 = vmatprep.subr.bf16.mxu0 %v4604_v12 }
 0x2b3   : > { %4933 = vpow2.f32 %v795_v17 }
 0x2b4   : > { %v801_v55 = vmul.f32 1.442695, %v780_v20  ;;  %v799_v21 = vmul.f32 1.442695, %v779_v54  ;;  %v1130_v20 = vld [vmem:[%s6519_s3 + $0xa8] sm:$0xff]  ;;  %v1131_v54 = vld [vmem:[%s6519_s3 + $0xf8] sm:$0xff] }
 0x2b5   : > { %v758_v26 = vpop.xlane.xlu1 %757  ;;  %v756_v27 = vpop.xlane.xlu0 %755 }
 0x2b6   : > { %4935 = vpow2.f32 %v801_v55  ;;  %v782_v2 = vsub.f32 %v5398_v22, %v758_v26  ;;  %v781_v3 = vsub.f32 %v5400_v25, %v756_v27 }
 0x2b7   : > { %4937 = vpow2.f32 %v799_v21 }
 0x2b8   : > { %v5464_v29 = vpop.eup %4927  ;;  %v805_v30 = vmul.f32 1.442695, %v782_v2  ;;  %v803_v31 = vmul.f32 1.442695, %v781_v3  ;;  %v4608_v3 = vpack.c.bf16 %v1131_v54, %v1130_v20  ;;  %v1143_v20 = vld [vmem:[%s6519_s3 + $0x4b8] sm:$0xff] }
 0x2b9   : > { %v5466_v32 = vpop.eup %4929  ;;  %825 = vadd.xlane.f32.xlu1 %v5464_v29  ;;  %v762_v10 = vpop.xlane.xlu1 %761 }
 0x2ba   : > { %v760_v11 = vpop.xlane.xlu0 %759  ;;  %4939 = vpow2.f32 %v805_v30  ;;  %v784_v33 = vsub.f32 %v5414_v43, %v762_v10  ;;  %823 = vadd.xlane.f32.xlu0 %v5466_v32  ;;  %v1133_v10 = vld [vmem:[%s6519_s3 + $0x198] sm:$0xff] }
 0x2bb   : > { %v783_v22 = vsub.f32 %v5416_v44, %v760_v11  ;;  %4941 = vpow2.f32 %v803_v31  ;;  %v1132_v31 = vld [vmem:[%s6519_s3 + $0x148] sm:$0xff] }
 0x2bc   : > { %v5472_v25 = vpop.eup %4931  ;;  %v809_v34 = vmul.f32 1.442695, %v784_v33 }
 0x2bd   : > { %v807_v35 = vmul.f32 1.442695, %v783_v22  ;;  %v5474_v36 = vpop.eup %4933  ;;  %829 = vadd.xlane.f32.xlu1 %v5472_v25  ;;  %v766_v37 = vpop.xlane.xlu1 %765 }
 0x2be   : > { %v764_v38 = vpop.xlane.xlu0 %763  ;;  %4943 = vpow2.f32 %v809_v34  ;;  %v786_v39 = vsub.f32 %v5426_v50, %v766_v37  ;;  %827 = vadd.xlane.f32.xlu0 %v5474_v36  ;;  %v4612_v34 = vpack.c.bf16 %v1133_v10, %v1132_v31  ;;  %v1315_v31 = vld [vmem:[%s6519_s3 + $0x1a0] sm:$0xff] }
 0x2bf   : > { %v785_v42 = vsub.f32 %v5428_v51, %v764_v38  ;;  %4945 = vpow2.f32 %v807_v35 }
 0x2c0   : > { %v5480_v43 = vpop.eup %4935  ;;  %v813_v44 = vmul.f32 1.442695, %v786_v39 }
 0x2c1   : > { %v811_v45 = vmul.f32 1.442695, %v785_v42  ;;  %v5482_v46 = vpop.eup %4937  ;;  %833 = vadd.xlane.f32.xlu1 %v5480_v43  ;;  %v770_v47 = vpop.xlane.xlu1 %769 }
 0x2c2   : > { %v768_v48 = vpop.xlane.xlu0 %767  ;;  %4947 = vpow2.f32 %v813_v44  ;;  %v788_v49 = vsub.f32 %v5438_v58, %v770_v47  ;;  %831 = vadd.xlane.f32.xlu0 %v5482_v46 }
 0x2c3   : > { %v787_v28 = vsub.f32 %v5440_v59, %v768_v48  ;;  %4949 = vpow2.f32 %v811_v45 }
 0x2c4   : > { %v5488_v50 = vpop.eup %4939  ;;  %v817_v51 = vmul.f32 1.442695, %v788_v49 }
 0x2c5   : > { %v815_v52 = vmul.f32 1.442695, %v787_v28  ;;  %v5490_v53 = vpop.eup %4941  ;;  %837 = vadd.xlane.f32.xlu1 %v5488_v50  ;;  %v774_v56 = vpop.xlane.xlu1 %773 }
 0x2c6   : > { %v772_v57 = vpop.xlane.xlu0 %771  ;;  %4951 = vpow2.f32 %v817_v51  ;;  %v790_v60 = vsub.f32 %v5450_v0, %v774_v56  ;;  %835 = vadd.xlane.f32.xlu0 %v5490_v53 }
 0x2c7   : > { %v789_v58 = vsub.f32 %v5452_v1, %v772_v57  ;;  %4953 = vpow2.f32 %v815_v52 }
 0x2c8   : > { %v5496_v59 = vpop.eup %4943  ;;  %v821_v61 = vmul.f32 1.442695, %v790_v60 }
 0x2c9   : > { %v819_v62 = vmul.f32 1.442695, %v789_v58  ;;  %v5498_v63 = vpop.eup %4945  ;;  %841 = vadd.xlane.f32.xlu1 %v5496_v59 }
 0x2ca   : > { %4955 = vpow2.f32 %v821_v61  ;;  %839 = vadd.xlane.f32.xlu0 %v5498_v63 }
 0x2cb   : > { %4957 = vpow2.f32 %v819_v62 }
 0x2cc   : > { %v5502_v4 = vpop.eup %4947 }
 0x2cd   : > { %v5504_v0 = vpop.eup %4949  ;;  %845 = vadd.xlane.f32.xlu1 %v5502_v4 }
 0x2ce   : > { %843 = vadd.xlane.f32.xlu0 %v5504_v0 }
 0x2d0   : > { %v5508_v1 = vpop.eup %4951 }
 0x2d1   : > { %v5510_v5 = vpop.eup %4953  ;;  %849 = vadd.xlane.f32.xlu1 %v5508_v1 }
 0x2d2   : > { %847 = vadd.xlane.f32.xlu0 %v5510_v5 }
 0x2d4   : > { %v5514_v6 = vpop.eup %4955 }
 0x2d5   : > { %v5516_v7 = vpop.eup %4957  ;;  %853 = vadd.xlane.f32.xlu1 %v5514_v6 }
 0x2d6   : > { %851 = vadd.xlane.f32.xlu0 %v5516_v7 }
 0x346   : > { %v826_v13 = vpop.xlane.xlu1 %825 }
 0x347   : > { %4959 = vrcp.f32 %v826_v13  ;;  %v824_v14 = vpop.xlane.xlu0 %823  ;;  %v1138_v13 = vld [vmem:[%s6519_s3 + $0x328] sm:$0xff] }
 0x348   : > { %4961 = vrcp.f32 %v824_v14  ;;  %v1139_v14 = vld [vmem:[%s6519_s3 + $0x378] sm:$0xff] }
 0x34a   : > { %v830_v15 = vpop.xlane.xlu1 %829 }
 0x34b   : > { %4963 = vrcp.f32 %v830_v15  ;;  %v828_v16 = vpop.xlane.xlu0 %827  ;;  %v4624_v15 = vpack.c.bf16 %v1139_v14, %v1138_v13 }
 0x34c   : > { %4965 = vrcp.f32 %v828_v16  ;;  %v1140_v16 = vld [vmem:[%s6519_s3 + $0x3c8] sm:$0xff] }
 0x34e   : > { %v834_v17 = vpop.xlane.xlu1 %833 }
 0x34f   : > { %4967 = vrcp.f32 %v834_v17  ;;  %v832_v18 = vpop.xlane.xlu0 %831  ;;  %v1141_v17 = vld [vmem:[%s6519_s3 + $0x418] sm:$0xff] }
 0x350   : > { %4969 = vrcp.f32 %v832_v18  ;;  %v4628_v18 = vpack.c.bf16 %v1141_v17, %v1140_v16 }
 0x351   : > { %v4960_v19 = vpop.eup %4959 }
 0x352   : > { %v4962_v55 = vpop.eup %4961  ;;  %v872_v21 = vmul.f32 %v4960_v19, %v5464_v29  ;;  %v838_v26 = vpop.xlane.xlu1 %837  ;;  %v1142_v19 = vld [vmem:[%s6519_s3 + $0x468] sm:$0xff] }
 0x353   : > { %4971 = vrcp.f32 %v838_v26  ;;  %v836_v27 = vpop.xlane.xlu0 %835  ;;  %v871_v2 = vmul.f32 %v4962_v55, %v5466_v32  ;;  %v4632_v54 = vpack.c.bf16 %v1143_v20, %v1142_v19  ;;  %v1310_v55 = vld [vmem:[%s6519_s3 + $0x10] sm:$0xff] }
 0x354   : > { %4973 = vrcp.f32 %v836_v27  ;;  %v1312_v26 = vld [vmem:[%s6519_s3 + $0xb0] sm:$0xff] }
 0x355   : > { %v4964_v30 = vpop.eup %4963  ;;  %4009 = vmatprep.mubr.f32.mxu0 %v871_v2  ;;  %v1313_v2 = vld [vmem:[%s6519_s3 + $0x100] sm:$0xff] }
 0x356   : > { %v4966_v11 = vpop.eup %4965  ;;  %4010 = vmatmul.mubr.f32.vlgmr.msra.gmra.mrb[16].mxu0 %v872_v21  ;;  %v842_v29 = vpop.xlane.xlu1 %841  ;;  %v874_v33 = vmul.f32 %v4964_v30, %v5472_v25  ;;  %v1311_v21 = vld [vmem:[%s6519_s3 + $0x60] sm:$0xff]  ;;  %v1314_v30 = vld [vmem:[%s6519_s3 + $0x150] sm:$0xff] }
 0x357   : > { %4975 = vrcp.f32 %v842_v29  ;;  %v840_v22 = vpop.xlane.xlu0 %839  ;;  %v873_v32 = vmul.f32 %v4966_v11, %v5474_v36  ;;  %4607 = vmatpush3.bf16.msra.mxu0 %v4604_v12  ;;  %v4636_v27 = vpack.c.bf16 %v1311_v21, %v1310_v55  ;;  %v4644_v10 = vpack.c.bf16 %v1315_v31, %v1314_v30  ;;  %v1316_v11 = vld [vmem:[%s6519_s3 + $0x1f0] sm:$0xff]  ;;  %v1317_v29 = vld [vmem:[%s6519_s3 + $0x240] sm:$0xff] }
 0x358   : > { %4977 = vrcp.f32 %v840_v22  ;;  %4609 = vmatprep.subr.bf16.mxu0 %v4608_v3  ;;  %v1318_v22 = vld [vmem:[%s6519_s3 + $0x290] sm:$0xff] }
 0x359   : > { %v4968_v35 = vpop.eup %4967  ;;  %4012 = vmatprep.mubr.f32.mxu0 %v873_v32  ;;  %4637 = vmatprep.subr.bf16.mxu1 %v4636_v27  ;;  %v1319_v32 = vld [vmem:[%s6519_s3 + $0x2e0] sm:$0xff] }
 0x35a   : > { %v4970_v37 = vpop.eup %4969  ;;  %4013 = vmatmul.mubr.f32.gmra.mrb[18].mxu0 %v874_v33  ;;  %v846_v38 = vpop.xlane.xlu1 %845  ;;  %v876_v39 = vmul.f32 %v4968_v35, %v5480_v43  ;;  %4639 = vmatpush3.bf16.msra.mxu1 %v4636_v27  ;;  %v4648_v33 = vpack.c.bf16 %v1317_v29, %v1316_v11  ;;  %v1320_v35 = vld [vmem:[%s6519_s3 + $0x330] sm:$0xff] }
 0x35b   : > { %4979 = vrcp.f32 %v846_v38  ;;  %v844_v42 = vpop.xlane.xlu0 %843  ;;  %v875_v44 = vmul.f32 %v4970_v37, %v5482_v46  ;;  %4611 = vmatpush3.bf16.msra.mxu0 %v4608_v3  ;;  %v4640_v3 = vpack.c.bf16 %v1313_v2, %v1312_v26  ;;  %v1321_v37 = vld [vmem:[%s6519_s3 + $0x380] sm:$0xff] }
 0x35c   : > { %4981 = vrcp.f32 %v844_v42  ;;  %4613 = vmatprep.subr.bf16.mxu0 %v4612_v34  ;;  %v4656_v38 = vpack.c.bf16 %v1321_v37, %v1320_v35  ;;  %v1323_v42 = vld [vmem:[%s6519_s3 + $0x420] sm:$0xff] }
 0x35d   : > { %v4972_v25 = vpop.eup %4971  ;;  %4015 = vmatprep.mubr.f32.mxu0 %v875_v44  ;;  %4641 = vmatprep.subr.bf16.mxu1 %v4640_v3 }
 0x35e   : > { %v4974_v36 = vpop.eup %4973  ;;  %4016 = vmatmul.mubr.f32.gmra.mrb[20].mxu0 %v876_v39  ;;  %v850_v45 = vpop.xlane.xlu1 %849  ;;  %v878_v47 = vmul.f32 %v4972_v25, %v5488_v50  ;;  %4643 = vmatpush3.bf16.msra.mxu1 %v4640_v3  ;;  %v1322_v39 = vld [vmem:[%s6519_s3 + $0x3d0] sm:$0xff] }
 0x35f   : > { %4983 = vrcp.f32 %v850_v45  ;;  %v848_v48 = vpop.xlane.xlu0 %847  ;;  %v877_v49 = vmul.f32 %v4974_v36, %v5490_v53  ;;  %4615 = vmatpush3.bf16.msra.mxu0 %v4612_v34  ;;  %4645 = vmatprep.subr.bf16.mxu1 %v4644_v10  ;;  %v4652_v34 = vpack.c.bf16 %v1319_v32, %v1318_v22  ;;  %v4660_v44 = vpack.c.bf16 %v1323_v42, %v1322_v39 }
 0x360   : > { %4985 = vrcp.f32 %v848_v48 }
 0x361   : > { %v4976_v43 = vpop.eup %4975  ;;  %4018 = vmatprep.mubr.f32.mxu0 %v877_v49 }
 0x362   : > { %v4978_v28 = vpop.eup %4977  ;;  %4019 = vmatmul.mubr.f32.gmra.mrb[22].mxu0 %v878_v47  ;;  %v854_v46 = vpop.xlane.xlu1 %853  ;;  %v880_v51 = vmul.f32 %v4976_v43, %v5496_v59  ;;  %4647 = vmatpush3.bf16.msra.mxu1 %v4644_v10 }
 0x363   : > { %4987 = vrcp.f32 %v854_v46  ;;  %v852_v52 = vpop.xlane.xlu0 %851  ;;  %v879_v56 = vmul.f32 %v4978_v28, %v5498_v63  ;;  %4649 = vmatprep.subr.bf16.mxu1 %v4648_v33 }
 0x364   : > { %4989 = vrcp.f32 %v852_v52 }
 0x365   : > { %v4980_v57 = vpop.eup %4979  ;;  %4021 = vmatprep.mubr.f32.mxu0 %v879_v56 }
 0x366   : > { %v4982_v50 = vpop.eup %4981  ;;  %4022 = vmatmul.mubr.f32.gmra.mrb[24].mxu0 %v880_v51  ;;  %v882_v53 = vmul.f32 %v4980_v57, %v5502_v4  ;;  %v1134_v4 = vld [vmem:[%s6519_s3 + $0x1e8] sm:$0xff]  ;;  %4651 = vmatpush3.bf16.msra.mxu1 %v4648_v33 }
 0x367   : > { %v881_v60 = vmul.f32 %v4982_v50, %v5504_v0  ;;  %v1135_v0 = vld [vmem:[%s6519_s3 + $0x238] sm:$0xff]  ;;  %4653 = vmatprep.subr.bf16.mxu1 %v4652_v34 }
 0x369   : > { %v4984_v58 = vpop.eup %4983  ;;  %4024 = vmatprep.mubr.f32.mxu0 %v881_v60 }
 0x36a   : > { %v4986_v61 = vpop.eup %4985  ;;  %4025 = vmatmul.mubr.f32.gmra.mrb[26].mxu0 %v882_v53  ;;  %v884_v62 = vmul.f32 %v4984_v58, %v5508_v1  ;;  %v4616_v1 = vpack.c.bf16 %v1135_v0, %v1134_v4  ;;  %4655 = vmatpush3.bf16.msra.mxu1 %v4652_v34 }
 0x36b   : > { %v883_v59 = vmul.f32 %v4986_v61, %v5510_v5  ;;  %v1136_v5 = vld [vmem:[%s6519_s3 + $0x288] sm:$0xff]  ;;  %4657 = vmatprep.subr.bf16.mxu1 %v4656_v38 }
 0x36c   : > { %4617 = vmatprep.subr.bf16.mxu0 %v4616_v1 }
 0x36d   : > { %v4988_v8 = vpop.eup %4987  ;;  %4027 = vmatprep.mubr.f32.mxu0 %v883_v59  ;;  %4619 = vmatpush3.bf16.msra.mxu0 %v4616_v1 }
 0x36e   : > { %v4990_v63 = vpop.eup %4989  ;;  %4028 = vmatmul.mubr.f32.gmra.mrb[28].mxu0 %v884_v62  ;;  %v886_v9 = vmul.f32 %v4988_v8, %v5514_v6  ;;  %v1137_v6 = vld [vmem:[%s6519_s3 + $0x2d8] sm:$0xff]  ;;  %4659 = vmatpush3.bf16.msra.mxu1 %v4656_v38 }
 0x36f   : > { %v885_v12 = vmul.f32 %v4990_v63, %v5516_v7  ;;  %v4620_v7 = vpack.c.bf16 %v1137_v6, %v1136_v5  ;;  %4661 = vmatprep.subr.bf16.mxu1 %v4660_v44 }
 0x371   : > { %4030 = vmatprep.mubr.f32.mxu0 %v885_v12  ;;  %4621 = vmatprep.subr.bf16.mxu0 %v4620_v7 }
 0x372   : > { %4031 = vmatmul.mubr.f32.gmra.mrb[30].mxu0 %v886_v9  ;;  %4663 = vmatpush3.bf16.msra.mxu1 %v4660_v44 }
 0x373   : > { %4623 = vmatpush3.bf16.msra.mxu0 %v4620_v7 }
 0x374   : > { %4625 = vmatprep.subr.bf16.mxu0 %v4624_v15 }
 0x377   : > { %4627 = vmatpush3.bf16.msra.mxu0 %v4624_v15 }
 0x378   : > { %4629 = vmatprep.subr.bf16.mxu0 %v4628_v18 }
 0x37b   : > { %4631 = vmatpush3.bf16.msra.mxu0 %v4628_v18 }
 0x37c   : > { %4633 = vmatprep.subr.bf16.mxu0 %v4632_v54 }
 0x37f   : > { %4635 = vmatpush3.bf16.msra.mxu0 %v4632_v54 }
 0x429   : > { %v4011_v25 = vpop.f32.mrb[16].mxu0 }
 0x42a   : > { %v1049_v36 = vmin.f32 %v4011_v25, 0.0  ;;  %v953_v45 = vpop.f32.mrb[17].mxu0  ;;  %vm1033_vm2 = vcmp.gt.f32.partialorder %v4011_v25, 0.0 }
 0x42b   : > { %v1048_v47 = vmin.f32 %v953_v45, 0.0  ;;  %vm1032_vm1 = vcmp.gt.f32.partialorder %v953_v45, 0.0 }
 0x42c   : > { %v1066_v48 = vmul.f32 1.442695, %v1049_v36 }
 0x42d   : > { %v1064_v49 = vmul.f32 1.442695, %v1048_v47  ;;  %v4014_v43 = vpop.f32.mrb[18].mxu0 }
 0x42e   : > { %4991 = vpow2.f32 %v1066_v48  ;;  %v1051_v28 = vmin.f32 %v4014_v43, 0.0  ;;  %v963_v46 = vpop.f32.mrb[19].mxu0  ;;  %vm1035_vm4 = vcmp.gt.f32.partialorder %v4014_v43, 0.0 }
 0x42f   : > { %4993 = vpow2.f32 %v1064_v49  ;;  %v1050_v51 = vmin.f32 %v963_v46, 0.0  ;;  %vm1034_vm3 = vcmp.gt.f32.partialorder %v963_v46, 0.0 }
 0x430   : > { %v1070_v52 = vmul.f32 1.442695, %v1051_v28 }
 0x431   : > { %v1068_v56 = vmul.f32 1.442695, %v1050_v51  ;;  %v5626_v57 = vpop.f32.mrb[20].mxu0 }
 0x432   : > { %4995 = vpow2.f32 %v1070_v52  ;;  %v1053_v50 = vmin.f32 %v5626_v57, 0.0  ;;  %v5629_v53 = vpop.f32.mrb[21].mxu0  ;;  %vm1037_vm6 = vcmp.gt.f32.partialorder %v5626_v57, 0.0 }
 0x433   : > { %4997 = vpow2.f32 %v1068_v56  ;;  %v1052_v60 = vmin.f32 %v5629_v53, 0.0  ;;  %vm1036_vm5 = vcmp.gt.f32.partialorder %v5629_v53, 0.0 }
 0x434   : > { %v1074_v58 = vmul.f32 1.442695, %v1053_v50 }
 0x435   : > { %v1072_v61 = vmul.f32 1.442695, %v1052_v60  ;;  %v5632_v62 = vpop.f32.mrb[22].mxu0 }
 0x436   : > { %4999 = vpow2.f32 %v1074_v58  ;;  %v1055_v59 = vmin.f32 %v5632_v62, 0.0  ;;  %v5635_v8 = vpop.f32.mrb[23].mxu0  ;;  %vm1039_vm8 = vcmp.gt.f32.partialorder %v5632_v62, 0.0 }
 0x437   : > { %5001 = vpow2.f32 %v1072_v61  ;;  %v1054_v63 = vmin.f32 %v5635_v8, 0.0  ;;  %vm1038_vm7 = vcmp.gt.f32.partialorder %v5635_v8, 0.0 }
 0x438   : > { %v4992_v9 = vpop.eup %4991  ;;  %v1078_v12 = vmul.f32 1.442695, %v1055_v59 }
 0x439   : > { %v4994_v4 = vpop.eup %4993  ;;  %v3490_v0 = vadd.f32 -1.0, %v4992_v9  ;;  %v1076_v1 = vmul.f32 1.442695, %v1054_v63  ;;  %v5638_v5 = vpop.f32.mrb[24].mxu0 }
 0x43a   : > { %5003 = vpow2.f32 %v1078_v12  ;;  %v1057_v6 = vmin.f32 %v5638_v5, 0.0  ;;  %v5641_v7 = vpop.f32.mrb[25].mxu0  ;;  %v3489_v13 = vadd.f32 -1.0, %v4994_v4  ;;  %vm1041_vm10 = vcmp.gt.f32.partialorder %v5638_v5, 0.0 }
 0x43b   : > { %5005 = vpow2.f32 %v1076_v1  ;;  %v1056_v14 = vmin.f32 %v5641_v7, 0.0  ;;  %v1113_v19 = vsel %vm1033_vm2, %v4011_v25, %v3490_v0  ;;  %vm1040_vm9 = vcmp.gt.f32.partialorder %v5641_v7, 0.0 }
 0x43c   : > { %v4996_v15 = vpop.eup %4995  ;;  %v1082_v16 = vmul.f32 1.442695, %v1057_v6  ;;  %v1112_v17 = vsel %vm1032_vm1, %v953_v45, %v3489_v13 }
 0x43d   : > { %v4998_v18 = vpop.eup %4997  ;;  %v1080_v20 = vmul.f32 1.442695, %v1056_v14  ;;  %v5644_v54 = vpop.f32.mrb[26].mxu0  ;;  %4065 = vmatprep.mubr.f32.mxu0 %v1112_v17  ;;  %v3492_v55 = vadd.f32 -1.0, %v4996_v15 }
 0x43e   : > { %5007 = vpow2.f32 %v1082_v16  ;;  %v1059_v21 = vmin.f32 %v5644_v54, 0.0  ;;  %v5647_v26 = vpop.f32.mrb[27].mxu0  ;;  %4066 = vmatmul.mubr.f32.vlgmr.msra.gmra.mrb[32].mxu0 %v1113_v19  ;;  %v3491_v27 = vadd.f32 -1.0, %v4998_v18  ;;  %vm1043_vm12 = vcmp.gt.f32.partialorder %v5644_v54, 0.0  ;;  %v1324_v19 = vld [vmem:[%s6519_s3 + $0x470] sm:$0xff] }
 0x43f   : > { %5009 = vpow2.f32 %v1080_v20  ;;  %v1058_v2 = vmin.f32 %v5647_v26, 0.0  ;;  %v1115_v33 = vsel %vm1035_vm4, %v4014_v43, %v3492_v55  ;;  %vm1042_vm11 = vcmp.gt.f32.partialorder %v5647_v26, 0.0  ;;  %v1325_v20 = vld [vmem:[%s6519_s3 + $0x4c0] sm:$0xff]  ;;  %v1492_v55 = vld [vmem:[%s6519_s3 + $0x18] sm:$0xff] }
 0x440   : > { %v5000_v3 = vpop.eup %4999  ;;  %v1086_v30 = vmul.f32 1.442695, %v1059_v21  ;;  %v1114_v31 = vsel %vm1034_vm3, %v963_v46, %v3491_v27  ;;  %v1493_v21 = vld [vmem:[%s6519_s3 + $0x68] sm:$0xff] }
 0x441   : > { %v5002_v10 = vpop.eup %5001  ;;  %v1084_v11 = vmul.f32 1.442695, %v1058_v2  ;;  %v5650_v29 = vpop.f32.mrb[28].mxu0  ;;  %4068 = vmatprep.mubr.f32.mxu0 %v1114_v31  ;;  %v3494_v22 = vadd.f32 -1.0, %v5000_v3  ;;  %v4668_v27 = vpack.c.bf16 %v1493_v21, %v1492_v55  ;;  %v1495_v2 = vld [vmem:[%s6519_s3 + $0x108] sm:$0xff] }
 0x442   : > { %5011 = vpow2.f32 %v1086_v30  ;;  %v1061_v32 = vmin.f32 %v5650_v29, 0.0  ;;  %v1013_v34 = vpop.f32.mrb[29].mxu0  ;;  %4069 = vmatmul.mubr.f32.gmra.mrb[34].mxu0 %v1115_v33  ;;  %v3493_v35 = vadd.f32 -1.0, %v5002_v10  ;;  %vm1045_vm14 = vcmp.gt.f32.partialorder %v5650_v29, 0.0  ;;  %v1496_v30 = vld [vmem:[%s6519_s3 + $0x158] sm:$0xff]  ;;  %v1497_v31 = vld [vmem:[%s6519_s3 + $0x1a8] sm:$0xff] }
 0x443   : > { %5013 = vpow2.f32 %v1084_v11  ;;  %v1060_v37 = vmin.f32 %v1013_v34, 0.0  ;;  %v1117_v45 = vsel %vm1037_vm6, %v5626_v57, %v3494_v22  ;;  %vm1044_vm13 = vcmp.gt.f32.partialorder %v1013_v34, 0.0  ;;  %4669 = vmatprep.subr.bf16.mxu0 %v4668_v27  ;;  %v1498_v11 = vld [vmem:[%s6519_s3 + $0x1f8] sm:$0xff] }
 0x444   : > { %v5004_v38 = vpop.eup %5003  ;;  %v1090_v39 = vmul.f32 1.442695, %v1061_v32  ;;  %v1116_v42 = vsel %vm1036_vm5, %v5629_v53, %v3493_v35  ;;  %4671 = vmatpush3.bf16.msra.mxu0 %v4668_v27  ;;  %v4676_v10 = vpack.c.bf16 %v1497_v31, %v1496_v30  ;;  %v1500_v22 = vld [vmem:[%s6519_s3 + $0x298] sm:$0xff]  ;;  %v1501_v32 = vld [vmem:[%s6519_s3 + $0x2e8] sm:$0xff] }
 0x445   : > { %v5006_v44 = vpop.eup %5005  ;;  %v1088_v25 = vmul.f32 1.442695, %v1060_v37  ;;  %v4032_v36 = vpop.f32.mrb[30].mxu0  ;;  %4071 = vmatprep.mubr.f32.mxu0 %v1116_v42  ;;  %v3496_v47 = vadd.f32 -1.0, %v5004_v38  ;;  %v1502_v35 = vld [vmem:[%s6519_s3 + $0x338] sm:$0xff]  ;;  %v1503_v37 = vld [vmem:[%s6519_s3 + $0x388] sm:$0xff] }
 0x446   : > { %5015 = vpow2.f32 %v1090_v39  ;;  %v1063_v48 = vmin.f32 %v4032_v36, 0.0  ;;  %v1023_v49 = vpop.f32.mrb[31].mxu0  ;;  %4072 = vmatmul.mubr.f32.gmra.mrb[36].mxu0 %v1117_v45  ;;  %v3495_v43 = vadd.f32 -1.0, %v5006_v44  ;;  %vm1047_vm1 = vcmp.gt.f32.partialorder %v4032_v36, 0.0  ;;  %v1504_v39 = vld [vmem:[%s6519_s3 + $0x3d8] sm:$0xff]  ;;  %v1505_v42 = vld [vmem:[%s6519_s3 + $0x428] sm:$0xff] }
 0x447   : > { %5017 = vpow2.f32 %v1088_v25  ;;  %v1062_v28 = vmin.f32 %v1023_v49, 0.0  ;;  %v1119_v57 = vsel %vm1039_vm8, %v5632_v62, %v3496_v47  ;;  %vm1046_vm15 = vcmp.gt.f32.partialorder %v1023_v49, 0.0  ;;  %v3505_v25 = vld [vmem:[%s6520_s4] ss:$0 sm:$0xff] }
 0x448   : > { %v5008_v46 = vpop.eup %5007  ;;  %v1094_v51 = vmul.f32 1.442695, %v1063_v48  ;;  %v1118_v52 = vsel %vm1038_vm7, %v5635_v8, %v3495_v43  ;;  %v4688_v38 = vpack.c.bf16 %v1503_v37, %v1502_v35  ;;  %v4692_v44 = vpack.c.bf16 %v1505_v42, %v1504_v39  ;;  %v1674_v35 = vld [vmem:[%s6519_s3 + $0x20] sm:$0xff]  ;;  %v1679_v39 = vld [vmem:[%s6519_s3 + $0xc8] sm:$0xff]  ;;  %v1681_v42 = vld [vmem:[%s6519_s3 + $0x118] sm:$0xff] }
 0x449   : > { %v5010_v56 = vpop.eup %5009  ;;  %v1092_v50 = vmul.f32 1.442695, %v1062_v28  ;;  %4074 = vmatprep.mubr.f32.mxu0 %v1118_v52  ;;  %v3498_v53 = vadd.f32 -1.0, %v5008_v46 }
 0x44a   : > { %5019 = vpow2.f32 %v1094_v51  ;;  %4075 = vmatmul.mubr.f32.gmra.mrb[38].mxu0 %v1119_v57  ;;  %v3497_v60 = vadd.f32 -1.0, %v5010_v56 }
 0x44b   : > { %5021 = vpow2.f32 %v1092_v50  ;;  %v1121_v8 = vsel %vm1041_vm10, %v5638_v5, %v3498_v53 }
 0x44c   : > { %v5012_v58 = vpop.eup %5011  ;;  %v1120_v61 = vsel %vm1040_vm9, %v5641_v7, %v3497_v60 }
 0x44d   : > { %v5014_v59 = vpop.eup %5013  ;;  %4077 = vmatprep.mubr.f32.mxu0 %v1120_v61  ;;  %v3500_v63 = vadd.f32 -1.0, %v5012_v58 }
 0x44e   : > { %4078 = vmatmul.mubr.f32.gmra.mrb[40].mxu0 %v1121_v8  ;;  %v3499_v9 = vadd.f32 -1.0, %v5014_v59 }
 0x44f   : > { %v1123_v0 = vsel %vm1043_vm12, %v5644_v54, %v3500_v63  ;;  %v4664_v54 = vpack.c.bf16 %v1325_v20, %v1324_v19 }
 0x450   : > { %v5016_v62 = vpop.eup %5015  ;;  %v1122_v12 = vsel %vm1042_vm11, %v5647_v26, %v3499_v9  ;;  %v1494_v26 = vld [vmem:[%s6519_s3 + $0xb8] sm:$0xff] }
 0x451   : > { %v5018_v4 = vpop.eup %5017  ;;  %4080 = vmatprep.mubr.f32.mxu0 %v1122_v12  ;;  %v3502_v1 = vadd.f32 -1.0, %v5016_v62  ;;  %4665 = vmatprep.subr.bf16.mxu1 %v4664_v54  ;;  %v4672_v3 = vpack.c.bf16 %v1495_v2, %v1494_v26 }
 0x452   : > { %4081 = vmatmul.mubr.f32.gmra.mrb[42].mxu0 %v1123_v0  ;;  %v3501_v6 = vadd.f32 -1.0, %v5018_v4  ;;  %4667 = vmatpush3.bf16.msra.mxu1 %v4664_v54 }
 0x453   : > { %v1125_v14 = vsel %vm1045_vm14, %v5650_v29, %v3502_v1  ;;  %4673 = vmatprep.subr.bf16.mxu0 %v4672_v3  ;;  %v1499_v29 = vld [vmem:[%s6519_s3 + $0x248] sm:$0xff] }
 0x454   : > { %v5020_v7 = vpop.eup %5019  ;;  %v1124_v5 = vsel %vm1044_vm13, %v1013_v34, %v3501_v6  ;;  %4675 = vmatpush3.bf16.msra.mxu0 %v4672_v3  ;;  %v4680_v33 = vpack.c.bf16 %v1499_v29, %v1498_v11  ;;  %v4684_v34 = vpack.c.bf16 %v1501_v32, %v1500_v22  ;;  %v1506_v29 = vld [vmem:[%s6519_s3 + $0x478] sm:$0xff]  ;;  %v1675_v32 = vld [vmem:[%s6519_s3 + $0x28] sm:$0xff] }
 0x455   : > { %v5022_v13 = vpop.eup %5021  ;;  %4083 = vmatprep.mubr.f32.mxu0 %v1124_v5  ;;  %v3504_v15 = vadd.f32 -1.0, %v5020_v7  ;;  %4677 = vmatprep.subr.bf16.mxu0 %v4676_v10 }
 0x456   : > { %4084 = vmatmul.mubr.f32.gmra.mrb[44].mxu0 %v1125_v14  ;;  %v3503_v16 = vadd.f32 -1.0, %v5022_v13 }
 0x457   : > { %v1127_v18 = vsel %vm1047_vm1, %v4032_v36, %v3504_v15 }
 0x458   : > { %v1126_v17 = vsel %vm1046_vm15, %v1023_v49, %v3503_v16  ;;  %4679 = vmatpush3.bf16.msra.mxu0 %v4676_v10 }
 0x459   : > { %4086 = vmatprep.mubr.f32.mxu0 %v1126_v17  ;;  %4681 = vmatprep.subr.bf16.mxu0 %v4680_v33 }
 0x45a   : > { %4087 = vmatmul.mubr.f32.gmra.mrb[46].mxu0 %v1127_v18 }
 0x45c   : > { %4683 = vmatpush3.bf16.msra.mxu0 %v4680_v33  ;;  %v1507_v33 = vld [vmem:[%s6519_s3 + $0x4c8] sm:$0xff] }
 0x45d   : > { %4685 = vmatprep.subr.bf16.mxu0 %v4684_v34  ;;  %v4696_v22 = vpack.c.bf16 %v1507_v33, %v1506_v29 }
 0x460   : > { %4687 = vmatpush3.bf16.msra.mxu0 %v4684_v34  ;;  %v1677_v34 = vld [vmem:[%s6519_s3 + $0x78] sm:$0xff] }
 0x461   : > { %4689 = vmatprep.subr.bf16.mxu0 %v4688_v38  ;;  %v4700_v37 = vpack.c.bf16 %v1677_v34, %v1675_v32 }
 0x463   : > { %4701 = vmatprep.subr.bf16.mxu1 %v4700_v37 }
 0x464   : > { %4691 = vmatpush3.bf16.msra.mxu0 %v4688_v38  ;;  %v1676_v38 = vld [vmem:[%s6519_s3 + $0x70] sm:$0xff] }
 0x465   : > { %4693 = vmatprep.subr.bf16.mxu0 %v4692_v44 }
 0x468   : > { %4695 = vmatpush3.bf16.msra.mxu0 %v4692_v44  ;;  %v4702_v44 = vpack.c.bf16 %v1676_v38, %v1674_v35 }
 0x469   : > { %4697 = vmatprep.subr.bf16.mxu0 %v4696_v22 }
 0x46c   : > { %4699 = vmatpush3.bf16.msra.mxu0 %v4696_v22 }
 0x511   : > { %v4067_v36 = vpop.f32.mrb[32].mxu0 }
 0x512   : > { %v1221_v45 = vadd.f32 %v4067_v36, %v3505_v25  ;;  %v1215_v47 = vpop.f32.mrb[33].mxu0  ;;  %v1678_v36 = vld [vmem:[%s6519_s3 + $0xc0] sm:$0xff] }
 0x513   : > { %v1216_v48 = vadd.f32 %v3505_v25, %v1215_v47  ;;  %v1683_v47 = vld [vmem:[%s6519_s3 + $0x168] sm:$0xff] }
 0x514   : > { %v1295_v28 = vmax.f32 %v1221_v45, 0.0  ;;  %v1680_v45 = vld [vmem:[%s6519_s3 + $0x110] sm:$0xff] }
 0x515   : > { %v1294_v49 = vmax.f32 %v1216_v48, 0.0  ;;  %v4070_v43 = vpop.f32.mrb[34].mxu0  ;;  %v1685_v48 = vld [vmem:[%s6519_s3 + $0x1b8] sm:$0xff] }
 0x516   : > { %v1231_v46 = vadd.f32 %v4070_v43, %v3505_v25  ;;  %v1225_v51 = vpop.f32.mrb[35].mxu0  ;;  %v4708_v43 = vpack.c.bf16 %v1685_v48, %v1683_v47 }
 0x517   : > { %v1226_v52 = vadd.f32 %v3505_v25, %v1225_v51  ;;  %4121 = vmatprep.mubr.f32.mxu1 %v1294_v49  ;;  %v4706_v49 = vpack.c.bf16 %v1680_v45, %v1678_v36  ;;  %v1687_v51 = vld [vmem:[%s6519_s3 + $0x208] sm:$0xff] }
 0x518   : > { %4122 = vmatmul.mubr.f32.vlgmr.msra.gmra.mrb[2].mxu1 %v1295_v28  ;;  %v1297_v57 = vmax.f32 %v1231_v46, 0.0  ;;  %v1682_v28 = vld [vmem:[%s6519_s3 + $0x160] sm:$0xff]  ;;  %v1684_v46 = vld [vmem:[%s6519_s3 + $0x1b0] sm:$0xff] }
 0x519   : > { %v1296_v56 = vmax.f32 %v1226_v52, 0.0  ;;  %v4073_v50 = vpop.f32.mrb[36].mxu0  ;;  %4703 = vmatpush1.bf16.msra.mxu1 %v4702_v44  ;;  %v1689_v52 = vld [vmem:[%s6519_s3 + $0x258] sm:$0xff] }
 0x51a   : > { %v1241_v53 = vadd.f32 %v4073_v50, %v3505_v25  ;;  %v1235_v60 = vpop.f32.mrb[37].mxu0  ;;  %v4712_v50 = vpack.c.bf16 %v1689_v52, %v1687_v51 }
 0x51b   : > { %v1236_v58 = vadd.f32 %v3505_v25, %v1235_v60  ;;  %4124 = vmatprep.mubr.f32.mxu1 %v1296_v56  ;;  %v4710_v56 = vpack.c.bf16 %v1684_v46, %v1682_v28  ;;  %v1691_v60 = vld [vmem:[%s6519_s3 + $0x2a8] sm:$0xff] }
 0x51c   : > { %4125 = vmatmul.mubr.f32.gmra.mrb[4].mxu1 %v1297_v57  ;;  %v1299_v8 = vmax.f32 %v1241_v53, 0.0  ;;  %v1686_v57 = vld [vmem:[%s6519_s3 + $0x200] sm:$0xff]  ;;  %v1688_v53 = vld [vmem:[%s6519_s3 + $0x250] sm:$0xff] }
 0x51d   : > { %v1298_v61 = vmax.f32 %v1236_v58, 0.0  ;;  %v4076_v59 = vpop.f32.mrb[38].mxu0  ;;  %v1693_v58 = vld [vmem:[%s6519_s3 + $0x2f8] sm:$0xff] }
 0x51e   : > { %v1251_v63 = vadd.f32 %v4076_v59, %v3505_v25  ;;  %v1245_v9 = vpop.f32.mrb[39].mxu0  ;;  %v4716_v59 = vpack.c.bf16 %v1693_v58, %v1691_v60 }
 0x51f   : > { %v1246_v62 = vadd.f32 %v3505_v25, %v1245_v9  ;;  %4127 = vmatprep.mubr.f32.mxu1 %v1298_v61  ;;  %v4714_v61 = vpack.c.bf16 %v1688_v53, %v1686_v57  ;;  %v1695_v9 = vld [vmem:[%s6519_s3 + $0x348] sm:$0xff] }
 0x520   : > { %4128 = vmatmul.mubr.f32.gmra.mrb[6].mxu1 %v1299_v8  ;;  %v1301_v0 = vmax.f32 %v1251_v63, 0.0  ;;  %v1690_v8 = vld [vmem:[%s6519_s3 + $0x2a0] sm:$0xff]  ;;  %v1692_v63 = vld [vmem:[%s6519_s3 + $0x2f0] sm:$0xff] }
 0x521   : > { %v1300_v12 = vmax.f32 %v1246_v62, 0.0  ;;  %v4079_v4 = vpop.f32.mrb[40].mxu0  ;;  %v1697_v62 = vld [vmem:[%s6519_s3 + $0x398] sm:$0xff] }
 0x522   : > { %v1261_v1 = vadd.f32 %v4079_v4, %v3505_v25  ;;  %v1255_v6 = vpop.f32.mrb[41].mxu0  ;;  %v4720_v4 = vpack.c.bf16 %v1697_v62, %v1695_v9 }
 0x523   : > { %v1256_v7 = vadd.f32 %v3505_v25, %v1255_v6  ;;  %4130 = vmatprep.mubr.f32.mxu1 %v1300_v12  ;;  %v4718_v12 = vpack.c.bf16 %v1692_v63, %v1690_v8  ;;  %v1699_v6 = vld [vmem:[%s6519_s3 + $0x3e8] sm:$0xff] }
 0x524   : > { %4131 = vmatmul.mubr.f32.gmra.mrb[8].mxu1 %v1301_v0  ;;  %v1303_v14 = vmax.f32 %v1261_v1, 0.0  ;;  %v1694_v0 = vld [vmem:[%s6519_s3 + $0x340] sm:$0xff]  ;;  %v1696_v1 = vld [vmem:[%s6519_s3 + $0x390] sm:$0xff] }
 0x525   : > { %v1302_v5 = vmax.f32 %v1256_v7, 0.0  ;;  %v4082_v13 = vpop.f32.mrb[42].mxu0  ;;  %v1701_v7 = vld [vmem:[%s6519_s3 + $0x438] sm:$0xff] }
 0x526   : > { %v1271_v15 = vadd.f32 %v4082_v13, %v3505_v25  ;;  %v1265_v16 = vpop.f32.mrb[43].mxu0  ;;  %v4724_v13 = vpack.c.bf16 %v1701_v7, %v1699_v6  ;;  %v1704_v6 = vld [vmem:[%s6519_s3 + $0x4d0] sm:$0xff] }
 0x527   : > { %v1266_v17 = vadd.f32 %v3505_v25, %v1265_v16  ;;  %4133 = vmatprep.mubr.f32.mxu1 %v1302_v5  ;;  %v4722_v5 = vpack.c.bf16 %v1696_v1, %v1694_v0  ;;  %v1702_v0 = vld [vmem:[%s6519_s3 + $0x480] sm:$0xff] }
 0x528   : > { %4134 = vmatmul.mubr.f32.gmra.mrb[10].mxu1 %v1303_v14  ;;  %v1305_v20 = vmax.f32 %v1271_v15, 0.0  ;;  %v1698_v14 = vld [vmem:[%s6519_s3 + $0x3e0] sm:$0xff]  ;;  %v1700_v15 = vld [vmem:[%s6519_s3 + $0x430] sm:$0xff]  ;;  %v4730_v7 = vpack.c.bf16 %v1704_v6, %v1702_v0 }
 0x529   : > { %v1304_v18 = vmax.f32 %v1266_v17, 0.0  ;;  %v4085_v19 = vpop.f32.mrb[44].mxu0  ;;  %v4726_v16 = vpack.c.bf16 %v1700_v15, %v1698_v14  ;;  %v3506_v17 = vld [vmem:[%s6520_s4 + $0x1] ss:$0 sm:$0xff]  ;;  %v2007_v14 = vld [vmem:[%s6519_s3 + $0xd0] sm:$0xff] }
 0x52a   : > { %v1281_v54 = vadd.f32 %v4085_v19, %v3505_v25  ;;  %v1275_v55 = vpop.f32.mrb[45].mxu0  ;;  %v2010_v0 = vld [vmem:[%s6519_s3 + $0x1c0] sm:$0xff]  ;;  %v2011_v6 = vld [vmem:[%s6519_s3 + $0x210] sm:$0xff] }
 0x52b   : > { %v1276_v21 = vadd.f32 %v3505_v25, %v1275_v55  ;;  %4136 = vmatprep.mubr.f32.mxu1 %v1304_v18 }
 0x52c   : > { %4137 = vmatmul.mubr.f32.gmra.mrb[12].mxu1 %v1305_v20  ;;  %v1307_v2 = vmax.f32 %v1281_v54, 0.0 }
 0x52d   : > { %v1306_v26 = vmax.f32 %v1276_v21, 0.0  ;;  %v4088_v27 = vpop.f32.mrb[46].mxu0 }
 0x52e   : > { %v1291_v3 = vadd.f32 %v4088_v27, %v3505_v25  ;;  %v1285_v30 = vpop.f32.mrb[47].mxu0 }
 0x52f   : > { %v1286_v31 = vadd.f32 %v3505_v25, %v1285_v30  ;;  %4139 = vmatprep.mubr.f32.mxu1 %v1306_v26  ;;  %v4704_v25 = vpack.c.bf16 %v1681_v42, %v1679_v39 }
 0x530   : > { %4140 = vmatmul.mubr.f32.gmra.mrb[14].mxu1 %v1307_v2  ;;  %v1309_v11 = vmax.f32 %v1291_v3, 0.0 }
 0x531   : > { %v1308_v10 = vmax.f32 %v1286_v31, 0.0  ;;  %4705 = vmatprep.subr.bf16.mxu1 %v4704_v25 }
 0x532   : > { %4707 = vmatpush1.bf16.msra.mxu1 %v4706_v49 }
 0x533   : > { %4142 = vmatprep.mubr.f32.mxu1 %v1308_v10  ;;  %4709 = vmatprep.subr.bf16.mxu1 %v4708_v43 }
 0x534   : > { %4143 = vmatmul.mubr.f32.gmra.mrb[16].mxu1 %v1309_v11 }
 0x535   : > { %1770 = vmatprep.mubr.f32.mxu1 %v5177_v41 }
 0x536   : > { %4711 = vmatpush1.bf16.msra.mxu1 %v4710_v56 }
 0x537   : > { %4713 = vmatprep.subr.bf16.mxu1 %v4712_v50 }
 0x53a   : > { %4715 = vmatpush1.bf16.msra.mxu1 %v4714_v61 }
 0x53b   : > { %4717 = vmatprep.subr.bf16.mxu1 %v4716_v59 }
 0x53e   : > { %4719 = vmatpush1.bf16.msra.mxu1 %v4718_v12  ;;  %v1703_v12 = vld [vmem:[%s6519_s3 + $0x488] sm:$0xff] }
 0x53f   : > { %4721 = vmatprep.subr.bf16.mxu1 %v4720_v4  ;;  %v1705_v4 = vld [vmem:[%s6519_s3 + $0x4d8] sm:$0xff] }
 0x540   : > { %v4728_v1 = vpack.c.bf16 %v1705_v4, %v1703_v12  ;;  %v2009_v4 = vld [vmem:[%s6519_s3 + $0x170] sm:$0xff] }
 0x542   : > { %4723 = vmatpush1.bf16.msra.mxu1 %v4722_v5  ;;  %v2005_v5 = vld [vmem:[%s6519_s3 + $0x30] sm:$0xff] }
 0x543   : > { %4725 = vmatprep.subr.bf16.mxu1 %v4724_v13  ;;  %v2006_v13 = vld [vmem:[%s6519_s3 + $0x80] sm:$0xff] }
 0x544   : > { %v4732_v15 = vpack.c.bf16 %v2006_v13, %v2005_v5  ;;  %v2013_v13 = vld [vmem:[%s6519_s3 + $0x2b0] sm:$0xff] }
 0x546   : > { %4727 = vmatpush1.bf16.msra.mxu1 %v4726_v16  ;;  %v2008_v16 = vld [vmem:[%s6519_s3 + $0x120] sm:$0xff]  ;;  %4733 = vmatprep.subr.bf16.mxu0 %v4732_v15 }
 0x547   : > { %4729 = vmatprep.subr.bf16.mxu1 %v4728_v1  ;;  %v4740_v1 = vpack.c.bf16 %v2010_v0, %v2009_v4 }
 0x54a   : > { %4731 = vmatpush1.bf16.msra.mxu1 %v4730_v7  ;;  %v2012_v7 = vld [vmem:[%s6519_s3 + $0x260] sm:$0xff] }
 0x54b   : > { %v4744_v5 = vpack.c.bf16 %v2012_v7, %v2011_v6  ;;  %v2189_v6 = vld [vmem:[%s6519_s3 + $0xd8] sm:$0xff]  ;;  %v2190_v7 = vld [vmem:[%s6519_s3 + $0x128] sm:$0xff] }
 0x5eb   : > { %v4123_v18 = vpop.f32.mrb[2].mxu1 }
 0x5ec   : > { %v1403_v19 = vadd.f32 %v4123_v18, %v3506_v17  ;;  %v1397_v20 = vpop.f32.mrb[3].mxu1  ;;  %v5843_v18 = vld [vmem:[%s6520_s4 + $0x2] ss:$0 sm:$0xff] }
 0x5ed   : > { %v1398_v54 = vadd.f32 %v3506_v17, %v1397_v20 }
 0x5ee   : > { %v1477_v26 = vmax.f32 %v1403_v19, 0.0 }
 0x5ef   : > { %v1476_v55 = vmax.f32 %v1398_v54, 0.0  ;;  %v4126_v21 = vpop.f32.mrb[4].mxu1 }
 0x5f0   : > { %v1413_v27 = vadd.f32 %v4126_v21, %v3506_v17  ;;  %v1407_v2 = vpop.f32.mrb[5].mxu1 }
 0x5f1   : > { %v1408_v3 = vadd.f32 %v3506_v17, %v1407_v2  ;;  %4177 = vmatprep.mubr.f32.mxu0 %v1476_v55 }
 0x5f2   : > { %4178 = vmatmul.mubr.f32.vlgmr.msra.gmra.mrb[48].mxu0 %v1477_v26  ;;  %v1479_v10 = vmax.f32 %v1413_v27, 0.0 }
 0x5f3   : > { %v1478_v30 = vmax.f32 %v1408_v3, 0.0  ;;  %v4129_v31 = vpop.f32.mrb[6].mxu1  ;;  %4735 = vmatpush3.bf16.msra.mxu0 %v4732_v15 }
 0x5f4   : > { %v1423_v11 = vadd.f32 %v4129_v31, %v3506_v17  ;;  %v1417_v29 = vpop.f32.mrb[7].mxu1 }
 0x5f5   : > { %v1418_v33 = vadd.f32 %v3506_v17, %v1417_v29  ;;  %4180 = vmatprep.mubr.f32.mxu0 %v1478_v30 }
 0x5f6   : > { %4181 = vmatmul.mubr.f32.gmra.mrb[50].mxu0 %v1479_v10  ;;  %v1481_v34 = vmax.f32 %v1423_v11, 0.0 }
 0x5f7   : > { %v1480_v22 = vmax.f32 %v1418_v33, 0.0  ;;  %v4132_v32 = vpop.f32.mrb[8].mxu1 }
 0x5f8   : > { %v1433_v35 = vadd.f32 %v4132_v32, %v3506_v17  ;;  %v1427_v37 = vpop.f32.mrb[9].mxu1 }
 0x5f9   : > { %v1428_v38 = vadd.f32 %v3506_v17, %v1427_v37  ;;  %4183 = vmatprep.mubr.f32.mxu0 %v1480_v22 }
 0x5fa   : > { %4184 = vmatmul.mubr.f32.gmra.mrb[52].mxu0 %v1481_v34  ;;  %v1483_v44 = vmax.f32 %v1433_v35, 0.0 }
 0x5fb   : > { %v1482_v39 = vmax.f32 %v1428_v38, 0.0  ;;  %v4135_v42 = vpop.f32.mrb[10].mxu1 }
 0x5fc   : > { %v1443_v25 = vadd.f32 %v4135_v42, %v3506_v17  ;;  %v1437_v36 = vpop.f32.mrb[11].mxu1 }
 0x5fd   : > { %v1438_v45 = vadd.f32 %v3506_v17, %v1437_v36  ;;  %4186 = vmatprep.mubr.f32.mxu0 %v1482_v39 }
 0x5fe   : > { %4187 = vmatmul.mubr.f32.gmra.mrb[54].mxu0 %v1483_v44  ;;  %v1485_v49 = vmax.f32 %v1443_v25, 0.0 }
 0x5ff   : > { %v1484_v47 = vmax.f32 %v1438_v45, 0.0  ;;  %v4138_v48 = vpop.f32.mrb[12].mxu1 }
 0x600   : > { %v1453_v43 = vadd.f32 %v4138_v48, %v3506_v17  ;;  %v1447_v28 = vpop.f32.mrb[13].mxu1 }
 0x601   : > { %v1448_v46 = vadd.f32 %v3506_v17, %v1447_v28  ;;  %4189 = vmatprep.mubr.f32.mxu0 %v1484_v47 }
 0x602   : > { %4190 = vmatmul.mubr.f32.gmra.mrb[56].mxu0 %v1485_v49  ;;  %v1487_v56 = vmax.f32 %v1453_v43, 0.0 }
 0x603   : > { %v1486_v51 = vmax.f32 %v1448_v46, 0.0  ;;  %v4141_v52 = vpop.f32.mrb[14].mxu1 }
 0x604   : > { %v1463_v50 = vadd.f32 %v4141_v52, %v3506_v17  ;;  %v1457_v57 = vpop.f32.mrb[15].mxu1 }
 0x605   : > { %v1458_v53 = vadd.f32 %v3506_v17, %v1457_v57  ;;  %4192 = vmatprep.mubr.f32.mxu0 %v1486_v51 }
 0x606   : > { %4193 = vmatmul.mubr.f32.gmra.mrb[58].mxu0 %v1487_v56  ;;  %v1489_v61 = vmax.f32 %v1463_v50, 0.0 }
 0x607   : > { %v1488_v60 = vmax.f32 %v1458_v53, 0.0  ;;  %v4144_v58 = vpop.f32.mrb[16].mxu1 }
 0x608   : > { %v1473_v59 = vadd.f32 %v4144_v58, %v3506_v17  ;;  %v1467_v8 = vpop.f32.mrb[17].mxu1 }
 0x609   : > { %v1468_v63 = vadd.f32 %v3506_v17, %v1467_v8  ;;  %4195 = vmatprep.mubr.f32.mxu0 %v1488_v60  ;;  %v4736_v17 = vpack.c.bf16 %v2008_v16, %v2007_v14  ;;  %v2014_v14 = vld [vmem:[%s6519_s3 + $0x300] sm:$0xff]  ;;  %v2015_v16 = vld [vmem:[%s6519_s3 + $0x350] sm:$0xff] }
 0x60a   : > { %4196 = vmatmul.mubr.f32.gmra.mrb[60].mxu0 %v1489_v61  ;;  %v1491_v62 = vmax.f32 %v1473_v59, 0.0  ;;  %v4748_v15 = vpack.c.bf16 %v2014_v14, %v2013_v13 }
 0x60b   : > { %v1490_v9 = vmax.f32 %v1468_v63, 0.0  ;;  %4737 = vmatprep.subr.bf16.mxu0 %v4736_v17 }
 0x60c   : > { %4739 = vmatpush3.bf16.msra.mxu0 %v4736_v17  ;;  %v2016_v17 = vld [vmem:[%s6519_s3 + $0x3a0] sm:$0xff] }
 0x60d   : > { %4198 = vmatprep.mubr.f32.mxu0 %v1490_v9  ;;  %4741 = vmatprep.subr.bf16.mxu0 %v4740_v1 }
 0x60e   : > { %4199 = vmatmul.mubr.f32.gmra.mrb[62].mxu0 %v1491_v62 }
 0x610   : > { %4743 = vmatpush3.bf16.msra.mxu0 %v4740_v1 }
 0x611   : > { %4745 = vmatprep.subr.bf16.mxu0 %v4744_v5 }
 0x614   : > { %4747 = vmatpush3.bf16.msra.mxu0 %v4744_v5 }
 0x615   : > { %4749 = vmatprep.subr.bf16.mxu0 %v4748_v15 }
 0x618   : > { %4751 = vmatpush3.bf16.msra.mxu0 %v4748_v15  ;;  %v1911_v15 = vld [vmem:[%s5965_s13 + $0x10] sm:$0xff] }
 0x6c5   : > { %v4179_v19 = vpop.f32.mrb[48].mxu0 }
 0x6c6   : > { %v1579_v20 = vpop.f32.mrb[49].mxu0  ;;  %v1585_v55 = vadd.f32 %v4179_v19, %v5843_v18  ;;  %v2017_v19 = vld [vmem:[%s6519_s3 + $0x3f0] sm:$0xff] }
 0x6c7   : > { %v1580_v54 = vadd.f32 %v5843_v18, %v1579_v20  ;;  %v2018_v20 = vld [vmem:[%s6519_s3 + $0x440] sm:$0xff] }
 0x6c8   : > { %v1659_v2 = vmax.f32 %v1585_v55, 0.0  ;;  %v2019_v55 = vld [vmem:[%s6519_s3 + $0x490] sm:$0xff] }
 0x6c9   : > { %v1658_v21 = vmax.f32 %v1580_v54, 0.0  ;;  %v4182_v26 = vpop.f32.mrb[50].mxu0  ;;  %v4756_v54 = vpack.c.bf16 %v2018_v20, %v2017_v19  ;;  %v4768_v19 = vpack.c.bf16 %v2190_v7, %v2189_v6  ;;  %v1915_v6 = vld [vmem:[%s5965_s13 + $0x30] sm:$0xff] }
 0x6ca   : > { %v1589_v27 = vpop.f32.mrb[51].mxu0  ;;  %v1595_v10 = vadd.f32 %v4182_v26, %v5843_v18 }
 0x6cb   : > { %1771 = vmatmul.mubr.f32.vlgmr.msra.gmra.mrb[18].mxu1 %v1658_v21  ;;  %v1590_v3 = vadd.f32 %v5843_v18, %v1589_v27  ;;  %v2020_v21 = vld [vmem:[%s6519_s3 + $0x4e0] sm:$0xff]  ;;  %v2187_v27 = vld [vmem:[%s6519_s3 + $0x38] sm:$0xff] }
 0x6cc   : > { %1776 = vmatprep.mubr.f32.mxu1 %v5177_v41  ;;  %v1661_v22 = vmax.f32 %v1595_v10, 0.0  ;;  %v4760_v26 = vpack.c.bf16 %v2020_v21, %v2019_v55  ;;  %v2191_v21 = vld [vmem:[%s6519_s3 + $0x178] sm:$0xff] }
 0x6cd   : > { %v4185_v30 = vpop.f32.mrb[52].mxu0  ;;  %v1660_v11 = vmax.f32 %v1590_v3, 0.0 }
 0x6ce   : > { %v1599_v31 = vpop.f32.mrb[53].mxu0  ;;  %v1605_v37 = vadd.f32 %v4185_v30, %v5843_v18  ;;  %v5924_v30 = vld [vmem:[%s6520_s4 + $0x3] ss:$0 sm:$0xff] }
 0x6cf   : > { %1777 = vmatmul.mubr.f32.gmra.mrb[20].mxu1 %v1659_v2  ;;  %v1600_v32 = vadd.f32 %v5843_v18, %v1599_v31  ;;  %v2188_v2 = vld [vmem:[%s6519_s3 + $0x88] sm:$0xff]  ;;  %v5929_v31 = vld [vmem:[%s6520_s4 + $0x4] ss:$0 sm:$0xff] }
 0x6d0   : > { %1782 = vmatprep.mubr.f32.mxu1 %v5177_v41  ;;  %v1663_v44 = vmax.f32 %v1605_v37, 0.0  ;;  %v5918_v3 = vpack.c.bf16 %v2188_v2, %v2187_v27 }
 0x6d1   : > { %v4188_v29 = vpop.f32.mrb[54].mxu0  ;;  %v1662_v38 = vmax.f32 %v1600_v32, 0.0 }
 0x6d2   : > { %v1609_v33 = vpop.f32.mrb[55].mxu0  ;;  %v1615_v47 = vadd.f32 %v4188_v29, %v5843_v18 }
 0x6d3   : > { %1783 = vmatmul.mubr.f32.gmra.mrb[22].mxu1 %v1660_v11  ;;  %v1610_v25 = vadd.f32 %v5843_v18, %v1609_v33 }
 0x6d4   : > { %1788 = vmatprep.mubr.f32.mxu1 %v5177_v41  ;;  %v1665_v28 = vmax.f32 %v1615_v47, 0.0 }
 0x6d5   : > { %v4191_v34 = vpop.f32.mrb[56].mxu0  ;;  %v1664_v48 = vmax.f32 %v1610_v25, 0.0 }
 0x6d6   : > { %v1619_v35 = vpop.f32.mrb[57].mxu0  ;;  %v1625_v51 = vadd.f32 %v4191_v34, %v5843_v18 }
 0x6d7   : > { %1789 = vmatmul.mubr.f32.gmra.mrb[24].mxu1 %v1661_v22  ;;  %v1620_v46 = vadd.f32 %v5843_v18, %v1619_v35 }
 0x6d8   : > { %1794 = vmatprep.mubr.f32.mxu1 %v5177_v41  ;;  %v1667_v56 = vmax.f32 %v1625_v51, 0.0 }
 0x6d9   : > { %v4194_v39 = vpop.f32.mrb[58].mxu0  ;;  %v1666_v52 = vmax.f32 %v1620_v46, 0.0 }
 0x6da   : > { %v1629_v42 = vpop.f32.mrb[59].mxu0  ;;  %v1635_v57 = vadd.f32 %v4194_v39, %v5843_v18 }
 0x6db   : > { %1795 = vmatmul.mubr.f32.gmra.mrb[26].mxu1 %v1662_v38  ;;  %v1630_v50 = vadd.f32 %v5843_v18, %v1629_v42 }
 0x6dc   : > { %1800 = vmatprep.mubr.f32.mxu1 %v5177_v41  ;;  %v1669_v60 = vmax.f32 %v1635_v57, 0.0 }
 0x6dd   : > { %v4197_v36 = vpop.f32.mrb[60].mxu0  ;;  %v1668_v53 = vmax.f32 %v1630_v50, 0.0 }
 0x6de   : > { %v1639_v45 = vpop.f32.mrb[61].mxu0  ;;  %v1645_v61 = vadd.f32 %v4197_v36, %v5843_v18 }
 0x6df   : > { %1801 = vmatmul.mubr.f32.gmra.mrb[28].mxu1 %v1663_v44  ;;  %v1640_v58 = vadd.f32 %v5843_v18, %v1639_v45 }
 0x6e0   : > { %1806 = vmatprep.mubr.f32.mxu1 %v5177_v41  ;;  %v1671_v8 = vmax.f32 %v1645_v61, 0.0 }
 0x6e1   : > { %v4200_v49 = vpop.f32.mrb[62].mxu0  ;;  %v1670_v59 = vmax.f32 %v1640_v58, 0.0 }
 0x6e2   : > { %v1649_v43 = vpop.f32.mrb[63].mxu0  ;;  %v1655_v9 = vadd.f32 %v4200_v49, %v5843_v18 }
 0x6e3   : > { %1807 = vmatmul.mubr.f32.gmra.mrb[30].mxu1 %v1664_v48  ;;  %v1650_v63 = vadd.f32 %v5843_v18, %v1649_v43  ;;  %v4752_v18 = vpack.c.bf16 %v2016_v17, %v2015_v16 }
 0x6e4   : > { %1812 = vmatprep.mubr.f32.mxu1 %v5177_v41  ;;  %v1673_v12 = vmax.f32 %v1655_v9, 0.0 }
 0x6e5   : > { %v1672_v62 = vmax.f32 %v1650_v63, 0.0  ;;  %4753 = vmatprep.subr.bf16.mxu0 %v4752_v18  ;;  %v1910_v63 = vld [vmem:[%s5965_s13 + $0x8] sm:$0xff] }
 0x6e6   : > { %4755 = vmatpush3.bf16.msra.mxu0 %v4752_v18 }
 0x6e7   : > { %1813 = vmatmul.mubr.f32.gmra.mrb[32].mxu1 %v1665_v28  ;;  %4757 = vmatprep.subr.bf16.mxu0 %v4756_v54 }
 0x6e8   : > { %1818 = vmatprep.mubr.f32.mxu1 %v5177_v41 }
 0x6ea   : > { %4759 = vmatpush3.bf16.msra.mxu0 %v4756_v54 }
 0x6eb   : > { %1819 = vmatmul.mubr.f32.gmra.mrb[34].mxu1 %v1666_v52  ;;  %4761 = vmatprep.subr.bf16.mxu0 %v4760_v26 }
 0x6ec   : > { %1824 = vmatprep.mubr.f32.mxu1 %v5177_v41 }
 0x6ee   : > { %4763 = vmatpush3.bf16.msra.mxu0 %v4760_v26  ;;  %v2192_v26 = vld [vmem:[%s6519_s3 + $0x1c8] sm:$0xff] }
 0x6ef   : > { %1825 = vmatmul.mubr.f32.gmra.mrb[36].mxu1 %v1667_v56  ;;  %4765 = vmatprep.subr.bf16.mxu0 %v5918_v3  ;;  %v1909_v56 = vld [vmem:[%s5965_s13] sm:$0xff] }
 0x6f0   : > { %1830 = vmatprep.mubr.f32.mxu1 %v5177_v41 }
 0x6f3   : > { %1831 = vmatmul.mubr.f32.gmra.mrb[38].mxu1 %v1668_v53 }
 0x6f4   : > { %1836 = vmatprep.mubr.f32.mxu1 %v5177_v41 }
 0x6f7   : > { %1837 = vmatmul.mubr.f32.gmra.mrb[40].mxu1 %v1669_v60 }
 0x6f8   : > { %1842 = vmatprep.mubr.f32.mxu1 %v5177_v41 }
 0x6fb   : > { %1843 = vmatmul.mubr.f32.gmra.mrb[42].mxu1 %v1670_v59 }
 0x6fc   : > { %1848 = vmatprep.mubr.f32.mxu1 %v5177_v41 }
 0x6ff   : > { %1849 = vmatmul.mubr.f32.gmra.mrb[44].mxu1 %v1671_v8 }
 0x700   : > { %1854 = vmatprep.mubr.f32.mxu1 %v5177_v41 }
 0x703   : > { %1855 = vmatmul.mubr.f32.gmra.mrb[46].mxu1 %v1672_v62 }
 0x704   : > { %1860 = vmatprep.mubr.f32.mxu1 %v5177_v41 }
 0x707   : > { %1861 = vmatmul.mubr.f32.gmra.mrb[48].mxu1 %v1673_v12 }
 0x79e   : > { %v1772_v10 = vpop.f32.mrb[18].mxu1 }
 0x79f   : > { %v1872_v11 = vadd.f32 %v5924_v30, %v1772_v10  ;;  %v1774_v29 = vpop.f32.mrb[19].mxu1 }
 0x7a0   : > { %v1893_v33 = vadd.f32 %v5929_v31, %v1774_v29 }
 0x7a1   : > { %3305 = vst [vmem:[%s5935_s29] sm:$0xff] %v1872_v11 }
 0x7a2   : > { %v1925_v22 = vmul.f32 0.5, %v1893_v33  ;;  %3321 = vst [vmem:[%s5942_s10] sm:$0xff] %v1893_v33  ;;  %v1778_v32 = vpop.f32.mrb[20].mxu1 }
 0x7a3   : > { %v1873_v34 = vadd.f32 %v5924_v30, %v1778_v32  ;;  %v1780_v35 = vpop.f32.mrb[21].mxu1  ;;  %v4772_v32 = vpack.c.bf16 %v2192_v26, %v2191_v21  ;;  %v1916_v21 = vld [vmem:[%s5965_s13 + $0x38] sm:$0xff] }
 0x7a4   : > { %v1941_v37 = vmul.f32 1.442695, %v1925_v22  ;;  %v1894_v38 = vadd.f32 %v5929_v31, %v1780_v35 }
 0x7a5   : > { %3306 = vst [vmem:[%s5935_s29 + $0x8] sm:$0xff] %v1873_v34 }
 0x7a6   : > { %5023 = vpow2.f32 %v1941_v37  ;;  %v1926_v39 = vmul.f32 0.5, %v1894_v38  ;;  %3322 = vst [vmem:[%s5942_s10 + $0x8] sm:$0xff] %v1894_v38  ;;  %v1784_v42 = vpop.f32.mrb[22].mxu1  ;;  %v2193_v38 = vld [vmem:[%s6519_s3 + $0x218] sm:$0xff] }
 0x7a7   : > { %v5952_v44 = vadd.f32 %v5924_v30, %v1784_v42  ;;  %v1786_v25 = vpop.f32.mrb[23].mxu1 }
 0x7a8   : > { %v1943_v36 = vmul.f32 1.442695, %v1926_v39  ;;  %v1895_v45 = vadd.f32 %v5929_v31, %v1786_v25  ;;  %v1913_v25 = vld [vmem:[%s5965_s13 + $0x20] sm:$0xff] }
 0x7a9   : > { %3307 = vst [vmem:[%s5935_s29 + $0x10] sm:$0xff] %v5952_v44 }
 0x7aa   : > { %5025 = vpow2.f32 %v1943_v36  ;;  %v1927_v47 = vmul.f32 0.5, %v1895_v45  ;;  %3323 = vst [vmem:[%s5942_s10 + $0x10] sm:$0xff] %v1895_v45  ;;  %v1790_v48 = vpop.f32.mrb[24].mxu1 }
 0x7ab   : > { %v5959_v49 = vadd.f32 %v5924_v30, %v1790_v48  ;;  %v1792_v43 = vpop.f32.mrb[25].mxu1 }
 0x7ac   : > { %v1945_v28 = vmul.f32 1.442695, %v1927_v47  ;;  %v1896_v46 = vadd.f32 %v5929_v31, %v1792_v43 }
 0x7ad   : > { %3308 = vst [vmem:[%s5935_s29 + $0x18] sm:$0xff] %v5959_v49 }
 0x7ae   : > { %5027 = vpow2.f32 %v1945_v28  ;;  %v1928_v51 = vmul.f32 0.5, %v1896_v46  ;;  %3324 = vst [vmem:[%s5942_s10 + $0x18] sm:$0xff] %v1896_v46  ;;  %v1796_v52 = vpop.f32.mrb[26].mxu1 }
 0x7af   : > { %v5973_v50 = vadd.f32 %v5924_v30, %v1796_v52  ;;  %v1798_v57 = vpop.f32.mrb[27].mxu1  ;;  %v2196_v52 = vld [vmem:[%s6519_s3 + $0x308] sm:$0xff] }
 0x7b0   : > { %v5024_v53 = vpop.eup %5023  ;;  %v1947_v60 = vmul.f32 1.442695, %v1928_v51  ;;  %v1897_v58 = vadd.f32 %v5929_v31, %v1798_v57  ;;  %v2195_v51 = vld [vmem:[%s6519_s3 + $0x2b8] sm:$0xff] }
 0x7b1   : > { %3309 = vst [vmem:[%s5935_s29 + $0x20] sm:$0xff] %v5973_v50  ;;  %v1973_v61 = vmul.f32 %v5024_v53, %v1909_v56  ;;  %v1914_v53 = vld [vmem:[%s5965_s13 + $0x28] sm:$0xff] }
 0x7b2   : > { %5029 = vpow2.f32 %v1947_v60  ;;  %v1929_v59 = vmul.f32 0.5, %v1897_v58  ;;  %3325 = vst [vmem:[%s5942_s10 + $0x20] sm:$0xff] %v1897_v58  ;;  %v1802_v8 = vpop.f32.mrb[28].mxu1 }
 0x7b3   : > { %v5981_v9 = vadd.f32 %v5924_v30, %v1802_v8  ;;  %v1804_v62 = vpop.f32.mrb[29].mxu1  ;;  %v1989_v12 = vadd.f32 %v1973_v61, %v1872_v11  ;;  %v1912_v11 = vld [vmem:[%s5965_s13 + $0x18] sm:$0xff] }
 0x7b4   : > { %v5026_v4 = vpop.eup %5025  ;;  %v1949_v0 = vmul.f32 1.442695, %v1929_v59  ;;  %v1898_v1 = vadd.f32 %v5929_v31, %v1804_v62  ;;  %v4780_v59 = vpack.c.bf16 %v2196_v52, %v2195_v51 }
 0x7b5   : > { %3310 = vst [vmem:[%s5935_s29 + $0x28] sm:$0xff] %v5981_v9  ;;  %4233 = vmatprep.mubr.f32.mxu0 %v1989_v12  ;;  %v1974_v5 = vmul.f32 %v5026_v4, %v1910_v63  ;;  %v2197_v12 = vld [vmem:[%s6519_s3 + $0x358] sm:$0xff]  ;;  %v2198_v4 = vld [vmem:[%s6519_s3 + $0x3a8] sm:$0xff] }
 0x7b6   : > { %5031 = vpow2.f32 %v1949_v0  ;;  %v1930_v13 = vmul.f32 0.5, %v1898_v1  ;;  %3326 = vst [vmem:[%s5942_s10 + $0x28] sm:$0xff] %v1898_v1  ;;  %v1808_v14 = vpop.f32.mrb[30].mxu1 }
 0x7b7   : > { %v5995_v16 = vadd.f32 %v5924_v30, %v1808_v14  ;;  %v1810_v17 = vpop.f32.mrb[31].mxu1  ;;  %v1990_v18 = vadd.f32 %v1974_v5, %v1873_v34  ;;  %v4784_v14 = vpack.c.bf16 %v2198_v4, %v2197_v12 }
 0x7b8   : > { %v5028_v20 = vpop.eup %5027  ;;  %v1951_v54 = vmul.f32 1.442695, %v1930_v13  ;;  %v1899_v55 = vadd.f32 %v5929_v31, %v1810_v17 }
 0x7b9   : > { %3311 = vst [vmem:[%s5935_s29 + $0x30] sm:$0xff] %v5995_v16  ;;  %4234 = vmatmul.mubr.f32.vlgmr.msra.gmra.mrb[64].mxu0 %v1990_v18  ;;  %v1975_v27 = vmul.f32 %v5028_v20, %v1911_v15  ;;  %v2200_v20 = vld [vmem:[%s6519_s3 + $0x448] sm:$0xff] }
 0x7ba   : > { %5033 = vpow2.f32 %v1951_v54  ;;  %v1931_v2 = vmul.f32 0.5, %v1899_v55  ;;  %3327 = vst [vmem:[%s5942_s10 + $0x30] sm:$0xff] %v1899_v55  ;;  %v1814_v10 = vpop.f32.mrb[32].mxu1  ;;  %4767 = vmatpush3.bf16.msra.mxu0 %v5918_v3  ;;  %v2194_v3 = vld [vmem:[%s6519_s3 + $0x268] sm:$0xff] }
 0x7bb   : > { %v6010_v29 = vadd.f32 %v5924_v30, %v1814_v10  ;;  %v1816_v33 = vpop.f32.mrb[33].mxu1  ;;  %v1991_v22 = vadd.f32 %v1975_v27, %v5952_v44  ;;  %4769 = vmatprep.subr.bf16.mxu0 %v4768_v19  ;;  %v4776_v48 = vpack.c.bf16 %v2194_v3, %v2193_v38 }
 0x7bc   : > { %v5030_v34 = vpop.eup %5029  ;;  %v1953_v35 = vmul.f32 1.442695, %v1931_v2  ;;  %v1900_v37 = vadd.f32 %v5929_v31, %v1816_v33 }
 0x7bd   : > { %3312 = vst [vmem:[%s5935_s29 + $0x38] sm:$0xff] %v6010_v29  ;;  %4236 = vmatprep.mubr.f32.mxu0 %v1991_v22  ;;  %v1976_v39 = vmul.f32 %v5030_v34, %v1912_v11 }
 0x7be   : > { %5035 = vpow2.f32 %v1953_v35  ;;  %v1932_v42 = vmul.f32 0.5, %v1900_v37  ;;  %3328 = vst [vmem:[%s5942_s10 + $0x38] sm:$0xff] %v1900_v37  ;;  %v1820_v44 = vpop.f32.mrb[34].mxu1  ;;  %4771 = vmatpush3.bf16.msra.mxu0 %v4768_v19  ;;  %v2199_v19 = vld [vmem:[%s6519_s3 + $0x3f8] sm:$0xff]  ;;  %v1917_v37 = vld [vmem:[%s5965_s13 + $0x40] sm:$0xff] }
 0x7bf   : > { %v6025_v36 = vadd.f32 %v5924_v30, %v1820_v44  ;;  %v1822_v45 = vpop.f32.mrb[35].mxu1  ;;  %v1992_v47 = vadd.f32 %v1976_v39, %v5959_v49  ;;  %4773 = vmatprep.subr.bf16.mxu0 %v4772_v32  ;;  %v4788_v10 = vpack.c.bf16 %v2200_v20, %v2199_v19  ;;  %v1922_v20 = vld [vmem:[%s5965_s13 + $0x68] sm:$0xff] }
 0x7c0   : > { %v5032_v43 = vpop.eup %5031  ;;  %v1955_v28 = vmul.f32 1.442695, %v1932_v42  ;;  %v1901_v46 = vadd.f32 %v5929_v31, %v1822_v45 }
 0x7c1   : > { %3313 = vst [vmem:[%s5935_s29 + $0x40] sm:$0xff] %v6025_v36  ;;  %4237 = vmatmul.mubr.f32.gmra.mrb[66].mxu0 %v1992_v47  ;;  %v1977_v56 = vmul.f32 %v5032_v43, %v1913_v25 }
 0x7c2   : > { %5037 = vpow2.f32 %v1955_v28  ;;  %v1933_v49 = vmul.f32 0.5, %v1901_v46  ;;  %3329 = vst [vmem:[%s5942_s10 + $0x40] sm:$0xff] %v1901_v46  ;;  %v1826_v57 = vpop.f32.mrb[36].mxu1  ;;  %4775 = vmatpush3.bf16.msra.mxu0 %v4772_v32 }
 0x7c3   : > { %v6040_v60 = vadd.f32 %v5924_v30, %v1826_v57  ;;  %v1828_v58 = vpop.f32.mrb[37].mxu1  ;;  %v1993_v61 = vadd.f32 %v1977_v56, %v5973_v50  ;;  %4777 = vmatprep.subr.bf16.mxu0 %v4776_v48 }
 0x7c4   : > { %v5034_v8 = vpop.eup %5033  ;;  %v1957_v63 = vmul.f32 1.442695, %v1933_v49  ;;  %v1902_v62 = vadd.f32 %v5929_v31, %v1828_v58 }
 0x7c5   : > { %3314 = vst [vmem:[%s5935_s29 + $0x48] sm:$0xff] %v6040_v60  ;;  %4239 = vmatprep.mubr.f32.mxu0 %v1993_v61  ;;  %v1978_v0 = vmul.f32 %v5034_v8, %v1914_v53  ;;  %v1919_v53 = vld [vmem:[%s5965_s13 + $0x50] sm:$0xff] }
 0x7c6   : > { %5039 = vpow2.f32 %v1957_v63  ;;  %v1934_v50 = vmul.f32 0.5, %v1902_v62  ;;  %3330 = vst [vmem:[%s5942_s10 + $0x48] sm:$0xff] %v1902_v62  ;;  %v1832_v1 = vpop.f32.mrb[38].mxu1  ;;  %4779 = vmatpush3.bf16.msra.mxu0 %v4776_v48  ;;  %v1918_v48 = vld [vmem:[%s5965_s13 + $0x48] sm:$0xff] }
 0x7c7   : > { %v6055_v7 = vadd.f32 %v5924_v30, %v1832_v1  ;;  %v1834_v5 = vpop.f32.mrb[39].mxu1  ;;  %v1994_v13 = vadd.f32 %v1978_v0, %v5981_v9  ;;  %4781 = vmatprep.subr.bf16.mxu0 %v4780_v59  ;;  %v1920_v0 = vld [vmem:[%s5965_s13 + $0x58] sm:$0xff] }
 0x7c8   : > { %v5036_v15 = vpop.eup %5035  ;;  %v1959_v17 = vmul.f32 1.442695, %v1934_v50  ;;  %v1903_v18 = vadd.f32 %v5929_v31, %v1834_v5 }
 0x7c9   : > { %3315 = vst [vmem:[%s5935_s29 + $0x50] sm:$0xff] %v6055_v7  ;;  %4240 = vmatmul.mubr.f32.gmra.mrb[68].mxu0 %v1994_v13  ;;  %v1979_v54 = vmul.f32 %v5036_v15, %v1915_v6 }
 0x7ca   : > { %5041 = vpow2.f32 %v1959_v17  ;;  %v1935_v9 = vmul.f32 0.5, %v1903_v18  ;;  %3331 = vst [vmem:[%s5942_s10 + $0x50] sm:$0xff] %v1903_v18  ;;  %v1838_v55 = vpop.f32.mrb[40].mxu1  ;;  %4783 = vmatpush3.bf16.msra.mxu0 %v4780_v59  ;;  %v1921_v17 = vld [vmem:[%s5965_s13 + $0x60] sm:$0xff] }
 0x7cb   : > { %v6070_v26 = vadd.f32 %v5924_v30, %v1838_v55  ;;  %v1840_v27 = vpop.f32.mrb[41].mxu1  ;;  %v1995_v2 = vadd.f32 %v1979_v54, %v5995_v16  ;;  %4785 = vmatprep.subr.bf16.mxu0 %v4784_v14  ;;  %v1923_v55 = vld [vmem:[%s5965_s13 + $0x70] sm:$0xff] }
 0x7cc   : > { %v5038_v11 = vpop.eup %5037  ;;  %v1961_v33 = vmul.f32 1.442695, %v1935_v9  ;;  %v1904_v22 = vadd.f32 %v5929_v31, %v1840_v27 }
 0x7cd   : > { %3316 = vst [vmem:[%s5935_s29 + $0x58] sm:$0xff] %v6070_v26  ;;  %4242 = vmatprep.mubr.f32.mxu0 %v1995_v2  ;;  %v1980_v32 = vmul.f32 %v5038_v11, %v1916_v21 }
 0x7ce   : > { %5043 = vpow2.f32 %v1961_v33  ;;  %v1936_v34 = vmul.f32 0.5, %v1904_v22  ;;  %3332 = vst [vmem:[%s5942_s10 + $0x58] sm:$0xff] %v1904_v22  ;;  %v1844_v35 = vpop.f32.mrb[42].mxu1  ;;  %4787 = vmatpush3.bf16.msra.mxu0 %v4784_v14 }
 0x7cf   : > { %v6079_v16 = vadd.f32 %v5924_v30, %v1844_v35  ;;  %v1846_v38 = vpop.f32.mrb[43].mxu1  ;;  %v1996_v3 = vadd.f32 %v1980_v32, %v6010_v29  ;;  %4789 = vmatprep.subr.bf16.mxu0 %v4788_v10  ;;  %v2201_v32 = vld [vmem:[%s6519_s3 + $0x498] sm:$0xff] }
 0x7d0   : > { %v5040_v39 = vpop.eup %5039  ;;  %v1963_v42 = vmul.f32 1.442695, %v1936_v34  ;;  %v1905_v44 = vadd.f32 %v5929_v31, %v1846_v38  ;;  %v2202_v34 = vld [vmem:[%s6519_s3 + $0x4e8] sm:$0xff]  ;;  %v2371_v38 = vld [vmem:[%s6519_s3 + $0xe0] sm:$0xff] }
 0x7d1   : > { %3317 = vst [vmem:[%s5935_s29 + $0x60] sm:$0xff] %v6079_v16  ;;  %4243 = vmatmul.mubr.f32.gmra.mrb[70].mxu0 %v1996_v3  ;;  %v1981_v25 = vmul.f32 %v5040_v39, %v1917_v37  ;;  %v4792_v35 = vpack.c.bf16 %v2202_v34, %v2201_v32  ;;  %v2369_v37 = vld [vmem:[%s6519_s3 + $0x40] sm:$0xff]  ;;  %v2372_v39 = vld [vmem:[%s6519_s3 + $0x130] sm:$0xff] }
 0x7d2   : > { %5045 = vpow2.f32 %v1963_v42  ;;  %v1937_v45 = vmul.f32 0.5, %v1905_v44  ;;  %3333 = vst [vmem:[%s5942_s10 + $0x60] sm:$0xff] %v1905_v44  ;;  %v1850_v47 = vpop.f32.mrb[44].mxu1  ;;  %4791 = vmatpush3.bf16.msra.mxu0 %v4788_v10  ;;  %v1924_v10 = vld [vmem:[%s5965_s13 + $0x78] sm:$0xff]  ;;  %v4800_v42 = vpack.c.bf16 %v2372_v39, %v2371_v38  ;;  %v2373_v44 = vld [vmem:[%s6519_s3 + $0x180] sm:$0xff] }
 0x7d3   : > { %v1885_v29 = vadd.f32 %v5924_v30, %v1850_v47  ;;  %v1852_v43 = vpop.f32.mrb[45].mxu1  ;;  %v1997_v28 = vadd.f32 %v1981_v25, %v6025_v36  ;;  %4793 = vmatprep.subr.bf16.mxu0 %v4792_v35  ;;  %v2374_v25 = vld [vmem:[%s6519_s3 + $0x1d0] sm:$0xff]  ;;  %v2375_v47 = vld [vmem:[%s6519_s3 + $0x220] sm:$0xff] }
 0x7d4   : > { %v5042_v46 = vpop.eup %5041  ;;  %v1965_v51 = vmul.f32 1.442695, %v1937_v45  ;;  %v1906_v52 = vadd.f32 %v5929_v31, %v1852_v43  ;;  %v4804_v45 = vpack.c.bf16 %v2374_v25, %v2373_v44  ;;  %v2377_v43 = vld [vmem:[%s6519_s3 + $0x2c0] sm:$0xff] }
 0x7d5   : > { %3318 = vst [vmem:[%s5935_s29 + $0x68] sm:$0xff] %v1885_v29  ;;  %4245 = vmatprep.mubr.f32.mxu0 %v1997_v28  ;;  %v1982_v56 = vmul.f32 %v5042_v46, %v1918_v48  ;;  %v2376_v48 = vld [vmem:[%s6519_s3 + $0x270] sm:$0xff] }
 0x7d6   : > { %5047 = vpow2.f32 %v1965_v51  ;;  %v1938_v49 = vmul.f32 0.5, %v1906_v52  ;;  %3334 = vst [vmem:[%s5942_s10 + $0x68] sm:$0xff] %v1906_v52  ;;  %v1856_v57 = vpop.f32.mrb[46].mxu1  ;;  %4795 = vmatpush3.bf16.msra.mxu0 %v4792_v35  ;;  %v2378_v28 = vld [vmem:[%s6519_s3 + $0x310] sm:$0xff]  ;;  %v2379_v51 = vld [vmem:[%s6519_s3 + $0x360] sm:$0xff] }
 0x7d7   : > { %v1886_v58 = vadd.f32 %v5924_v30, %v1856_v57  ;;  %v1858_v61 = vpop.f32.mrb[47].mxu1  ;;  %v1998_v36 = vadd.f32 %v1982_v56, %v6040_v60  ;;  %v4812_v46 = vpack.c.bf16 %v2378_v28, %v2377_v43  ;;  %v2380_v52 = vld [vmem:[%s6519_s3 + $0x3b0] sm:$0xff]  ;;  %v2551_v28 = vld [vmem:[%s6519_s3 + $0x48] sm:$0xff] }
 0x7d8   : > { %v5044_v59 = vpop.eup %5043  ;;  %v1967_v8 = vmul.f32 1.442695, %v1938_v49  ;;  %v1907_v63 = vadd.f32 %v5929_v31, %v1858_v61  ;;  %v4816_v56 = vpack.c.bf16 %v2380_v52, %v2379_v51  ;;  %v2381_v49 = vld [vmem:[%s6519_s3 + $0x400] sm:$0xff]  ;;  %v2382_v57 = vld [vmem:[%s6519_s3 + $0x450] sm:$0xff]  ;;  %v2553_v51 = vld [vmem:[%s6519_s3 + $0xe8] sm:$0xff] }
 0x7d9   : > { %3319 = vst [vmem:[%s5935_s29 + $0x70] sm:$0xff] %v1886_v58  ;;  %4246 = vmatmul.mubr.f32.gmra.mrb[72].mxu0 %v1998_v36  ;;  %v1983_v62 = vmul.f32 %v5044_v59, %v1919_v53  ;;  %v4820_v53 = vpack.c.bf16 %v2382_v57, %v2381_v49  ;;  %v2384_v61 = vld [vmem:[%s6519_s3 + $0x4f0] sm:$0xff]  ;;  %v3510_v59 = vld [vmem:[%s6520_s4 + $0x5] ss:$0 sm:$0xff]  ;;  %v2555_v57 = vld [vmem:[%s6519_s3 + $0x188] sm:$0xff] }
 0x7da   : > { %5049 = vpow2.f32 %v1967_v8  ;;  %v1939_v12 = vmul.f32 0.5, %v1907_v63  ;;  %3335 = vst [vmem:[%s5942_s10 + $0x70] sm:$0xff] %v1907_v63  ;;  %v1862_v4 = vpop.f32.mrb[48].mxu1 }
 0x7db   : > { %v1887_v50 = vadd.f32 %v5924_v30, %v1862_v4  ;;  %v1864_v1 = vpop.f32.mrb[49].mxu1  ;;  %v1999_v60 = vadd.f32 %v1983_v62, %v6055_v7 }
 0x7dc   : > { %v5046_v6 = vpop.eup %5045  ;;  %v1969_v5 = vmul.f32 1.442695, %v1939_v12  ;;  %v1908_v13 = vadd.f32 %v5929_v31, %v1864_v1 }
 0x7dd   : > { %3320 = vst [vmem:[%s5935_s29 + $0x78] sm:$0xff] %v1887_v50  ;;  %4248 = vmatprep.mubr.f32.mxu0 %v1999_v60  ;;  %v1984_v14 = vmul.f32 %v5046_v6, %v1920_v0 }
 0x7de   : > { %5051 = vpow2.f32 %v1969_v5  ;;  %v1940_v15 = vmul.f32 0.5, %v1908_v13  ;;  %3336 = vst [vmem:[%s5942_s10 + $0x78] sm:$0xff] %v1908_v13 }
 0x7df   : > { %v2000_v18 = vadd.f32 %v1984_v14, %v6070_v26 }
 0x7e0   : > { %v5048_v30 = vpop.eup %5047  ;;  %v1971_v19 = vmul.f32 1.442695, %v1940_v15 }
 0x7e1   : > { %4249 = vmatmul.mubr.f32.gmra.mrb[74].mxu0 %v2000_v18  ;;  %v1985_v7 = vmul.f32 %v5048_v30, %v1921_v17 }
 0x7e2   : > { %5053 = vpow2.f32 %v1971_v19 }
 0x7e3   : > { %v2001_v54 = vadd.f32 %v1985_v7, %v6079_v16  ;;  %v2370_v16 = vld [vmem:[%s6519_s3 + $0x90] sm:$0xff] }
 0x7e4   : > { %v5050_v31 = vpop.eup %5049  ;;  %v4796_v3 = vpack.c.bf16 %v2370_v16, %v2369_v37 }
 0x7e5   : > { %4251 = vmatprep.mubr.f32.mxu0 %v2001_v54  ;;  %v1986_v9 = vmul.f32 %v5050_v31, %v1922_v20 }
 0x7e6   : > { %4797 = vmatprep.subr.bf16.mxu1 %v4796_v3 }
 0x7e7   : > { %v2002_v21 = vadd.f32 %v1986_v9, %v1885_v29  ;;  %4799 = vmatpush3.bf16.msra.mxu1 %v4796_v3  ;;  %v4808_v29 = vpack.c.bf16 %v2376_v48, %v2375_v47 }
 0x7e8   : > { %v5052_v27 = vpop.eup %5051  ;;  %4801 = vmatprep.subr.bf16.mxu1 %v4800_v42 }
 0x7e9   : > { %4252 = vmatmul.mubr.f32.gmra.mrb[76].mxu0 %v2002_v21  ;;  %v1987_v2 = vmul.f32 %v5052_v27, %v1923_v55 }
 0x7eb   : > { %v2003_v11 = vadd.f32 %v1987_v2, %v1886_v58  ;;  %4803 = vmatpush3.bf16.msra.mxu1 %v4800_v42  ;;  %v2383_v58 = vld [vmem:[%s6519_s3 + $0x4a0] sm:$0xff] }
 0x7ec   : > { %v5054_v26 = vpop.eup %5053  ;;  %4805 = vmatprep.subr.bf16.mxu1 %v4804_v45  ;;  %v4824_v36 = vpack.c.bf16 %v2384_v61, %v2383_v58  ;;  %v2557_v61 = vld [vmem:[%s6519_s3 + $0x228] sm:$0xff] }
 0x7ed   : > { %4254 = vmatprep.mubr.f32.mxu0 %v2003_v11  ;;  %v1988_v33 = vmul.f32 %v5054_v26, %v1924_v10 }
 0x7ef   : > { %v2004_v22 = vadd.f32 %v1988_v33, %v1887_v50  ;;  %4807 = vmatpush3.bf16.msra.mxu1 %v4804_v45 }
 0x7f0   : > { %4809 = vmatprep.subr.bf16.mxu1 %v4808_v29 }
 0x7f1   : > { %4255 = vmatmul.mubr.f32.gmra.mrb[78].mxu0 %v2004_v22 }
 0x7f3   : > { %4811 = vmatpush3.bf16.msra.mxu1 %v4808_v29 }
 0x7f4   : > { %4813 = vmatprep.subr.bf16.mxu1 %v4812_v46 }
 0x7f7   : > { %4815 = vmatpush3.bf16.msra.mxu1 %v4812_v46  ;;  %v2552_v46 = vld [vmem:[%s6519_s3 + $0x98] sm:$0xff] }
 0x7f8   : > { %4817 = vmatprep.subr.bf16.mxu1 %v4816_v56  ;;  %v4828_v52 = vpack.c.bf16 %v2552_v46, %v2551_v28 }
 0x7fa   : > { %4829 = vmatprep.subr.bf16.mxu0 %v4828_v52 }
 0x7fb   : > { %4819 = vmatpush3.bf16.msra.mxu1 %v4816_v56  ;;  %v2554_v56 = vld [vmem:[%s6519_s3 + $0x138] sm:$0xff] }
 0x7fc   : > { %4821 = vmatprep.subr.bf16.mxu1 %v4820_v53  ;;  %v4832_v49 = vpack.c.bf16 %v2554_v56, %v2553_v51 }
 0x7ff   : > { %4823 = vmatpush3.bf16.msra.mxu1 %v4820_v53  ;;  %v2556_v53 = vld [vmem:[%s6519_s3 + $0x1d8] sm:$0xff] }
 0x800   : > { %4825 = vmatprep.subr.bf16.mxu1 %v4824_v36  ;;  %v4836_v58 = vpack.c.bf16 %v2556_v53, %v2555_v57 }
 0x803   : > { %4827 = vmatpush3.bf16.msra.mxu1 %v4824_v36  ;;  %v2558_v36 = vld [vmem:[%s6519_s3 + $0x278] sm:$0xff] }
 0x804   : > { %4860 = vmatprep.subr.bf16.mxu1 %v5175_v40 }
 0x88c   : > { %v4235_v8 = vpop.f32.mrb[64].mxu0 }
 0x88d   : > { %v2098_v63 = vadd.f32 %v4235_v8, %v3510_v59  ;;  %v2092_v62 = vpop.f32.mrb[65].mxu0  ;;  %v2559_v8 = vld [vmem:[%s6519_s3 + $0x2c8] sm:$0xff] }
 0x88e   : > { %v2093_v12 = vadd.f32 %v3510_v59, %v2092_v62 }
 0x88f   : > { %v2172_v0 = vmax.f32 %v2098_v63, 0.0  ;;  %v2560_v63 = vld [vmem:[%s6519_s3 + $0x318] sm:$0xff] }
 0x890   : > { %v2171_v4 = vmax.f32 %v2093_v12, 0.0  ;;  %v4844_v62 = vpack.c.bf16 %v2560_v63, %v2559_v8  ;;  %v2561_v12 = vld [vmem:[%s6519_s3 + $0x368] sm:$0xff]  ;;  %v3512_v63 = vld [vmem:[%s6520_s4 + $0x7] ss:$0 sm:$0xff] }
 0x892   : > { %4289 = vmatprep.mubr.f32.mxu0 %v2171_v4  ;;  %v2562_v4 = vld [vmem:[%s6519_s3 + $0x3b8] sm:$0xff] }
 0x893   : > { %4290 = vmatmul.mubr.f32.vlgmr.msra.gmra.mrb[80].mxu0 %v2172_v0  ;;  %v4848_v0 = vpack.c.bf16 %v2562_v4, %v2561_v12 }
 0x894   : > { %v4238_v50 = vpop.f32.mrb[66].mxu0  ;;  %4831 = vmatpush3.bf16.msra.mxu0 %v4828_v52 }
 0x895   : > { %v2108_v1 = vadd.f32 %v4238_v50, %v3510_v59  ;;  %v2102_v60 = vpop.f32.mrb[67].mxu0  ;;  %4833 = vmatprep.subr.bf16.mxu0 %v4832_v49  ;;  %v2563_v50 = vld [vmem:[%s6519_s3 + $0x408] sm:$0xff] }
 0x896   : > { %v2103_v6 = vadd.f32 %v3510_v59, %v2102_v60 }
 0x897   : > { %v2174_v13 = vmax.f32 %v2108_v1, 0.0  ;;  %v2564_v1 = vld [vmem:[%s6519_s3 + $0x458] sm:$0xff] }
 0x898   : > { %v2173_v5 = vmax.f32 %v2103_v6, 0.0  ;;  %4835 = vmatpush3.bf16.msra.mxu0 %v4832_v49  ;;  %v4852_v60 = vpack.c.bf16 %v2564_v1, %v2563_v50  ;;  %v3511_v6 = vld [vmem:[%s6520_s4 + $0x6] ss:$0 sm:$0xff] }
 0x899   : > { %4837 = vmatprep.subr.bf16.mxu0 %v4836_v58 }
 0x89a   : > { %4292 = vmatprep.mubr.f32.mxu0 %v2173_v5 }
 0x89b   : > { %4293 = vmatmul.mubr.f32.gmra.mrb[82].mxu0 %v2174_v13 }
 0x89c   : > { %v4241_v14 = vpop.f32.mrb[68].mxu0  ;;  %4839 = vmatpush3.bf16.msra.mxu0 %v4836_v58 }
 0x89d   : > { %v2118_v15 = vadd.f32 %v4241_v14, %v3510_v59  ;;  %v2112_v17 = vpop.f32.mrb[69].mxu0 }
 0x89e   : > { %v2113_v18 = vadd.f32 %v3510_v59, %v2112_v17 }
 0x89f   : > { %v2176_v19 = vmax.f32 %v2118_v15, 0.0 }
 0x8a0   : > { %v2175_v30 = vmax.f32 %v2113_v18, 0.0 }
 0x8a2   : > { %4295 = vmatprep.mubr.f32.mxu0 %v2175_v30 }
 0x8a3   : > { %4296 = vmatmul.mubr.f32.gmra.mrb[84].mxu0 %v2176_v19 }
 0x8a4   : > { %v4244_v7 = vpop.f32.mrb[70].mxu0 }
 0x8a5   : > { %v2128_v20 = vadd.f32 %v4244_v7, %v3510_v59  ;;  %v2122_v54 = vpop.f32.mrb[71].mxu0 }
 0x8a6   : > { %v2123_v31 = vadd.f32 %v3510_v59, %v2122_v54 }
 0x8a7   : > { %v2178_v55 = vmax.f32 %v2128_v20, 0.0 }
 0x8a8   : > { %v2177_v9 = vmax.f32 %v2123_v31, 0.0 }
 0x8aa   : > { %4298 = vmatprep.mubr.f32.mxu0 %v2177_v9 }
 0x8ab   : > { %4299 = vmatmul.mubr.f32.gmra.mrb[86].mxu0 %v2178_v55 }
 0x8ac   : > { %v4247_v21 = vpop.f32.mrb[72].mxu0 }
 0x8ad   : > { %v2138_v27 = vadd.f32 %v4247_v21, %v3510_v59  ;;  %v2132_v2 = vpop.f32.mrb[73].mxu0 }
 0x8ae   : > { %v2133_v10 = vadd.f32 %v3510_v59, %v2132_v2 }
 0x8af   : > { %v2180_v26 = vmax.f32 %v2138_v27, 0.0 }
 0x8b0   : > { %v2179_v11 = vmax.f32 %v2133_v10, 0.0 }
 0x8b2   : > { %4301 = vmatprep.mubr.f32.mxu0 %v2179_v11 }
 0x8b3   : > { %4302 = vmatmul.mubr.f32.gmra.mrb[88].mxu0 %v2180_v26 }
 0x8b4   : > { %v4250_v33 = vpop.f32.mrb[74].mxu0 }
 0x8b5   : > { %v2148_v22 = vadd.f32 %v4250_v33, %v3510_v59  ;;  %v2142_v32 = vpop.f32.mrb[75].mxu0 }
 0x8b6   : > { %v2143_v34 = vadd.f32 %v3510_v59, %v2142_v32 }
 0x8b7   : > { %v2182_v37 = vmax.f32 %v2148_v22, 0.0 }
 0x8b8   : > { %v2181_v35 = vmax.f32 %v2143_v34, 0.0 }
 0x8ba   : > { %4304 = vmatprep.mubr.f32.mxu0 %v2181_v35 }
 0x8bb   : > { %4305 = vmatmul.mubr.f32.gmra.mrb[90].mxu0 %v2182_v37 }
 0x8bc   : > { %v4253_v16 = vpop.f32.mrb[76].mxu0 }
 0x8bd   : > { %v2158_v38 = vadd.f32 %v4253_v16, %v3510_v59  ;;  %v2152_v3 = vpop.f32.mrb[77].mxu0 }
 0x8be   : > { %v2153_v39 = vadd.f32 %v3510_v59, %v2152_v3 }
 0x8bf   : > { %v2184_v44 = vmax.f32 %v2158_v38, 0.0 }
 0x8c0   : > { %v2183_v42 = vmax.f32 %v2153_v39, 0.0 }
 0x8c2   : > { %4307 = vmatprep.mubr.f32.mxu0 %v2183_v42 }
 0x8c3   : > { %4308 = vmatmul.mubr.f32.gmra.mrb[92].mxu0 %v2184_v44 }
 0x8c4   : > { %v4256_v25 = vpop.f32.mrb[78].mxu0 }
 0x8c5   : > { %v2168_v45 = vadd.f32 %v4256_v25, %v3510_v59  ;;  %v2162_v47 = vpop.f32.mrb[79].mxu0 }
 0x8c6   : > { %v2163_v48 = vadd.f32 %v3510_v59, %v2162_v47  ;;  %v4840_v59 = vpack.c.bf16 %v2558_v36, %v2557_v61  ;;  %v2565_v36 = vld [vmem:[%s6519_s3 + $0x4a8] sm:$0xff] }
 0x8c7   : > { %v2186_v43 = vmax.f32 %v2168_v45, 0.0 }
 0x8c8   : > { %v2185_v29 = vmax.f32 %v2163_v48, 0.0  ;;  %4841 = vmatprep.subr.bf16.mxu0 %v4840_v59 }
 0x8c9   : > { %4843 = vmatpush3.bf16.msra.mxu0 %v4840_v59  ;;  %v2566_v59 = vld [vmem:[%s6519_s3 + $0x4f8] sm:$0xff] }
 0x8ca   : > { %4310 = vmatprep.mubr.f32.mxu0 %v2185_v29  ;;  %4845 = vmatprep.subr.bf16.mxu0 %v4844_v62  ;;  %v4856_v8 = vpack.c.bf16 %v2566_v59, %v2565_v36 }
 0x8cb   : > { %4311 = vmatmul.mubr.f32.gmra.mrb[94].mxu0 %v2186_v43 }
 0x8cd   : > { %4847 = vmatpush3.bf16.msra.mxu0 %v4844_v62 }
 0x8ce   : > { %4849 = vmatprep.subr.bf16.mxu0 %v4848_v0 }
 0x8d1   : > { %4851 = vmatpush3.bf16.msra.mxu0 %v4848_v0 }
 0x8d2   : > { %4853 = vmatprep.subr.bf16.mxu0 %v4852_v60 }
 0x8d5   : > { %4855 = vmatpush3.bf16.msra.mxu0 %v4852_v60 }
 0x8d6   : > { %4857 = vmatprep.subr.bf16.mxu0 %v4856_v8 }
 0x8d9   : > { %4859 = vmatpush3.bf16.msra.mxu0 %v4856_v8 }
 0x966   : > { %v4291_v5 = vpop.f32.mrb[80].mxu0 }
 0x967   : > { %v2280_v13 = vadd.f32 %v4291_v5, %v3511_v6  ;;  %v2274_v14 = vpop.f32.mrb[81].mxu0 }
 0x968   : > { %v2275_v15 = vadd.f32 %v3511_v6, %v2274_v14 }
 0x969   : > { %v2354_v18 = vmax.f32 %v2280_v13, 0.0 }
 0x96a   : > { %v2353_v17 = vmax.f32 %v2275_v15, 0.0 }
 0x96c   : > { %4345 = vmatprep.mubr.f32.mxu1 %v2353_v17 }
 0x96d   : > { %4346 = vmatmul.mubr.f32.vlgmr.msra.gmra.mrb[50].mxu1 %v2354_v18 }
 0x96e   : > { %v4294_v30 = vpop.f32.mrb[82].mxu0 }
 0x96f   : > { %v2290_v19 = vadd.f32 %v4294_v30, %v3511_v6  ;;  %v2284_v7 = vpop.f32.mrb[83].mxu0 }
 0x970   : > { %v2285_v20 = vadd.f32 %v3511_v6, %v2284_v7 }
 0x971   : > { %v2356_v31 = vmax.f32 %v2290_v19, 0.0 }
 0x972   : > { %v2355_v54 = vmax.f32 %v2285_v20, 0.0 }
 0x974   : > { %4348 = vmatprep.mubr.f32.mxu1 %v2355_v54 }
 0x975   : > { %4349 = vmatmul.mubr.f32.gmra.mrb[52].mxu1 %v2356_v31 }
 0x976   : > { %v4297_v9 = vpop.f32.mrb[84].mxu0 }
 0x977   : > { %v2300_v55 = vadd.f32 %v4297_v9, %v3511_v6  ;;  %v2294_v21 = vpop.f32.mrb[85].mxu0 }
 0x978   : > { %v2295_v27 = vadd.f32 %v3511_v6, %v2294_v21 }
 0x979   : > { %v2358_v10 = vmax.f32 %v2300_v55, 0.0 }
 0x97a   : > { %v2357_v2 = vmax.f32 %v2295_v27, 0.0 }
 0x97c   : > { %4351 = vmatprep.mubr.f32.mxu1 %v2357_v2 }
 0x97d   : > { %4352 = vmatmul.mubr.f32.gmra.mrb[54].mxu1 %v2358_v10 }
 0x97e   : > { %v4300_v11 = vpop.f32.mrb[86].mxu0 }
 0x97f   : > { %v2310_v26 = vadd.f32 %v4300_v11, %v3511_v6  ;;  %v2304_v33 = vpop.f32.mrb[87].mxu0 }
 0x980   : > { %v2305_v22 = vadd.f32 %v3511_v6, %v2304_v33 }
 0x981   : > { %v2360_v34 = vmax.f32 %v2310_v26, 0.0 }
 0x982   : > { %v2359_v32 = vmax.f32 %v2305_v22, 0.0 }
 0x984   : > { %4354 = vmatprep.mubr.f32.mxu1 %v2359_v32 }
 0x985   : > { %4355 = vmatmul.mubr.f32.gmra.mrb[56].mxu1 %v2360_v34 }
 0x986   : > { %v4303_v35 = vpop.f32.mrb[88].mxu0 }
 0x987   : > { %v2320_v37 = vadd.f32 %v4303_v35, %v3511_v6  ;;  %v2314_v16 = vpop.f32.mrb[89].mxu0 }
 0x988   : > { %v2315_v38 = vadd.f32 %v3511_v6, %v2314_v16 }
 0x989   : > { %v2362_v39 = vmax.f32 %v2320_v37, 0.0 }
 0x98a   : > { %v2361_v3 = vmax.f32 %v2315_v38, 0.0 }
 0x98c   : > { %4357 = vmatprep.mubr.f32.mxu1 %v2361_v3 }
 0x98d   : > { %4358 = vmatmul.mubr.f32.gmra.mrb[58].mxu1 %v2362_v39 }
 0x98e   : > { %v4306_v42 = vpop.f32.mrb[90].mxu0 }
 0x98f   : > { %v2330_v44 = vadd.f32 %v4306_v42, %v3511_v6  ;;  %v2324_v25 = vpop.f32.mrb[91].mxu0 }
 0x990   : > { %v2325_v45 = vadd.f32 %v3511_v6, %v2324_v25 }
 0x991   : > { %v2364_v48 = vmax.f32 %v2330_v44, 0.0 }
 0x992   : > { %v2363_v47 = vmax.f32 %v2325_v45, 0.0 }
 0x994   : > { %4360 = vmatprep.mubr.f32.mxu1 %v2363_v47 }
 0x995   : > { %4361 = vmatmul.mubr.f32.gmra.mrb[60].mxu1 %v2364_v48 }
 0x996   : > { %v4309_v29 = vpop.f32.mrb[92].mxu0 }
 0x997   : > { %v2340_v43 = vadd.f32 %v4309_v29, %v3511_v6  ;;  %v2334_v28 = vpop.f32.mrb[93].mxu0 }
 0x998   : > { %v2335_v46 = vadd.f32 %v3511_v6, %v2334_v28 }
 0x999   : > { %v2366_v52 = vmax.f32 %v2340_v43, 0.0 }
 0x99a   : > { %v2365_v51 = vmax.f32 %v2335_v46, 0.0  ;;  %v6227_v46 = vld [vmem:[%s6521_s5 + $0x2] ss:$0 sm:$0xff] }
 0x99c   : > { %4363 = vmatprep.mubr.f32.mxu1 %v2365_v51 }
 0x99d   : > { %4364 = vmatmul.mubr.f32.gmra.mrb[62].mxu1 %v2366_v52 }
 0x99e   : > { %v4312_v56 = vpop.f32.mrb[94].mxu0 }
 0x99f   : > { %v2350_v49 = vadd.f32 %v4312_v56, %v3511_v6  ;;  %v2344_v57 = vpop.f32.mrb[95].mxu0 }
 0x9a0   : > { %v2345_v53 = vadd.f32 %v3511_v6, %v2344_v57 }
 0x9a1   : > { %v2368_v61 = vmax.f32 %v2350_v49, 0.0 }
 0x9a2   : > { %v2367_v58 = vmax.f32 %v2345_v53, 0.0 }
 0x9a4   : > { %4366 = vmatprep.mubr.f32.mxu1 %v2367_v58 }
 0x9a5   : > { %4367 = vmatmul.mubr.f32.gmra.mrb[64].mxu1 %v2368_v61 }
 0x9a6   : > { %4457 = vmatprep.mubr.msk.f32.mxu1 %vm5176_vm0, %v5177_v41 }
 0xa40   : > { %v4347_v62 = vpop.f32.mrb[50].mxu1 }
 0xa41   : > { %v2462_v12 = vadd.f32 %v4347_v62, %v3512_v63  ;;  %v2456_v4 = vpop.f32.mrb[51].mxu1 }
 0xa42   : > { %v2457_v0 = vadd.f32 %v3512_v63, %v2456_v4 }
 0xa43   : > { %v2536_v50 = vmax.f32 %v2462_v12, 0.0 }
 0xa44   : > { %v2535_v41 = vmax.f32 %v2457_v0, 0.0 }
 0xa46   : > { %4401 = vmatprep.mubr.f32.mxu0 %v2535_v41 }
 0xa47   : > { %4402 = vmatmul.mubr.f32.vlgmr.msra.gmra.mrb[96].mxu0 %v2536_v50 }
 0xa48   : > { %v4350_v1 = vpop.f32.mrb[52].mxu1 }
 0xa49   : > { %v2472_v60 = vadd.f32 %v4350_v1, %v3512_v63  ;;  %v2466_v6 = vpop.f32.mrb[53].mxu1 }
 0xa4a   : > { %v2467_v5 = vadd.f32 %v3512_v63, %v2466_v6 }
 0xa4b   : > { %v2538_v14 = vmax.f32 %v2472_v60, 0.0 }
 0xa4c   : > { %v2537_v13 = vmax.f32 %v2467_v5, 0.0 }
 0xa4e   : > { %4404 = vmatprep.mubr.f32.mxu0 %v2537_v13 }
 0xa4f   : > { %4405 = vmatmul.mubr.f32.gmra.mrb[98].mxu0 %v2538_v14 }
 0xa50   : > { %v4353_v15 = vpop.f32.mrb[54].mxu1 }
 0xa51   : > { %v2482_v17 = vadd.f32 %v4353_v15, %v3512_v63  ;;  %v2476_v18 = vpop.f32.mrb[55].mxu1 }
 0xa52   : > { %v2477_v30 = vadd.f32 %v3512_v63, %v2476_v18 }
 0xa53   : > { %v2540_v7 = vmax.f32 %v2482_v17, 0.0 }
 0xa54   : > { %v2539_v19 = vmax.f32 %v2477_v30, 0.0 }
 0xa56   : > { %4407 = vmatprep.mubr.f32.mxu0 %v2539_v19 }
 0xa57   : > { %4408 = vmatmul.mubr.f32.gmra.mrb[100].mxu0 %v2540_v7 }
 0xa58   : > { %v4356_v20 = vpop.f32.mrb[56].mxu1 }
 0xa59   : > { %v2492_v54 = vadd.f32 %v4356_v20, %v3512_v63  ;;  %v2486_v31 = vpop.f32.mrb[57].mxu1 }
 0xa5a   : > { %v2487_v9 = vadd.f32 %v3512_v63, %v2486_v31 }
 0xa5b   : > { %v2542_v21 = vmax.f32 %v2492_v54, 0.0 }
 0xa5c   : > { %v2541_v55 = vmax.f32 %v2487_v9, 0.0 }
 0xa5e   : > { %4410 = vmatprep.mubr.f32.mxu0 %v2541_v55 }
 0xa5f   : > { %4411 = vmatmul.mubr.f32.gmra.mrb[102].mxu0 %v2542_v21 }
 0xa60   : > { %v4359_v27 = vpop.f32.mrb[58].mxu1 }
 0xa61   : > { %v2502_v2 = vadd.f32 %v4359_v27, %v3512_v63  ;;  %v2496_v10 = vpop.f32.mrb[59].mxu1 }
 0xa62   : > { %v2497_v11 = vadd.f32 %v3512_v63, %v2496_v10 }
 0xa63   : > { %v2544_v33 = vmax.f32 %v2502_v2, 0.0 }
 0xa64   : > { %v2543_v26 = vmax.f32 %v2497_v11, 0.0 }
 0xa66   : > { %4413 = vmatprep.mubr.f32.mxu0 %v2543_v26  ;;  %v2568_v26 = vld [vmem:[%s6521_s5 + $0x3] sm:$0x1] }
 0xa67   : > { %4414 = vmatmul.mubr.f32.gmra.mrb[104].mxu0 %v2544_v33 }
 0xa68   : > { %v4362_v22 = vpop.f32.mrb[60].mxu1 }
 0xa69   : > { %v2512_v32 = vadd.f32 %v4362_v22, %v3512_v63  ;;  %v2506_v34 = vpop.f32.mrb[61].mxu1 }
 0xa6a   : > { %v2507_v35 = vadd.f32 %v3512_v63, %v2506_v34 }
 0xa6b   : > { %v2546_v16 = vmax.f32 %v2512_v32, 0.0 }
 0xa6c   : > { %v2545_v37 = vmax.f32 %v2507_v35, 0.0 }
 0xa6e   : > { %4416 = vmatprep.mubr.f32.mxu0 %v2545_v37 }
 0xa6f   : > { %4417 = vmatmul.mubr.f32.gmra.mrb[106].mxu0 %v2546_v16 }
 0xa70   : > { %v4365_v38 = vpop.f32.mrb[62].mxu1 }
 0xa71   : > { %v2522_v3 = vadd.f32 %v4365_v38, %v3512_v63  ;;  %v2516_v39 = vpop.f32.mrb[63].mxu1 }
 0xa72   : > { %v2517_v42 = vadd.f32 %v3512_v63, %v2516_v39 }
 0xa73   : > { %v2548_v25 = vmax.f32 %v2522_v3, 0.0 }
 0xa74   : > { %v2547_v44 = vmax.f32 %v2517_v42, 0.0 }
 0xa76   : > { %4419 = vmatprep.mubr.f32.mxu0 %v2547_v44 }
 0xa77   : > { %4420 = vmatmul.mubr.f32.gmra.mrb[108].mxu0 %v2548_v25 }
 0xa78   : > { %v4368_v45 = vpop.f32.mrb[64].mxu1 }
 0xa79   : > { %v2532_v47 = vadd.f32 %v4368_v45, %v3512_v63  ;;  %v2526_v48 = vpop.f32.mrb[65].mxu1 }
 0xa7a   : > { %v2527_v29 = vadd.f32 %v3512_v63, %v2526_v48 }
 0xa7b   : > { %v2550_v28 = vmax.f32 %v2532_v47, 0.0 }
 0xa7c   : > { %v2549_v43 = vmax.f32 %v2527_v29, 0.0 }
 0xa7e   : > { %4422 = vmatprep.mubr.f32.mxu0 %v2549_v43 }
 0xa7f   : > { %4423 = vmatmul.mubr.f32.gmra.mrb[110].mxu0 %v2550_v28 }
 0xb1a   : > { %v4403_v51 = vpop.f32.mrb[96].mxu0 }
 0xb1b   : > { %v2635_v52 = vpop.f32.mrb[97].mxu0  ;;  %v2719_v56 = vmul.f32 %v4403_v51, %v6227_v46 }
 0xb1c   : > { %v4861_v49 = vpack.c.bf16 %v4403_v51, %v2635_v52  ;;  %v2718_v57 = vmul.f32 %v6227_v46, %v2635_v52 }
 0xb1d   : > { %2736 = vadd.xlane.f32.xlu1 %v2719_v56 }
 0xb1e   : > { %4862 = vmatpush3.bf16.xpose.msra.mxu1 %v4861_v49  ;;  %4885 = vmatprep.subr.bf16.mxu0 %v4861_v49 }
 0xb1f   : > { %2734 = vadd.xlane.f32.xlu0 %v2718_v57  ;;  %4887 = vmatpush3.bf16.msra.mxu0 %v4861_v49  ;;  %v5151_v57 = vld [vmem:[%s6518_s2 + $0x8] sm:$0xff] }
 0xb20   : > { %4863 = vmatprep.subr.bf16.mxu1 %v5175_v40 }
 0xb22   : > { %v4406_v53 = vpop.f32.mrb[98].mxu0 }
 0xb23   : > { %v2645_v58 = vpop.f32.mrb[99].mxu0  ;;  %v2721_v61 = vmul.f32 %v4406_v53, %v6227_v46 }
 0xb24   : > { %v4864_v36 = vpack.c.bf16 %v4406_v53, %v2645_v58  ;;  %v2720_v59 = vmul.f32 %v6227_v46, %v2645_v58  ;;  %v5152_v58 = vld [vmem:[%s6518_s2] sm:$0xff] }
 0xb25   : > { %2740 = vadd.xlane.f32.xlu1 %v2721_v61 }
 0xb26   : > { %4865 = vmatpush3.bf16.xpose.msra.mxu1 %v4864_v36  ;;  %4889 = vmatprep.subr.bf16.mxu0 %v4864_v36 }
 0xb27   : > { %2738 = vadd.xlane.f32.xlu0 %v2720_v59  ;;  %4891 = vmatpush3.bf16.msra.mxu0 %v4864_v36 }
 0xb28   : > { %4866 = vmatprep.subr.bf16.mxu1 %v5175_v40 }
 0xb2a   : > { %v4409_v8 = vpop.f32.mrb[100].mxu0 }
 0xb2b   : > { %v2655_v63 = vpop.f32.mrb[101].mxu0  ;;  %v2723_v62 = vmul.f32 %v4409_v8, %v6227_v46 }
 0xb2c   : > { %v4867_v12 = vpack.c.bf16 %v4409_v8, %v2655_v63  ;;  %v2722_v4 = vmul.f32 %v6227_v46, %v2655_v63 }
 0xb2d   : > { %2744 = vadd.xlane.f32.xlu1 %v2723_v62 }
 0xb2e   : > { %4868 = vmatpush3.bf16.xpose.msra.mxu1 %v4867_v12  ;;  %4893 = vmatprep.subr.bf16.mxu0 %v4867_v12 }
 0xb2f   : > { %2742 = vadd.xlane.f32.xlu0 %v2722_v4  ;;  %4895 = vmatpush3.bf16.msra.mxu0 %v4867_v12 }
 0xb30   : > { %4869 = vmatprep.subr.bf16.mxu1 %v5175_v40 }
 0xb32   : > { %v4412_v0 = vpop.f32.mrb[102].mxu0 }
 0xb33   : > { %v2665_v41 = vpop.f32.mrb[103].mxu0  ;;  %v2725_v50 = vmul.f32 %v4412_v0, %v6227_v46 }
 0xb34   : > { %v4870_v1 = vpack.c.bf16 %v4412_v0, %v2665_v41  ;;  %v2724_v60 = vmul.f32 %v6227_v46, %v2665_v41  ;;  %v5153_v41 = vld [vmem:[%s6518_s2 + $0x18] sm:$0xff] }
 0xb35   : > { %2748 = vadd.xlane.f32.xlu1 %v2725_v50 }
 0xb36   : > { %4871 = vmatpush3.bf16.xpose.msra.mxu1 %v4870_v1  ;;  %4897 = vmatprep.subr.bf16.mxu0 %v4870_v1 }
 0xb37   : > { %2746 = vadd.xlane.f32.xlu0 %v2724_v60  ;;  %4899 = vmatpush3.bf16.msra.mxu0 %v4870_v1  ;;  %v5154_v1 = vld [vmem:[%s6518_s2 + $0x10] sm:$0xff] }
 0xb38   : > { %4872 = vmatprep.subr.bf16.mxu1 %v5175_v40 }
 0xb3a   : > { %v4415_v6 = vpop.f32.mrb[104].mxu0 }
 0xb3b   : > { %v2675_v5 = vpop.f32.mrb[105].mxu0  ;;  %v2727_v13 = vmul.f32 %v4415_v6, %v6227_v46 }
 0xb3c   : > { %v4873_v14 = vpack.c.bf16 %v4415_v6, %v2675_v5  ;;  %v2726_v15 = vmul.f32 %v6227_v46, %v2675_v5 }
 0xb3d   : > { %2752 = vadd.xlane.f32.xlu1 %v2727_v13 }
 0xb3e   : > { %4874 = vmatpush3.bf16.xpose.msra.mxu1 %v4873_v14  ;;  %4901 = vmatprep.subr.bf16.mxu0 %v4873_v14 }
 0xb3f   : > { %2750 = vadd.xlane.f32.xlu0 %v2726_v15  ;;  %4903 = vmatpush3.bf16.msra.mxu0 %v4873_v14  ;;  %v5155_v15 = vld [vmem:[%s6518_s2 + $0x28] sm:$0xff] }
 0xb40   : > { %4875 = vmatprep.subr.bf16.mxu1 %v5175_v40 }
 0xb42   : > { %v4418_v17 = vpop.f32.mrb[106].mxu0 }
 0xb43   : > { %v2685_v18 = vpop.f32.mrb[107].mxu0  ;;  %v2729_v30 = vmul.f32 %v4418_v17, %v6227_v46 }
 0xb44   : > { %v4876_v19 = vpack.c.bf16 %v4418_v17, %v2685_v18  ;;  %v2728_v7 = vmul.f32 %v6227_v46, %v2685_v18  ;;  %v5156_v18 = vld [vmem:[%s6518_s2 + $0x20] sm:$0xff] }
 0xb45   : > { %2756 = vadd.xlane.f32.xlu1 %v2729_v30 }
 0xb46   : > { %4877 = vmatpush3.bf16.xpose.msra.mxu1 %v4876_v19  ;;  %4905 = vmatprep.subr.bf16.mxu0 %v4876_v19 }
 0xb47   : > { %2754 = vadd.xlane.f32.xlu0 %v2728_v7  ;;  %4907 = vmatpush3.bf16.msra.mxu0 %v4876_v19 }
 0xb48   : > { %4878 = vmatprep.subr.bf16.mxu1 %v5175_v40 }
 0xb4a   : > { %v4421_v20 = vpop.f32.mrb[108].mxu0 }
 0xb4b   : > { %v2695_v54 = vpop.f32.mrb[109].mxu0  ;;  %v2731_v31 = vmul.f32 %v4421_v20, %v6227_v46 }
 0xb4c   : > { %v4879_v9 = vpack.c.bf16 %v4421_v20, %v2695_v54  ;;  %v2730_v55 = vmul.f32 %v6227_v46, %v2695_v54 }
 0xb4d   : > { %2760 = vadd.xlane.f32.xlu1 %v2731_v31 }
 0xb4e   : > { %4880 = vmatpush3.bf16.xpose.msra.mxu1 %v4879_v9  ;;  %4909 = vmatprep.subr.bf16.mxu0 %v4879_v9 }
 0xb4f   : > { %2758 = vadd.xlane.f32.xlu0 %v2730_v55  ;;  %4911 = vmatpush3.bf16.msra.mxu0 %v4879_v9 }
 0xb50   : > { %4881 = vmatprep.subr.bf16.mxu1 %v5175_v40 }
 0xb52   : > { %v4424_v21 = vpop.f32.mrb[110].mxu0 }
 0xb53   : > { %v2705_v27 = vpop.f32.mrb[111].mxu0  ;;  %v2733_v2 = vmul.f32 %v4424_v21, %v6227_v46 }
 0xb54   : > { %v4882_v10 = vpack.c.bf16 %v4424_v21, %v2705_v27  ;;  %v2732_v11 = vmul.f32 %v6227_v46, %v2705_v27  ;;  %v5157_v27 = vld [vmem:[%s6518_s2 + $0x38] sm:$0xff] }
 0xb55   : > { %2764 = vadd.xlane.f32.xlu1 %v2733_v2 }
 0xb56   : > { %4883 = vmatpush3.bf16.xpose.msra.mxu1 %v4882_v10  ;;  %4913 = vmatprep.subr.bf16.mxu0 %v4882_v10 }
 0xb57   : > { %2762 = vadd.xlane.f32.xlu0 %v2732_v11  ;;  %4915 = vmatpush3.bf16.msra.mxu0 %v4882_v10  ;;  %v5158_v10 = vld [vmem:[%s6518_s2 + $0x30] sm:$0xff] }
 0xb5d   : > { %4458 = vmatmul.mubr.f32.vlgmr.msra.gmra.mrb[66].mxu1 %v2568_v26 }
 0xbaa   : > { %v2737_v33 = vpop.xlane.xlu1 %2736 }
 0xbac   : > { %v2735_v22 = vpop.xlane.xlu0 %2734 }
 0xbb2   : > { %v2741_v40 = vpop.xlane.xlu1 %2740 }
 0xbb4   : > { %v2739_v32 = vpop.xlane.xlu0 %2738 }
 0xbba   : > { %v2745_v16 = vpop.xlane.xlu1 %2744 }
 0xbbc   : > { %v2743_v38 = vpop.xlane.xlu0 %2742 }
 0xbc2   : > { %v2749_v29 = vpop.xlane.xlu1 %2748 }
 0xbc4   : > { %v2747_v43 = vpop.xlane.xlu0 %2746 }
 0xbca   : > { %v2753_v8 = vpop.xlane.xlu1 %2752 }
 0xbcc   : > { %v2751_v63 = vpop.xlane.xlu0 %2750 }
 0xbd2   : > { %v2757_v13 = vpop.xlane.xlu1 %2756 }
 0xbd4   : > { %v2755_v14 = vpop.xlane.xlu0 %2754 }
 0xbda   : > { %v2761_v55 = vpop.xlane.xlu1 %2760 }
 0xbdc   : > { %v2759_v21 = vpop.xlane.xlu0 %2758 }
 0xc30   : > { %v2832_v34 = vpop.f32.mrb[66].mxu1 }
 0xc31   : > { %v6257_v35 = vrot.slane %v2832_v34, %v677_v24  ;;  %v4459_v37 = vpop.f32.mrb[67].mxu1 }
 0xc32   : > { %v2765_v37 = vpop.xlane.xlu1 %2764 }
 0xc33   : > { %v2841_v3 = vadd.f32 %v6257_v35, %v2737_v33  ;;  %v2840_v39 = vadd.f32 %v6257_v35, %v2735_v22  ;;  %v2843_v42 = vadd.f32 %v6257_v35, %v2741_v40  ;;  %v2842_v44 = vadd.f32 %v6257_v35, %v2739_v32 }
 0xc34   : > { %v2845_v25 = vadd.f32 %v6257_v35, %v2745_v16  ;;  %v2844_v45 = vadd.f32 %v6257_v35, %v2743_v38  ;;  %v2847_v56 = vadd.f32 %v6257_v35, %v2749_v29  ;;  %v2846_v49 = vadd.f32 %v6257_v35, %v2747_v43  ;;  %v2763_v16 = vpop.xlane.xlu0 %2762  ;;  %v5161_v29 = vld [vmem:[%s6518_s2 + $0x58] sm:$0xff] }
 0xc35   : > { %v2857_v47 = vmul.f32 0.2, %v2841_v3  ;;  %v2856_v48 = vmul.f32 0.2, %v2840_v39  ;;  %v2859_v23 = vmul.f32 0.2, %v2843_v42  ;;  %v2849_v6 = vadd.f32 %v6257_v35, %v2753_v8 }
 0xc36   : > { %v2858_v24 = vmul.f32 0.2, %v2842_v44  ;;  %v2861_v51 = vmul.f32 0.2, %v2845_v25  ;;  %v2860_v52 = vmul.f32 0.2, %v2844_v45  ;;  %v2848_v5 = vadd.f32 %v6257_v35, %v2751_v63 }
 0xc37   : > { %v2873_v28 = vmax.f32 %v2841_v3, %v2857_v47  ;;  %v2872_v46 = vmax.f32 %v2840_v39, %v2856_v48  ;;  %v2875_v36 = vmax.f32 %v2843_v42, %v2859_v23  ;;  %v2863_v4 = vmul.f32 0.2, %v2847_v56  ;;  %v5165_v8 = vld [vmem:[%s6518_s2 + $0x78] sm:$0xff] }
 0xc38   : > { %v2874_v59 = vmax.f32 %v2842_v44, %v2858_v24  ;;  %v2877_v62 = vmax.f32 %v2845_v25, %v2861_v51  ;;  %v2876_v12 = vmax.f32 %v2844_v45, %v2860_v52  ;;  %v2862_v0 = vmul.f32 0.2, %v2846_v49  ;;  %v5159_v44 = vld [vmem:[%s6518_s2 + $0x48] sm:$0xff]  ;;  %v5160_v45 = vld [vmem:[%s6518_s2 + $0x40] sm:$0xff] }
 0xc39   : > { %v6270_v53 = vadd.f32 %v5151_v57, %v2873_v28  ;;  %v6275_v61 = vadd.f32 %v5152_v58, %v2872_v46  ;;  %v6282_v50 = vadd.f32 %v5153_v41, %v2875_v36  ;;  %v2879_v19 = vmax.f32 %v2847_v56, %v2863_v4  ;;  %v5162_v28 = vld [vmem:[%s6518_s2 + $0x50] sm:$0xff]  ;;  %v5163_v56 = vld [vmem:[%s6518_s2 + $0x68] sm:$0xff]  ;;  %v5164_v57 = vld [vmem:[%s6518_s2 + $0x60] sm:$0xff] }
 0xc3a   : > { %v6287_v60 = vadd.f32 %v5154_v1, %v2874_v59  ;;  %v6296_v17 = vadd.f32 %v5155_v15, %v2877_v62  ;;  %v6301_v30 = vadd.f32 %v5156_v18, %v2876_v12  ;;  %v2878_v7 = vmax.f32 %v2846_v49, %v2862_v0  ;;  %v5166_v62 = vld [vmem:[%s6518_s2 + $0x70] sm:$0xff] }
 0xc3b   : > { %2906 = vmax.xlane.f32.xlu1 %v6270_v53  ;;  %2904 = vmax.xlane.f32.xlu0 %v6275_v61  ;;  %v2865_v20 = vmul.f32 0.2, %v2849_v6  ;;  %v2864_v54 = vmul.f32 0.2, %v2848_v5  ;;  %v2851_v31 = vadd.f32 %v6257_v35, %v2757_v13  ;;  %v2850_v9 = vadd.f32 %v6257_v35, %v2755_v14 }
 0xc3c   : > { %v6310_v2 = vadd.f32 %v5157_v27, %v2879_v19  ;;  %v6315_v11 = vadd.f32 %v5158_v10, %v2878_v7  ;;  %v2853_v26 = vadd.f32 %v6257_v35, %v2761_v55  ;;  %v2852_v33 = vadd.f32 %v6257_v35, %v2759_v21 }
 0xc3d   : > { %v2881_v22 = vmax.f32 %v2849_v6, %v2865_v20  ;;  %v2880_v40 = vmax.f32 %v2848_v5, %v2864_v54  ;;  %v2867_v32 = vmul.f32 0.2, %v2851_v31  ;;  %v2866_v34 = vmul.f32 0.2, %v2850_v9 }
 0xc3e   : > { %v2869_v38 = vmul.f32 0.2, %v2853_v26  ;;  %v2868_v3 = vmul.f32 0.2, %v2852_v33  ;;  %v2855_v39 = vadd.f32 %v6257_v35, %v2765_v37  ;;  %v2854_v42 = vadd.f32 %v6257_v35, %v2763_v16 }
 0xc3f   : > { %2910 = vmax.xlane.f32.xlu1 %v6282_v50  ;;  %2908 = vmax.xlane.f32.xlu0 %v6287_v60  ;;  %v6326_v25 = vadd.f32 %v5159_v44, %v2881_v22  ;;  %v6331_v47 = vadd.f32 %v5160_v45, %v2880_v40  ;;  %v2883_v48 = vmax.f32 %v2851_v31, %v2867_v32 }
 0xc40   : > { %v2882_v23 = vmax.f32 %v2850_v9, %v2866_v34  ;;  %v2885_v24 = vmax.f32 %v2853_v26, %v2869_v38  ;;  %v2871_v35 = vmul.f32 0.2, %v2855_v39  ;;  %v2884_v51 = vmax.f32 %v2852_v33, %v2868_v3 }
 0xc41   : > { %v6338_v43 = vadd.f32 %v5161_v29, %v2883_v48  ;;  %v2870_v52 = vmul.f32 0.2, %v2854_v42 }
 0xc42   : > { %v6343_v46 = vadd.f32 %v5162_v28, %v2882_v23  ;;  %v6350_v49 = vadd.f32 %v5163_v56, %v2885_v24  ;;  %v6355_v58 = vadd.f32 %v5164_v57, %v2884_v51  ;;  %v2887_v36 = vmax.f32 %v2855_v39, %v2871_v35 }
 0xc43   : > { %2914 = vmax.xlane.f32.xlu1 %v6296_v17  ;;  %2912 = vmax.xlane.f32.xlu0 %v6301_v30  ;;  %v2886_v59 = vmax.f32 %v2854_v42, %v2870_v52 }
 0xc44   : > { %v6362_v63 = vadd.f32 %v5165_v8, %v2887_v36 }
 0xc45   : > { %v6367_v12 = vadd.f32 %v5166_v62, %v2886_v59 }
 0xc47   : > { %2918 = vmax.xlane.f32.xlu1 %v6310_v2  ;;  %2916 = vmax.xlane.f32.xlu0 %v6315_v11 }
 0xc4b   : > { %2922 = vmax.xlane.f32.xlu1 %v6326_v25  ;;  %2920 = vmax.xlane.f32.xlu0 %v6331_v47 }
 0xc4f   : > { %2926 = vmax.xlane.f32.xlu1 %v6338_v43  ;;  %2924 = vmax.xlane.f32.xlu0 %v6343_v46 }
 0xc53   : > { %2930 = vmax.xlane.f32.xlu1 %v6350_v49  ;;  %2928 = vmax.xlane.f32.xlu0 %v6355_v58 }
 0xc57   : > { %2934 = vmax.xlane.f32.xlu1 %v6362_v63  ;;  %2932 = vmax.xlane.f32.xlu0 %v6367_v12 }
 0xcc8   : > { %v2907_v4 = vpop.xlane.xlu1 %2906  ;;  %v2905_v0 = vpop.xlane.xlu0 %2904 }
 0xcc9   : > { %v2937_v41 = vsub.f32 %v6270_v53, %v2907_v4  ;;  %v2936_v1 = vsub.f32 %v6275_v61, %v2905_v0 }
 0xccb   : > { %v2954_v6 = vmul.f32 1.442695, %v2937_v41  ;;  %v2952_v5 = vmul.f32 1.442695, %v2936_v1 }
 0xccc   : > { %v2911_v13 = vpop.xlane.xlu1 %2910  ;;  %v2909_v14 = vpop.xlane.xlu0 %2908 }
 0xccd   : > { %5055 = vpow2.f32 %v2954_v6  ;;  %v2939_v15 = vsub.f32 %v6282_v50, %v2911_v13  ;;  %v2938_v18 = vsub.f32 %v6287_v60, %v2909_v14 }
 0xcce   : > { %5057 = vpow2.f32 %v2952_v5 }
 0xccf   : > { %v2958_v19 = vmul.f32 1.442695, %v2939_v15  ;;  %v2956_v7 = vmul.f32 1.442695, %v2938_v18 }
 0xcd0   : > { %v2915_v20 = vpop.xlane.xlu1 %2914  ;;  %v2913_v54 = vpop.xlane.xlu0 %2912 }
 0xcd1   : > { %5059 = vpow2.f32 %v2958_v19  ;;  %v2941_v31 = vsub.f32 %v6296_v17, %v2915_v20  ;;  %v2940_v53 = vsub.f32 %v6301_v30, %v2913_v54 }
 0xcd2   : > { %5061 = vpow2.f32 %v2956_v7 }
 0xcd3   : > { %v2962_v61 = vmul.f32 1.442695, %v2941_v31  ;;  %v2960_v9 = vmul.f32 1.442695, %v2940_v53 }
 0xcd4   : > { %v2919_v55 = vpop.xlane.xlu1 %2918  ;;  %v2917_v21 = vpop.xlane.xlu0 %2916 }
 0xcd5   : > { %5063 = vpow2.f32 %v2962_v61  ;;  %v2943_v50 = vsub.f32 %v6310_v2, %v2919_v55  ;;  %v2942_v60 = vsub.f32 %v6315_v11, %v2917_v21 }
 0xcd6   : > { %5065 = vpow2.f32 %v2960_v9 }
 0xcd7   : > { %v6379_v27 = vpop.eup %5055  ;;  %v2966_v10 = vmul.f32 1.442695, %v2943_v50  ;;  %v2964_v26 = vmul.f32 1.442695, %v2942_v60 }
 0xcd8   : > { %v6381_v33 = vpop.eup %5057  ;;  %2986 = vadd.xlane.f32.xlu1 %v6379_v27  ;;  %v2923_v17 = vpop.xlane.xlu1 %2922 }
 0xcd9   : > { %v2921_v30 = vpop.xlane.xlu0 %2920  ;;  %5067 = vpow2.f32 %v2966_v10  ;;  %v2945_v22 = vsub.f32 %v6326_v25, %v2923_v17  ;;  %2984 = vadd.xlane.f32.xlu0 %v6381_v33 }
 0xcda   : > { %v2944_v2 = vsub.f32 %v6331_v47, %v2921_v30  ;;  %5069 = vpow2.f32 %v2964_v26 }
 0xcdb   : > { %v6387_v11 = vpop.eup %5059  ;;  %v2970_v40 = vmul.f32 1.442695, %v2945_v22 }
 0xcdc   : > { %v2968_v32 = vmul.f32 1.442695, %v2944_v2  ;;  %v6389_v34 = vpop.eup %5061  ;;  %2990 = vadd.xlane.f32.xlu1 %v6387_v11  ;;  %v2927_v37 = vpop.xlane.xlu1 %2926 }
 0xcdd   : > { %v2925_v16 = vpop.xlane.xlu0 %2924  ;;  %5071 = vpow2.f32 %v2970_v40  ;;  %v2947_v38 = vsub.f32 %v6338_v43, %v2927_v37  ;;  %2988 = vadd.xlane.f32.xlu0 %v6389_v34 }
 0xcde   : > { %v2946_v3 = vsub.f32 %v6343_v46, %v2925_v16  ;;  %5073 = vpow2.f32 %v2968_v32 }
 0xcdf   : > { %v6395_v39 = vpop.eup %5063  ;;  %v2974_v42 = vmul.f32 1.442695, %v2947_v38 }
 0xce0   : > { %v2972_v44 = vmul.f32 1.442695, %v2946_v3  ;;  %v6397_v25 = vpop.eup %5065  ;;  %2994 = vadd.xlane.f32.xlu1 %v6395_v39  ;;  %v2931_v45 = vpop.xlane.xlu1 %2930 }
 0xce1   : > { %v2929_v47 = vpop.xlane.xlu0 %2928  ;;  %5075 = vpow2.f32 %v2974_v42  ;;  %v2949_v48 = vsub.f32 %v6350_v49, %v2931_v45  ;;  %2992 = vadd.xlane.f32.xlu0 %v6397_v25 }
 0xce2   : > { %v2948_v23 = vsub.f32 %v6355_v58, %v2929_v47  ;;  %5077 = vpow2.f32 %v2972_v44 }
 0xce3   : > { %v6403_v24 = vpop.eup %5067  ;;  %v2978_v35 = vmul.f32 1.442695, %v2949_v48 }
 0xce4   : > { %v2976_v29 = vmul.f32 1.442695, %v2948_v23  ;;  %v6405_v43 = vpop.eup %5069  ;;  %2998 = vadd.xlane.f32.xlu1 %v6403_v24  ;;  %v2935_v28 = vpop.xlane.xlu1 %2934 }
 0xce5   : > { %v2933_v46 = vpop.xlane.xlu0 %2932  ;;  %5079 = vpow2.f32 %v2978_v35  ;;  %v2951_v51 = vsub.f32 %v6362_v63, %v2935_v28  ;;  %2996 = vadd.xlane.f32.xlu0 %v6405_v43 }
 0xce6   : > { %v2950_v52 = vsub.f32 %v6367_v12, %v2933_v46  ;;  %5081 = vpow2.f32 %v2976_v29 }
 0xce7   : > { %v6411_v56 = vpop.eup %5071  ;;  %v2982_v49 = vmul.f32 1.442695, %v2951_v51 }
 0xce8   : > { %v2980_v57 = vmul.f32 1.442695, %v2950_v52  ;;  %v6413_v58 = vpop.eup %5073  ;;  %3002 = vadd.xlane.f32.xlu1 %v6411_v56 }
 0xce9   : > { %5083 = vpow2.f32 %v2982_v49  ;;  %3000 = vadd.xlane.f32.xlu0 %v6413_v58 }
 0xcea   : > { %5085 = vpow2.f32 %v2980_v57 }
 0xceb   : > { %v6417_v36 = vpop.eup %5075 }
 0xcec   : > { %v6419_v59 = vpop.eup %5077  ;;  %3006 = vadd.xlane.f32.xlu1 %v6417_v36 }
 0xced   : > { %3004 = vadd.xlane.f32.xlu0 %v6419_v59 }
 0xcef   : > { %v6423_v8 = vpop.eup %5079 }
 0xcf0   : > { %v6425_v63 = vpop.eup %5081  ;;  %3010 = vadd.xlane.f32.xlu1 %v6423_v8 }
 0xcf1   : > { %3008 = vadd.xlane.f32.xlu0 %v6425_v63 }
 0xcf3   : > { %v6429_v62 = vpop.eup %5083 }
 0xcf4   : > { %v6431_v12 = vpop.eup %5085  ;;  %3014 = vadd.xlane.f32.xlu1 %v6429_v62 }
 0xcf5   : > { %3012 = vadd.xlane.f32.xlu0 %v6431_v12 }
 0xd65   : > { %v2987_v4 = vpop.xlane.xlu1 %2986 }
 0xd66   : > { %5087 = vrcp.f32 %v2987_v4  ;;  %v2985_v0 = vpop.xlane.xlu0 %2984 }
 0xd67   : > { %5089 = vrcp.f32 %v2985_v0 }
 0xd69   : > { %v2991_v41 = vpop.xlane.xlu1 %2990 }
 0xd6a   : > { %5091 = vrcp.f32 %v2991_v41  ;;  %v2989_v1 = vpop.xlane.xlu0 %2988 }
 0xd6b   : > { %5093 = vrcp.f32 %v2989_v1 }
 0xd6d   : > { %v2995_v6 = vpop.xlane.xlu1 %2994 }
 0xd6e   : > { %5095 = vrcp.f32 %v2995_v6  ;;  %v2993_v5 = vpop.xlane.xlu0 %2992 }
 0xd6f   : > { %5097 = vrcp.f32 %v2993_v5 }
 0xd70   : > { %v5088_v13 = vpop.eup %5087 }
 0xd71   : > { %v5090_v14 = vpop.eup %5089  ;;  %v3033_v15 = vmul.f32 %v5088_v13, %v6379_v27  ;;  %v2999_v18 = vpop.xlane.xlu1 %2998 }
 0xd72   : > { %5099 = vrcp.f32 %v2999_v18  ;;  %v2997_v19 = vpop.xlane.xlu0 %2996  ;;  %v3032_v7 = vmul.f32 %v5090_v14, %v6381_v33 }
 0xd73   : > { %5101 = vrcp.f32 %v2997_v19 }
 0xd74   : > { %v5092_v20 = vpop.eup %5091  ;;  %4492 = vmatprep.mubr.f32.mxu0 %v3032_v7 }
 0xd75   : > { %v5094_v54 = vpop.eup %5093  ;;  %4493 = vmatmul.mubr.f32.vlgmr.msra.gmra.mrb[112].mxu0 %v3033_v15  ;;  %v3003_v31 = vpop.xlane.xlu1 %3002  ;;  %v3035_v53 = vmul.f32 %v5092_v20, %v6387_v11 }
 0xd76   : > { %5103 = vrcp.f32 %v3003_v31  ;;  %v3001_v61 = vpop.xlane.xlu0 %3000  ;;  %v3034_v9 = vmul.f32 %v5094_v54, %v6389_v34 }
 0xd77   : > { %5105 = vrcp.f32 %v3001_v61 }
 0xd78   : > { %v5096_v55 = vpop.eup %5095  ;;  %4495 = vmatprep.mubr.f32.mxu0 %v3034_v9 }
 0xd79   : > { %v5098_v21 = vpop.eup %5097  ;;  %4496 = vmatmul.mubr.f32.gmra.mrb[114].mxu0 %v3035_v53  ;;  %v3007_v50 = vpop.xlane.xlu1 %3006  ;;  %v3037_v60 = vmul.f32 %v5096_v55, %v6395_v39 }
 0xd7a   : > { %5107 = vrcp.f32 %v3007_v50  ;;  %v3005_v27 = vpop.xlane.xlu0 %3004  ;;  %v3036_v10 = vmul.f32 %v5098_v21, %v6397_v25 }
 0xd7b   : > { %5109 = vrcp.f32 %v3005_v27 }
 0xd7c   : > { %v5100_v26 = vpop.eup %5099  ;;  %4498 = vmatprep.mubr.f32.mxu0 %v3036_v10 }
 0xd7d   : > { %v5102_v33 = vpop.eup %5101  ;;  %4499 = vmatmul.mubr.f32.gmra.mrb[116].mxu0 %v3037_v60  ;;  %v3011_v17 = vpop.xlane.xlu1 %3010  ;;  %v3039_v30 = vmul.f32 %v5100_v26, %v6403_v24 }
 0xd7e   : > { %5111 = vrcp.f32 %v3011_v17  ;;  %v3009_v22 = vpop.xlane.xlu0 %3008  ;;  %v3038_v2 = vmul.f32 %v5102_v33, %v6405_v43 }
 0xd7f   : > { %5113 = vrcp.f32 %v3009_v22 }
 0xd80   : > { %v5104_v11 = vpop.eup %5103  ;;  %4501 = vmatprep.mubr.f32.mxu0 %v3038_v2 }
 0xd81   : > { %v5106_v40 = vpop.eup %5105  ;;  %4502 = vmatmul.mubr.f32.gmra.mrb[118].mxu0 %v3039_v30  ;;  %v3015_v32 = vpop.xlane.xlu1 %3014  ;;  %v3041_v34 = vmul.f32 %v5104_v11, %v6411_v56 }
 0xd82   : > { %5115 = vrcp.f32 %v3015_v32  ;;  %v3013_v37 = vpop.xlane.xlu0 %3012  ;;  %v3040_v16 = vmul.f32 %v5106_v40, %v6413_v58 }
 0xd83   : > { %5117 = vrcp.f32 %v3013_v37 }
 0xd84   : > { %v5108_v38 = vpop.eup %5107  ;;  %4504 = vmatprep.mubr.f32.mxu0 %v3040_v16 }
 0xd85   : > { %v5110_v3 = vpop.eup %5109  ;;  %4505 = vmatmul.mubr.f32.gmra.mrb[120].mxu0 %v3041_v34  ;;  %v3043_v39 = vmul.f32 %v5108_v38, %v6417_v36 }
 0xd86   : > { %v3042_v42 = vmul.f32 %v5110_v3, %v6419_v59 }
 0xd88   : > { %v5112_v44 = vpop.eup %5111  ;;  %4507 = vmatprep.mubr.f32.mxu0 %v3042_v42 }
 0xd89   : > { %v5114_v25 = vpop.eup %5113  ;;  %4508 = vmatmul.mubr.f32.gmra.mrb[122].mxu0 %v3043_v39  ;;  %v3045_v45 = vmul.f32 %v5112_v44, %v6423_v8 }
 0xd8a   : > { %v3044_v47 = vmul.f32 %v5114_v25, %v6425_v63 }
 0xd8c   : > { %v5116_v48 = vpop.eup %5115  ;;  %4510 = vmatprep.mubr.f32.mxu0 %v3044_v47 }
 0xd8d   : > { %v5118_v23 = vpop.eup %5117  ;;  %4511 = vmatmul.mubr.f32.gmra.mrb[124].mxu0 %v3045_v45  ;;  %v3047_v24 = vmul.f32 %v5116_v48, %v6429_v62 }
 0xd8e   : > { %v3046_v35 = vmul.f32 %v5118_v23, %v6431_v12 }
 0xd90   : > { %4513 = vmatprep.mubr.f32.mxu0 %v3046_v35 }
 0xd91   : > { %4514 = vmatmul.mubr.f32.gmra.mrb[126].mxu0 %v3047_v24 }
 0xe48   : > { %v4494_v29 = vpop.f32.mrb[112].mxu0 }
 0xe49   : > { %v3210_v43 = vmin.f32 %v4494_v29, 0.0  ;;  %v3114_v28 = vpop.f32.mrb[113].mxu0  ;;  %vm3194_vm0 = vcmp.gt.f32.partialorder %v4494_v29, 0.0 }
 0xe4a   : > { %v3209_v46 = vmin.f32 %v3114_v28, 0.0  ;;  %vm3193_vm2 = vcmp.gt.f32.partialorder %v3114_v28, 0.0 }
 0xe4b   : > { %v3227_v51 = vmul.f32 1.442695, %v3210_v43 }
 0xe4c   : > { %v3225_v52 = vmul.f32 1.442695, %v3209_v46  ;;  %v4497_v56 = vpop.f32.mrb[114].mxu0 }
 0xe4d   : > { %5119 = vpow2.f32 %v3227_v51  ;;  %v3212_v49 = vmin.f32 %v4497_v56, 0.0  ;;  %v3124_v57 = vpop.f32.mrb[115].mxu0  ;;  %vm3196_vm3 = vcmp.gt.f32.partialorder %v4497_v56, 0.0 }
 0xe4e   : > { %5121 = vpow2.f32 %v3225_v52  ;;  %v3211_v58 = vmin.f32 %v3124_v57, 0.0  ;;  %vm3195_vm4 = vcmp.gt.f32.partialorder %v3124_v57, 0.0 }
 0xe4f   : > { %v3231_v36 = vmul.f32 1.442695, %v3212_v49 }
 0xe50   : > { %v3229_v59 = vmul.f32 1.442695, %v3211_v58  ;;  %v6451_v8 = vpop.f32.mrb[116].mxu0 }
 0xe51   : > { %5123 = vpow2.f32 %v3231_v36  ;;  %v3214_v63 = vmin.f32 %v6451_v8, 0.0  ;;  %v6454_v62 = vpop.f32.mrb[117].mxu0  ;;  %vm3198_vm5 = vcmp.gt.f32.partialorder %v6451_v8, 0.0 }
 0xe52   : > { %5125 = vpow2.f32 %v3229_v59  ;;  %v3213_v12 = vmin.f32 %v6454_v62, 0.0  ;;  %vm3197_vm6 = vcmp.gt.f32.partialorder %v6454_v62, 0.0 }
 0xe53   : > { %v3235_v4 = vmul.f32 1.442695, %v3214_v63 }
 0xe54   : > { %v3233_v0 = vmul.f32 1.442695, %v3213_v12  ;;  %v6457_v41 = vpop.f32.mrb[118].mxu0 }
 0xe55   : > { %5127 = vpow2.f32 %v3235_v4  ;;  %v3216_v1 = vmin.f32 %v6457_v41, 0.0  ;;  %v6460_v6 = vpop.f32.mrb[119].mxu0  ;;  %vm3200_vm7 = vcmp.gt.f32.partialorder %v6457_v41, 0.0 }
 0xe56   : > { %5129 = vpow2.f32 %v3233_v0  ;;  %v3215_v5 = vmin.f32 %v6460_v6, 0.0  ;;  %vm3199_vm8 = vcmp.gt.f32.partialorder %v6460_v6, 0.0 }
 0xe57   : > { %v5120_v13 = vpop.eup %5119  ;;  %v3239_v14 = vmul.f32 1.442695, %v3216_v1 }
 0xe58   : > { %v5122_v15 = vpop.eup %5121  ;;  %v3515_v18 = vadd.f32 -1.0, %v5120_v13  ;;  %v3237_v19 = vmul.f32 1.442695, %v3215_v5  ;;  %v6469_v7 = vpop.f32.mrb[120].mxu0 }
 0xe59   : > { %v3514_v20 = vadd.f32 -1.0, %v5122_v15  ;;  %5131 = vpow2.f32 %v3239_v14  ;;  %v3218_v54 = vmin.f32 %v6469_v7, 0.0  ;;  %v6472_v31 = vpop.f32.mrb[121].mxu0  ;;  %vm3202_vm9 = vcmp.gt.f32.partialorder %v6469_v7, 0.0 }
 0xe5a   : > { %v3274_v53 = vsel %vm3194_vm0, %v4494_v29, %v3515_v18  ;;  %5133 = vpow2.f32 %v3237_v19  ;;  %v3217_v61 = vmin.f32 %v6472_v31, 0.0  ;;  %vm3201_vm10 = vcmp.gt.f32.partialorder %v6472_v31, 0.0 }
 0xe5b   : > { %v5124_v9 = vpop.eup %5123  ;;  %3290 = vst [vmem:[%s6467_s12 + $0x8] sm:$0xff] %v3274_v53  ;;  %v3273_v55 = vsel %vm3193_vm2, %v3114_v28, %v3514_v20  ;;  %v3243_v21 = vmul.f32 1.442695, %v3218_v54 }
 0xe5c   : > { %v5126_v50 = vpop.eup %5125  ;;  %3289 = vst [vmem:[%s6467_s12] sm:$0xff] %v3273_v55  ;;  %v3517_v60 = vadd.f32 -1.0, %v5124_v9  ;;  %v3241_v27 = vmul.f32 1.442695, %v3217_v61  ;;  %v6477_v10 = vpop.f32.mrb[122].mxu0 }
 0xe5d   : > { %v3516_v26 = vadd.f32 -1.0, %v5126_v50  ;;  %5135 = vpow2.f32 %v3243_v21  ;;  %v3220_v33 = vmin.f32 %v6477_v10, 0.0  ;;  %v6480_v17 = vpop.f32.mrb[123].mxu0  ;;  %vm3204_vm11 = vcmp.gt.f32.partialorder %v6477_v10, 0.0 }
 0xe5e   : > { %v3276_v30 = vsel %vm3196_vm3, %v4497_v56, %v3517_v60  ;;  %5137 = vpow2.f32 %v3241_v27  ;;  %v3219_v22 = vmin.f32 %v6480_v17, 0.0  ;;  %vm3203_vm12 = vcmp.gt.f32.partialorder %v6480_v17, 0.0 }
 0xe5f   : > { %v5128_v2 = vpop.eup %5127  ;;  %3292 = vst [vmem:[%s6467_s12 + $0x18] sm:$0xff] %v3276_v30  ;;  %v3275_v11 = vsel %vm3195_vm4, %v3124_v57, %v3516_v26  ;;  %v3247_v40 = vmul.f32 1.442695, %v3220_v33 }
 0xe60   : > { %v5130_v32 = vpop.eup %5129  ;;  %3291 = vst [vmem:[%s6467_s12 + $0x10] sm:$0xff] %v3275_v11  ;;  %v3519_v34 = vadd.f32 -1.0, %v5128_v2  ;;  %v3245_v37 = vmul.f32 1.442695, %v3219_v22  ;;  %v4512_v16 = vpop.f32.mrb[124].mxu0 }
 0xe61   : > { %v3518_v38 = vadd.f32 -1.0, %v5130_v32  ;;  %5139 = vpow2.f32 %v3247_v40  ;;  %v3222_v3 = vmin.f32 %v4512_v16, 0.0  ;;  %v3174_v39 = vpop.f32.mrb[125].mxu0  ;;  %vm3206_vm13 = vcmp.gt.f32.partialorder %v4512_v16, 0.0 }
 0xe62   : > { %v3278_v42 = vsel %vm3198_vm5, %v6451_v8, %v3519_v34  ;;  %5141 = vpow2.f32 %v3245_v37  ;;  %v3221_v44 = vmin.f32 %v3174_v39, 0.0  ;;  %vm3205_vm14 = vcmp.gt.f32.partialorder %v3174_v39, 0.0 }
 0xe63   : > { %v5132_v25 = vpop.eup %5131  ;;  %3294 = vst [vmem:[%s6467_s12 + $0x28] sm:$0xff] %v3278_v42  ;;  %v3277_v45 = vsel %vm3197_vm6, %v6454_v62, %v3518_v38  ;;  %v3251_v47 = vmul.f32 1.442695, %v3222_v3 }
 0xe64   : > { %v5134_v48 = vpop.eup %5133  ;;  %3293 = vst [vmem:[%s6467_s12 + $0x20] sm:$0xff] %v3277_v45  ;;  %v3521_v23 = vadd.f32 -1.0, %v5132_v25  ;;  %v3249_v24 = vmul.f32 1.442695, %v3221_v44  ;;  %v4515_v35 = vpop.f32.mrb[126].mxu0 }
 0xe65   : > { %v3520_v29 = vadd.f32 -1.0, %v5134_v48  ;;  %5143 = vpow2.f32 %v3251_v47  ;;  %v3224_v43 = vmin.f32 %v4515_v35, 0.0  ;;  %v3184_v28 = vpop.f32.mrb[127].mxu0  ;;  %vm3208_vm15 = vcmp.gt.f32.partialorder %v4515_v35, 0.0 }
 0xe66   : > { %v3280_v46 = vsel %vm3200_vm7, %v6457_v41, %v3521_v23  ;;  %5145 = vpow2.f32 %v3249_v24  ;;  %v3223_v51 = vmin.f32 %v3184_v28, 0.0  ;;  %vm3207_vm1 = vcmp.gt.f32.partialorder %v3184_v28, 0.0 }
 0xe67   : > { %v5136_v52 = vpop.eup %5135  ;;  %3296 = vst [vmem:[%s6467_s12 + $0x38] sm:$0xff] %v3280_v46  ;;  %v3279_v56 = vsel %vm3199_vm8, %v6460_v6, %v3520_v29  ;;  %v3255_v49 = vmul.f32 1.442695, %v3224_v43 }
 0xe68   : > { %v5138_v57 = vpop.eup %5137  ;;  %3295 = vst [vmem:[%s6467_s12 + $0x30] sm:$0xff] %v3279_v56  ;;  %v3523_v58 = vadd.f32 -1.0, %v5136_v52  ;;  %v3253_v36 = vmul.f32 1.442695, %v3223_v51 }
 0xe69   : > { %v3522_v59 = vadd.f32 -1.0, %v5138_v57  ;;  %5147 = vpow2.f32 %v3255_v49 }
 0xe6a   : > { %v3282_v8 = vsel %vm3202_vm9, %v6469_v7, %v3523_v58  ;;  %5149 = vpow2.f32 %v3253_v36 }
 0xe6b   : > { %v5140_v63 = vpop.eup %5139  ;;  %3298 = vst [vmem:[%s6467_s12 + $0x48] sm:$0xff] %v3282_v8  ;;  %v3281_v62 = vsel %vm3201_vm10, %v6472_v31, %v3522_v59 }
 0xe6c   : > { %v5142_v12 = vpop.eup %5141  ;;  %3297 = vst [vmem:[%s6467_s12 + $0x40] sm:$0xff] %v3281_v62  ;;  %v3525_v4 = vadd.f32 -1.0, %v5140_v63 }
 0xe6d   : > { %v3524_v0 = vadd.f32 -1.0, %v5142_v12 }
 0xe6e   : > { %v3284_v41 = vsel %vm3204_vm11, %v6477_v10, %v3525_v4 }
 0xe6f   : > { %v5144_v1 = vpop.eup %5143  ;;  %3300 = vst [vmem:[%s6467_s12 + $0x58] sm:$0xff] %v3284_v41  ;;  %v3283_v6 = vsel %vm3203_vm12, %v6480_v17, %v3524_v0 }
 0xe70   : > { %v5146_v5 = vpop.eup %5145  ;;  %3299 = vst [vmem:[%s6467_s12 + $0x50] sm:$0xff] %v3283_v6  ;;  %v3527_v13 = vadd.f32 -1.0, %v5144_v1 }
 0xe71   : > { %v3526_v14 = vadd.f32 -1.0, %v5146_v5 }
 0xe72   : > { %v3286_v15 = vsel %vm3206_vm13, %v4512_v16, %v3527_v13 }
 0xe73   : > { %v5148_v18 = vpop.eup %5147  ;;  %3302 = vst [vmem:[%s6467_s12 + $0x68] sm:$0xff] %v3286_v15  ;;  %v3285_v19 = vsel %vm3205_vm14, %v3174_v39, %v3526_v14 }
 0xe74   : > { %v5150_v7 = vpop.eup %5149  ;;  %3301 = vst [vmem:[%s6467_s12 + $0x60] sm:$0xff] %v3285_v19  ;;  %v3529_v20 = vadd.f32 -1.0, %v5148_v18 }
 0xe75   : > { %v3528_v54 = vadd.f32 -1.0, %v5150_v7 }
 0xe76   : > { %v3288_v31 = vsel %vm3208_vm15, %v4515_v35, %v3529_v20 }
 0xe77   : > { %3304 = vst [vmem:[%s6467_s12 + $0x78] sm:$0xff] %v3288_v31  ;;  %v3287_v53 = vsel %vm3207_vm1, %v3184_v28, %v3528_v54 }
 0xe78   : > { %3303 = vst [vmem:[%s6467_s12 + $0x70] sm:$0xff] %v3287_v53 }
 0xe79 PF: > { %s19_s27 = sadd.s32 1, %s5173_s27  }
 0xe7a   : > { %p16_p4 = scmp.ge.s32.totalorder %s19_s27, 6  }
 0xe7c   :  { %18 = sbr.rel (!%p16_p4) target bundleno = 1 (0x1), region = 101 }

</bundles_post_ra>
